<compile_context>
chip_gen: v5e
topology: v5e:2x2
jax: 0.10.0
libtpu: 0.0.40
codegen_flags: <defaults>
</compile_context>

<pallas_src>
import functools

import jax
import jax.numpy as jnp
from jax.experimental import pallas as pl
from jax.experimental.pallas import tpu as pltpu

CFG = dict(dim_x=4, dim_y=3, Lx=12, Tx=6, Ty=4, n_a=16, n_s=16,
           n_align_x=8, n_align_y=8, fc_x=16, fc_y=16, freq_ratio=3)

LANES = 128  # slab lane width (all packed params have <= 64 columns)


# --------------------------------------------------------------------------------------
# Parameter slab layout / packing (done once in the wrapper; layout is static python)
# --------------------------------------------------------------------------------------
def param_layout(cfg):
    n_a, n_s = cfg["n_a"], cfg["n_s"]
    nax, nay = cfg["n_align_x"], cfg["n_align_y"]
    fcx, fcy = cfg["fc_x"], cfg["fc_y"]
    dim_x, dim_y = cfg["dim_x"], cfg["dim_y"]
    shapes = [
        ("enc_wih", (dim_x, 4 * n_a)),
        ("enc_whh", (n_a, 4 * n_a)),
        ("enc_b", (1, 4 * n_a)),
        ("ay_w1a", (n_a, nay)), ("ay_w1s", (n_s, nay)), ("ay_b1", (1, nay)),
        ("ay_w2", (1, nay)), ("ay_b2", (1, 1)),
        ("ax_w1a", (n_a, nax)), ("ax_w1s", (n_a, nax)), ("ax_b1", (1, nax)),
        ("ax_w2", (1, nax)), ("ax_b2", (1, 1)),
        ("cy_w", (n_a + n_s, 4 * n_s)),     # fused [cy_wc; cy_whh]
        ("cy_wi", (dim_y, 4 * n_s)), ("cy_b", (1, 4 * n_s)),
        ("cx_w", (2 * n_a, 4 * n_a)),       # fused [cx_wc; cx_whh]
        ("cx_wi", (dim_x, 4 * n_a)), ("cx_b", (1, 4 * n_a)),
        ("f1y_w", (n_s, fcy)), ("f1y_b", (1, fcy)),
        ("f2y_w", (fcy, dim_y)), ("f2y_b", (1, dim_y)),
        ("f1x_w", (n_a, fcx)), ("f1x_b", (1, fcx)),
        ("f2x_w", (fcx, dim_x)), ("f2x_b", (1, dim_x)),
    ]
    layout, off = {}, 0
    for name, (r, c) in shapes:
        layout[name] = (off, r, c)
        off += -(-r // 8) * 8          # pad each block's rows to a sublane-tile boundary
    return layout, off


def pack_params(params, cfg):
    layout, total_rows = param_layout(cfg)
    fused = dict(params)
    fused["cy_w"] = jnp.concatenate([params["cy_wc"], params["cy_whh"]], axis=0)
    fused["cx_w"] = jnp.concatenate([params["cx_wc"], params["cx_whh"]], axis=0)
    slab = jnp.zeros((total_rows, LANES), jnp.float32)
    for name, (off, r, c) in layout.items():
        w = jnp.asarray(fused[name], jnp.float32)
        assert w.shape == (r, c), (name, w.shape, (r, c))
        slab = slab.at[off:off + r, 0:c].set(w)
    return slab


# --------------------------------------------------------------------------------------
# Kernel math (flat, time-major)
# --------------------------------------------------------------------------------------
def _forward_flat(cfg, B, getw, x_enc_f, x_dec_f, y_dec_f, a_buf, s_buf):
    n_a, n_s, fr = cfg["n_a"], cfg["n_s"], cfg["freq_ratio"]
    Lx, Tx, Ty = cfg["Lx"], cfg["Tx"], cfg["Ty"]
    f32 = jnp.float32

    def dot(a, b):
        return jnp.dot(a, b, preferred_element_type=f32)

    def eye_f32(n):
        r = jax.lax.broadcasted_iota(jnp.int32, (n, n), 0)
        c = jax.lax.broadcasted_iota(jnp.int32, (n, n), 1)
        return (r == c).astype(f32)

    def gate_scale(H):
        # [1,1,2,1] per gate block: lets tanh(g) be recovered from one full-width sigmoid.
        lane = jax.lax.broadcasted_iota(jnp.int32, (1, 4 * H), 1)
        return jnp.where((lane >= 2 * H) & (lane < 3 * H), f32(2.0), f32(1.0))

    def lstm_cell(gates, c, H, gscale):
        # Single EUP pass over all 4H lanes; tanh(x) = 2*sigmoid(2x) - 1 for the g block.
        sig = jax.nn.sigmoid(gates * gscale)
        i = sig[:, 0:H]
        f = sig[:, H:2 * H]
        g = 2.0 * sig[:, 2 * H:3 * H] - 1.0
        o = sig[:, 3 * H:4 * H]
        c_new = f * c + i * g
        return o * jnp.tanh(c_new), c_new

    eyeB = eye_f32(B)

    def make_sel(Lw):
        # selT @ v sums flat (time-major) rows per batch element; sel @ q tiles a (B, K)
        # query over the Lw time steps.  Built once per decoder (constant, off the chain).
        selT = jnp.concatenate([eyeB] * Lw, axis=1)      # (B, Lw*B)
        sel = jnp.concatenate([eyeB] * Lw, axis=0)       # (Lw*B, B)
        return sel, selT

    def attention(a_win, keys_win, s_prev, w1s, b1, w2_row, b2, sel, selT):
        # OneStepAttn over a whole flat time window (Lw*B rows), batch-softmaxed via selT.
        proj = dot(s_prev, w1s) + b1                                   # (B, K)
        e = jnp.tanh(keys_win + dot(sel, proj))                        # (Lw*B, K)
        energies = jnp.maximum(
            jnp.sum(e * w2_row, axis=-1, keepdims=True) + b2, 0.0)     # (Lw*B, 1)
        # Global (window-wide) max shift: softmax is invariant to any uniform shift.
        m = jnp.max(energies, axis=0, keepdims=True)
        ex = jnp.exp(energies - m)
        red = dot(selT, jnp.concatenate([ex * a_win, ex], axis=-1))    # (B, n_a + 1)
        return red[:, 0:n_a] / red[:, n_a:n_a + 1]                     # context (B, n_a)

    # ---- all input-to-hidden projections hoisted off the recurrences (biases folded) ----
    enc_in = dot(x_enc_f, getw("enc_wih")) + getw("enc_b")             # (Lx*B, 4*n_a)
    ydec_in = dot(y_dec_f, getw("cy_wi")) + getw("cy_b")               # (Ty*B, 4*n_s)
    xdec_in = dot(x_dec_f, getw("cx_wi")) + getw("cx_b")               # (Tx*B, 4*n_a)

    gs_a = gate_scale(n_a)
    gs_s = gate_scale(n_s)

    # ---- pre-attention encoder LSTM (serial; only h @ Whh stays on the chain) ----
    enc_whh = getw("enc_whh")
    h = jnp.zeros((B, n_a), f32)
    c = jnp.zeros((B, n_a), f32)
    for t in range(Lx):
        gates = enc_in[t * B:(t + 1) * B, :] + dot(h, enc_whh)
        h, c = lstm_cell(gates, c, n_a, gs_a)
        a_buf[t * B:(t + 1) * B, :] = h                                # time-major flat store
    a_flat = a_buf[...]                                                # (Lx*B, n_a)

    # ---- attention key projections hoisted out of BOTH decoder loops (2 flat matmuls) ----
    keys_y = dot(a_flat, getw("ay_w1a"))                               # (Lx*B, n_align_y)
    keys_x = dot(a_flat, getw("ax_w1a"))                               # (Lx*B, n_align_x)

    # ---- low-frequency (y) decoder ----
    sel_y, selT_y = make_sel(fr)
    ay_w1s, ay_b1 = getw("ay_w1s"), getw("ay_b1")
    ay_w2, ay_b2 = getw("ay_w2"), getw("ay_b2")
    cy_w = getw("cy_w")
    s_y = jnp.zeros((B, n_s), f32)
    c_y = jnp.zeros((B, n_s), f32)
    for t in range(Ty):
        lo, hi = t * fr * B, (t + 1) * fr * B
        ctx = attention(a_flat[lo:hi, :], keys_y[lo:hi, :], s_y,
                        ay_w1s, ay_b1, ay_w2, ay_b2, sel_y, selT_y)
        gates = dot(jnp.concatenate([ctx, s_y], axis=-1), cy_w) + ydec_in[t * B:(t + 1) * B, :]
        s_y, c_y = lstm_cell(gates, c_y, n_s, gs_s)
    y_hid = dot(s_y, getw("f1y_w")) + getw("f1y_b")                    # dropout == identity
    y_pred = dot(y_hid, getw("f2y_w")) + getw("f2y_b")

    # ---- high-frequency (x) decoder ----
    sel_x, selT_x = make_sel(Lx)
    ax_w1s, ax_b1 = getw("ax_w1s"), getw("ax_b1")
    ax_w2, ax_b2 = getw("ax_w2"), getw("ax_b2")
    cx_w = getw("cx_w")
    s_x = h                                                            # a[:, -1, :n_a]
    c_x = jnp.zeros((B, n_a), f32)
    for t in range(Tx):
        ctx = attention(a_flat, keys_x, s_x, ax_w1s, ax_b1, ax_w2, ax_b2, sel_x, selT_x)
        gates = dot(jnp.concatenate([ctx, s_x], axis=-1), cx_w) + xdec_in[t * B:(t + 1) * B, :]
        s_x, c_x = lstm_cell(gates, c_x, n_a, gs_a)
        s_buf[t * B:(t + 1) * B, :] = s_x                              # time-major flat store
    s_flat = s_buf[...]                                                # (Tx*B, n_a)
    x_hid = dot(s_flat, getw("f1x_w")) + getw("f1x_b")                 # dropout == identity
    x_pred_flat = dot(x_hid, getw("f2x_w")) + getw("f2x_b")            # (Tx*B, dim_x)
    return x_pred_flat, y_pred


def mtmf_kernel(cfg, B, layout,
                x_enc_ref, x_dec_ref, y_dec_ref, slab_ref,
                x_pred_ref, y_pred_ref,
                a_buf, s_buf):
    def getw(name):
        off, r, c = layout[name]
        return slab_ref[off:off + r, 0:c]                              # static slab slice

    x_pred_flat, y_pred = _forward_flat(cfg, B, getw,
                                        x_enc_ref[...], x_dec_ref[...], y_dec_ref[...],
                                        a_buf, s_buf)
    x_pred_ref[...] = x_pred_flat                                      # single store
    y_pred_ref[...] = y_pred


# --------------------------------------------------------------------------------------
# Wrapper
# --------------------------------------------------------------------------------------
def mtmf_seq2seq_forward(x_enc, x_dec, y_dec, params, cfg):
    # Gridless single-program kernel: total resident data is ~0.2 MB on every generation.
    # If B ever scales up, add a batch grid with dimension_semantics=("parallel",) so the
    # two v7x TensorCores split the work.
    B = x_enc.shape[0]
    Lx, Tx, Ty = cfg["Lx"], cfg["Tx"], cfg["Ty"]
    dim_x, dim_y = cfg["dim_x"], cfg["dim_y"]

    layout, _ = param_layout(cfg)
    slab = pack_params(params, cfg)

    # Time-major flat inputs (layout plumbing done outside the kernel — free XLA ops).
    x_enc_f = jnp.transpose(x_enc, (1, 0, 2)).reshape(Lx * B, dim_x)
    x_dec_f = jnp.transpose(x_dec, (1, 0, 2)).reshape(Tx * B, dim_x)
    y_dec_f = jnp.transpose(y_dec, (1, 0, 2)).reshape(Ty * B, dim_y)

    out_shape = (jax.ShapeDtypeStruct((Tx * B, dim_x), jnp.float32),
                 jax.ShapeDtypeStruct((B, dim_y), jnp.float32))
    fn = pl.pallas_call(
        functools.partial(mtmf_kernel, cfg, B, layout),
        out_shape=out_shape,
        in_specs=[pl.BlockSpec(memory_space=pltpu.MemorySpace.VMEM)] * 4,
        out_specs=(pl.BlockSpec(memory_space=pltpu.MemorySpace.VMEM),
                   pl.BlockSpec(memory_space=pltpu.MemorySpace.VMEM)),
        scratch_shapes=[pltpu.VMEM((Lx * B, cfg["n_a"]), jnp.float32),   # encoder states
                        pltpu.VMEM((Tx * B, cfg["n_a"]), jnp.float32)],  # x-decoder states
    )
    x_pred_flat, y_pred = fn(x_enc_f, x_dec_f, y_dec_f, slab)
    x_pred = x_pred_flat.reshape(Tx, B, dim_x).transpose(1, 0, 2)        # back to (B, Tx, dim_x)
    return x_pred, y_pred


# --------------------------------------------------------------------------------------
# Parameters (weights stored pre-transposed (in_features, out_features); LSTM biases folded)
# --------------------------------------------------------------------------------------
def init_params(key, cfg):
    dim_x, dim_y = cfg["dim_x"], cfg["dim_y"]
    n_a, n_s = cfg["n_a"], cfg["n_s"]
    nax, nay = cfg["n_align_x"], cfg["n_align_y"]
    fcx, fcy = cfg["fc_x"], cfg["fc_y"]

    keys = iter(jax.random.split(key, 64))

    def w(shape, scale=0.1):
        return (scale * jax.random.normal(next(keys), shape)).astype(jnp.float32)

    p = {}
    # encoder nn.LSTM (unidirectional): bias_ih + bias_hh folded into enc_b.
    p["enc_wih"] = w((dim_x, 4 * n_a))
    p["enc_whh"] = w((n_a, 4 * n_a))
    p["enc_b"] = w((1, 4 * n_a), 0.05)
    # OneStepAttn_y: densor1 split into a-part / s-part; densor2 kept as a (1, n_align) row.
    p["ay_w1a"], p["ay_w1s"], p["ay_b1"] = w((n_a, nay)), w((n_s, nay)), w((1, nay), 0.05)
    p["ay_w2"], p["ay_b2"] = w((1, nay)), w((1, 1), 0.05)
    # OneStepAttn_x: the query is the x-decoder hidden state (width n_a).
    p["ax_w1a"], p["ax_w1s"], p["ax_b1"] = w((n_a, nax)), w((n_a, nax)), w((1, nax), 0.05)
    p["ax_w2"], p["ax_b2"] = w((1, nax)), w((1, 1), 0.05)
    # post_attn_y LSTMCell(n_a + dim_y, n_s): weight_ih split into context / y-input parts.
    p["cy_wc"], p["cy_wi"] = w((n_a, 4 * n_s)), w((dim_y, 4 * n_s))
    p["cy_whh"], p["cy_b"] = w((n_s, 4 * n_s)), w((1, 4 * n_s), 0.05)
    # post_attn_x LSTMCell(n_a + dim_x, n_a).
    p["cx_wc"], p["cx_wi"] = w((n_a, 4 * n_a)), w((dim_x, 4 * n_a))
    p["cx_whh"], p["cx_b"] = w((n_a, 4 * n_a)), w((1, 4 * n_a), 0.05)
    # output heads
    p["f1y_w"], p["f1y_b"] = w((n_s, fcy)), w((1, fcy), 0.05)
    p["f2y_w"], p["f2y_b"] = w((fcy, dim_y)), w((1, dim_y), 0.05)
    p["f1x_w"], p["f1x_b"] = w((n_a, fcx)), w((1, fcx), 0.05)
    p["f2x_w"], p["f2x_b"] = w((fcx, dim_x)), w((1, dim_x), 0.05)
    return p


# --------------------------------------------------------------------------------------
# Independent pure-JAX reference mirroring the PyTorch module structure (eval mode)
# --------------------------------------------------------------------------------------
def _reference_forward(x_enc, x_dec, y_dec, p, cfg):
    B = x_enc.shape[0]
    n_a, n_s, fr = cfg["n_a"], cfg["n_s"], cfg["freq_ratio"]
    Lx, Tx, Ty = cfg["Lx"], cfg["Tx"], cfg["Ty"]

    def lstm_cell(gates, c, H):
        i = jax.nn.sigmoid(gates[:, 0:H])
        f = jax.nn.sigmoid(gates[:, H:2 * H])
        g = jnp.tanh(gates[:, 2 * H:3 * H])
        o = jax.nn.sigmoid(gates[:, 3 * H:4 * H])
        c_new = f * c + i * g
        return o * jnp.tanh(c_new), c_new

    def one_step_attn(a_win, s_prev, w1a, w1s, b1, w2, b2):
        e = jnp.tanh(a_win @ w1a + (s_prev @ w1s + b1)[:, None, :])          # (B, Lw, K)
        en = jax.nn.relu(jnp.sum(e * w2, axis=-1, keepdims=True) + b2)       # (B, Lw, 1)
        mx = jnp.max(en, axis=1, keepdims=True)
        ex = jnp.exp(en - mx)
        alphas = ex / jnp.sum(ex, axis=1, keepdims=True)
        return jnp.sum(alphas * a_win, axis=1)                               # (B, n_a)

    h = jnp.zeros((B, n_a)); c = jnp.zeros((B, n_a))
    a_list = []
    for t in range(Lx):
        gates = x_enc[:, t, :] @ p["enc_wih"] + p["enc_b"] + h @ p["enc_whh"]
        h, c = lstm_cell(gates, c, n_a)
        a_list.append(h)
    a = jnp.stack(a_list, axis=1)                                            # (B, Lx, n_a)

    s_y = jnp.zeros((B, n_s)); c_y = jnp.zeros((B, n_s))
    for t in range(Ty):
        a_win = a[:, t * fr:(t + 1) * fr, :]
        ctx = one_step_attn(a_win, s_y, p["ay_w1a"], p["ay_w1s"], p["ay_b1"],
                            p["ay_w2"], p["ay_b2"])
        gates = (ctx @ p["cy_wc"] + y_dec[:, t, :] @ p["cy_wi"] + p["cy_b"]
                 + s_y @ p["cy_whh"])
        s_y, c_y = lstm_cell(gates, c_y, n_s)
    y_pred = (s_y @ p["f1y_w"] + p["f1y_b"]) @ p["f2y_w"] + p["f2y_b"]

    s_x = a[:, -1, :]; c_x = jnp.zeros((B, n_a))
    xs = []
    for t in range(Tx):
        ctx = one_step_attn(a, s_x, p["ax_w1a"], p["ax_w1s"], p["ax_b1"],
                            p["ax_w2"], p["ax_b2"])
        gates = (ctx @ p["cx_wc"] + x_dec[:, t, :] @ p["cx_wi"] + p["cx_b"]
                 + s_x @ p["cx_whh"])
        s_x, c_x = lstm_cell(gates, c_x, n_a)
        xs.append((s_x @ p["f1x_w"] + p["f1x_b"]) @ p["f2x_w"] + p["f2x_b"])
    x_pred = jnp.stack(xs, axis=1)                                           # (B, Tx, dim_x)
    return x_pred, y_pred


if __name__ == "__main__":
    cfg = CFG
    B = 2
    key = jax.random.PRNGKey(0)
    k1, k2, k3, kp = jax.random.split(key, 4)
    x_enc = jax.random.normal(k1, (B, cfg["Lx"], cfg["dim_x"]), jnp.float32)
    x_dec = jax.random.normal(k2, (B, cfg["Tx"], cfg["dim_x"]), jnp.float32)
    y_dec = jax.random.normal(k3, (B, cfg["Ty"], cfg["dim_y"]), jnp.float32)
    params = init_params(kp, cfg)

    # TODO(synk): dropout layers are identity here (eval mode / training=False path only).
    x_pred, y_pred = mtmf_seq2seq_forward(x_enc, x_dec, y_dec, params, cfg)
    jax.block_until_ready((x_pred, y_pred))

    x_ref, y_ref = _reference_forward(x_enc, x_dec, y_dec, params, cfg)
    assert x_pred.shape == (B, cfg["Tx"], cfg["dim_x"])
    assert y_pred.shape == (B, cfg["dim_y"])
    assert jnp.allclose(x_pred, x_ref, atol=1e-2, rtol=1e-2)
    assert jnp.allclose(y_pred, y_ref, atol=1e-2, rtol=1e-2)
    print("KERNEL_OK")
</pallas_src>

<mosaic_0001>
module attributes {stable_mosaic.version = 11 : i64} {
  func.func @mtmf_kernel(%arg0: memref<24x4xf32, #tpu.memory_space<vmem>>, %arg1: memref<12x4xf32, #tpu.memory_space<vmem>>, %arg2: memref<8x3xf32, #tpu.memory_space<vmem>>, %arg3: memref<336x128xf32, #tpu.memory_space<vmem>>, %arg4: memref<12x4xf32, #tpu.memory_space<vmem>>, %arg5: memref<2x3xf32, #tpu.memory_space<vmem>>, %arg6: memref<24x16xf32, #tpu.memory_space<vmem>>, %arg7: memref<12x16xf32, #tpu.memory_space<vmem>>) attributes {dimension_semantics = [], scalar_prefetch = 0 : i64, scratch_operands = 2 : i64, tpu.core_type = #tpu.core_type<tc>} {
    %c0 = arith.constant 0 : index
    %c0_0 = arith.constant 0 : index
    %0 = vector.load %arg0[%c0, %c0_0] : memref<24x4xf32, #tpu.memory_space<vmem>>, vector<24x4xf32>
    %c0_1 = arith.constant 0 : index
    %c0_2 = arith.constant 0 : index
    %1 = vector.load %arg1[%c0_1, %c0_2] : memref<12x4xf32, #tpu.memory_space<vmem>>, vector<12x4xf32>
    %c0_3 = arith.constant 0 : index
    %c0_4 = arith.constant 0 : index
    %2 = vector.load %arg2[%c0_3, %c0_4] : memref<8x3xf32, #tpu.memory_space<vmem>>, vector<8x3xf32>
    %3 = tpu.iota {dimensions = array<i32: 0>} : vector<2x2xi32>
    %4 = tpu.iota {dimensions = array<i32: 1>} : vector<2x2xi32>
    %5 = arith.cmpi eq, %3, %4 : vector<2x2xi32>
    %6 = arith.extui %5 : vector<2x2xi1> to vector<2x2xi32>
    %7 = arith.sitofp %6 : vector<2x2xi32> to vector<2x2xf32>
    %c0_5 = arith.constant 0 : index
    %c0_6 = arith.constant 0 : index
    %8 = vector.load %arg3[%c0_5, %c0_6] : memref<336x128xf32, #tpu.memory_space<vmem>>, vector<4x64xf32>
    %cst = arith.constant dense<0.000000e+00> : vector<24x64xf32>
    %9 = tpu.matmul %0, %8, %cst {dimension_numbers = #tpu.dot_dimension_numbers<[1], [0], [0], [1], [0, 0, 1, 1], [], []>} : vector<24x4xf32>, vector<4x64xf32>, vector<24x64xf32> -> vector<24x64xf32>
    %c24 = arith.constant 24 : index
    %c0_7 = arith.constant 0 : index
    %10 = vector.load %arg3[%c24, %c0_7] : memref<336x128xf32, #tpu.memory_space<vmem>>, vector<1x64xf32>
    %11 = vector.broadcast %10 : vector<1x64xf32> to vector<24x64xf32>
    %12 = arith.addf %9, %11 : vector<24x64xf32>
    %c176 = arith.constant 176 : index
    %c0_8 = arith.constant 0 : index
    %13 = vector.load %arg3[%c176, %c0_8] : memref<336x128xf32, #tpu.memory_space<vmem>>, vector<3x64xf32>
    %cst_9 = arith.constant dense<0.000000e+00> : vector<8x64xf32>
    %14 = tpu.matmul %2, %13, %cst_9 {dimension_numbers = #tpu.dot_dimension_numbers<[1], [0], [0], [1], [0, 0, 1, 1], [], []>} : vector<8x3xf32>, vector<3x64xf32>, vector<8x64xf32> -> vector<8x64xf32>
    %c184 = arith.constant 184 : index
    %c0_10 = arith.constant 0 : index
    %15 = vector.load %arg3[%c184, %c0_10] : memref<336x128xf32, #tpu.memory_space<vmem>>, vector<1x64xf32>
    %16 = vector.broadcast %15 : vector<1x64xf32> to vector<8x64xf32>
    %17 = arith.addf %14, %16 : vector<8x64xf32>
    %c224 = arith.constant 224 : index
    %c0_11 = arith.constant 0 : index
    %18 = vector.load %arg3[%c224, %c0_11] : memref<336x128xf32, #tpu.memory_space<vmem>>, vector<4x64xf32>
    %cst_12 = arith.constant dense<0.000000e+00> : vector<12x64xf32>
    %19 = tpu.matmul %1, %18, %cst_12 {dimension_numbers = #tpu.dot_dimension_numbers<[1], [0], [0], [1], [0, 0, 1, 1], [], []>} : vector<12x4xf32>, vector<4x64xf32>, vector<12x64xf32> -> vector<12x64xf32>
    %c232 = arith.constant 232 : index
    %c0_13 = arith.constant 0 : index
    %20 = vector.load %arg3[%c232, %c0_13] : memref<336x128xf32, #tpu.memory_space<vmem>>, vector<1x64xf32>
    %21 = vector.broadcast %20 : vector<1x64xf32> to vector<12x64xf32>
    %22 = arith.addf %19, %21 : vector<12x64xf32>
    %23 = tpu.iota {dimensions = array<i32: 1>} : vector<1x64xi32>
    %c32_i32 = arith.constant 32 : i32
    %24 = vector.broadcast %c32_i32 : i32 to vector<1x64xi32>
    %25 = arith.cmpi sge, %23, %24 : vector<1x64xi32>
    %c48_i32 = arith.constant 48 : i32
    %26 = vector.broadcast %c48_i32 : i32 to vector<1x64xi32>
    %27 = arith.cmpi slt, %23, %26 : vector<1x64xi32>
    %28 = arith.andi %25, %27 : vector<1x64xi1>
    %cst_14 = arith.constant 2.000000e+00 : f32
    %cst_15 = arith.constant 1.000000e+00 : f32
    %29 = vector.broadcast %cst_14 : f32 to vector<1x64xf32>
    %30 = vector.broadcast %cst_15 : f32 to vector<1x64xf32>
    %31 = arith.select %28, %29, %30 : vector<1x64xi1>, vector<1x64xf32>
    %32 = tpu.iota {dimensions = array<i32: 1>} : vector<1x64xi32>
    %c32_i32_16 = arith.constant 32 : i32
    %33 = vector.broadcast %c32_i32_16 : i32 to vector<1x64xi32>
    %34 = arith.cmpi sge, %32, %33 : vector<1x64xi32>
    %c48_i32_17 = arith.constant 48 : i32
    %35 = vector.broadcast %c48_i32_17 : i32 to vector<1x64xi32>
    %36 = arith.cmpi slt, %32, %35 : vector<1x64xi32>
    %37 = arith.andi %34, %36 : vector<1x64xi1>
    %cst_18 = arith.constant 2.000000e+00 : f32
    %cst_19 = arith.constant 1.000000e+00 : f32
    %38 = vector.broadcast %cst_18 : f32 to vector<1x64xf32>
    %39 = vector.broadcast %cst_19 : f32 to vector<1x64xf32>
    %40 = arith.select %37, %38, %39 : vector<1x64xi1>, vector<1x64xf32>
    %c8 = arith.constant 8 : index
    %c0_20 = arith.constant 0 : index
    %41 = vector.load %arg3[%c8, %c0_20] : memref<336x128xf32, #tpu.memory_space<vmem>>, vector<16x64xf32>
    %cst_21 = arith.constant 0.000000e+00 : f32
    %42 = vector.broadcast %cst_21 : f32 to vector<2x16xf32>
    %cst_22 = arith.constant 0.000000e+00 : f32
    %43 = vector.broadcast %cst_22 : f32 to vector<2x16xf32>
    %44 = vector.extract_strided_slice %12 {offsets = [0, 0], sizes = [2, 64], strides = [1, 1]} : vector<24x64xf32> to vector<2x64xf32>
    %cst_23 = arith.constant dense<0.000000e+00> : vector<2x64xf32>
    %45 = tpu.matmul %42, %41, %cst_23 {dimension_numbers = #tpu.dot_dimension_numbers<[1], [0], [0], [1], [0, 0, 1, 1], [], []>} : vector<2x16xf32>, vector<16x64xf32>, vector<2x64xf32> -> vector<2x64xf32>
    %46 = arith.addf %44, %45 : vector<2x64xf32>
    %47 = vector.broadcast %31 : vector<1x64xf32> to vector<2x64xf32>
    %48 = arith.mulf %46, %47 : vector<2x64xf32>
    %49 = arith.negf %48 : vector<2x64xf32>
    %50 = math.exp %49 : vector<2x64xf32>
    %cst_24 = arith.constant 1.000000e+00 : f32
    %51 = vector.broadcast %cst_24 : f32 to vector<2x64xf32>
    %52 = arith.addf %51, %50 : vector<2x64xf32>
    %53 = arith.divf %51, %52 : vector<2x64xf32>
    %54 = vector.extract_strided_slice %53 {offsets = [0, 0], sizes = [2, 16], strides = [1, 1]} : vector<2x64xf32> to vector<2x16xf32>
    %55 = vector.extract_strided_slice %53 {offsets = [0, 16], sizes = [2, 16], strides = [1, 1]} : vector<2x64xf32> to vector<2x16xf32>
    %56 = vector.extract_strided_slice %53 {offsets = [0, 32], sizes = [2, 16], strides = [1, 1]} : vector<2x64xf32> to vector<2x16xf32>
    %cst_25 = arith.constant 2.000000e+00 : f32
    %57 = vector.broadcast %cst_25 : f32 to vector<2x16xf32>
    %58 = arith.mulf %57, %56 : vector<2x16xf32>
    %cst_26 = arith.constant 1.000000e+00 : f32
    %59 = vector.broadcast %cst_26 : f32 to vector<2x16xf32>
    %60 = arith.subf %58, %59 : vector<2x16xf32>
    %61 = vector.extract_strided_slice %53 {offsets = [0, 48], sizes = [2, 16], strides = [1, 1]} : vector<2x64xf32> to vector<2x16xf32>
    %62 = arith.mulf %55, %43 : vector<2x16xf32>
    %63 = arith.mulf %54, %60 : vector<2x16xf32>
    %64 = arith.addf %62, %63 : vector<2x16xf32>
    %65 = math.tanh %64 : vector<2x16xf32>
    %66 = arith.mulf %61, %65 : vector<2x16xf32>
    %c0_27 = arith.constant 0 : index
    %c0_28 = arith.constant 0 : index
    %67 = vector.load %arg6[%c0_27, %c0_28] : memref<24x16xf32, #tpu.memory_space<vmem>>, vector<2x16xf32>
    tpu.vector_store %arg6[%c0_27, %c0_28], %66 {strides = array<i32>} : memref<24x16xf32, #tpu.memory_space<vmem>>, vector<2x16xf32>,
    %68 = vector.extract_strided_slice %12 {offsets = [2, 0], sizes = [2, 64], strides = [1, 1]} : vector<24x64xf32> to vector<2x64xf32>
    %cst_29 = arith.constant dense<0.000000e+00> : vector<2x64xf32>
    %69 = tpu.matmul %66, %41, %cst_29 {dimension_numbers = #tpu.dot_dimension_numbers<[1], [0], [0], [1], [0, 0, 1, 1], [], []>} : vector<2x16xf32>, vector<16x64xf32>, vector<2x64xf32> -> vector<2x64xf32>
    %70 = arith.addf %68, %69 : vector<2x64xf32>
    %71 = vector.broadcast %31 : vector<1x64xf32> to vector<2x64xf32>
    %72 = arith.mulf %70, %71 : vector<2x64xf32>
    %73 = arith.negf %72 : vector<2x64xf32>
    %74 = math.exp %73 : vector<2x64xf32>
    %cst_30 = arith.constant 1.000000e+00 : f32
    %75 = vector.broadcast %cst_30 : f32 to vector<2x64xf32>
    %76 = arith.addf %75, %74 : vector<2x64xf32>
    %77 = arith.divf %75, %76 : vector<2x64xf32>
    %78 = vector.extract_strided_slice %77 {offsets = [0, 0], sizes = [2, 16], strides = [1, 1]} : vector<2x64xf32> to vector<2x16xf32>
    %79 = vector.extract_strided_slice %77 {offsets = [0, 16], sizes = [2, 16], strides = [1, 1]} : vector<2x64xf32> to vector<2x16xf32>
    %80 = vector.extract_strided_slice %77 {offsets = [0, 32], sizes = [2, 16], strides = [1, 1]} : vector<2x64xf32> to vector<2x16xf32>
    %cst_31 = arith.constant 2.000000e+00 : f32
    %81 = vector.broadcast %cst_31 : f32 to vector<2x16xf32>
    %82 = arith.mulf %81, %80 : vector<2x16xf32>
    %cst_32 = arith.constant 1.000000e+00 : f32
    %83 = vector.broadcast %cst_32 : f32 to vector<2x16xf32>
    %84 = arith.subf %82, %83 : vector<2x16xf32>
    %85 = vector.extract_strided_slice %77 {offsets = [0, 48], sizes = [2, 16], strides = [1, 1]} : vector<2x64xf32> to vector<2x16xf32>
    %86 = arith.mulf %79, %64 : vector<2x16xf32>
    %87 = arith.mulf %78, %84 : vector<2x16xf32>
    %88 = arith.addf %86, %87 : vector<2x16xf32>
    %89 = math.tanh %88 : vector<2x16xf32>
    %90 = arith.mulf %85, %89 : vector<2x16xf32>
    %c2 = arith.constant 2 : index
    %c0_33 = arith.constant 0 : index
    %91 = vector.load %arg6[%c2, %c0_33] : memref<24x16xf32, #tpu.memory_space<vmem>>, vector<2x16xf32>
    tpu.vector_store %arg6[%c2, %c0_33], %90 {strides = array<i32>} : memref<24x16xf32, #tpu.memory_space<vmem>>, vector<2x16xf32>,
    %92 = vector.extract_strided_slice %12 {offsets = [4, 0], sizes = [2, 64], strides = [1, 1]} : vector<24x64xf32> to vector<2x64xf32>
    %cst_34 = arith.constant dense<0.000000e+00> : vector<2x64xf32>
    %93 = tpu.matmul %90, %41, %cst_34 {dimension_numbers = #tpu.dot_dimension_numbers<[1], [0], [0], [1], [0, 0, 1, 1], [], []>} : vector<2x16xf32>, vector<16x64xf32>, vector<2x64xf32> -> vector<2x64xf32>
    %94 = arith.addf %92, %93 : vector<2x64xf32>
    %95 = vector.broadcast %31 : vector<1x64xf32> to vector<2x64xf32>
    %96 = arith.mulf %94, %95 : vector<2x64xf32>
    %97 = arith.negf %96 : vector<2x64xf32>
    %98 = math.exp %97 : vector<2x64xf32>
    %cst_35 = arith.constant 1.000000e+00 : f32
    %99 = vector.broadcast %cst_35 : f32 to vector<2x64xf32>
    %100 = arith.addf %99, %98 : vector<2x64xf32>
    %101 = arith.divf %99, %100 : vector<2x64xf32>
    %102 = vector.extract_strided_slice %101 {offsets = [0, 0], sizes = [2, 16], strides = [1, 1]} : vector<2x64xf32> to vector<2x16xf32>
    %103 = vector.extract_strided_slice %101 {offsets = [0, 16], sizes = [2, 16], strides = [1, 1]} : vector<2x64xf32> to vector<2x16xf32>
    %104 = vector.extract_strided_slice %101 {offsets = [0, 32], sizes = [2, 16], strides = [1, 1]} : vector<2x64xf32> to vector<2x16xf32>
    %cst_36 = arith.constant 2.000000e+00 : f32
    %105 = vector.broadcast %cst_36 : f32 to vector<2x16xf32>
    %106 = arith.mulf %105, %104 : vector<2x16xf32>
    %cst_37 = arith.constant 1.000000e+00 : f32
    %107 = vector.broadcast %cst_37 : f32 to vector<2x16xf32>
    %108 = arith.subf %106, %107 : vector<2x16xf32>
    %109 = vector.extract_strided_slice %101 {offsets = [0, 48], sizes = [2, 16], strides = [1, 1]} : vector<2x64xf32> to vector<2x16xf32>
    %110 = arith.mulf %103, %88 : vector<2x16xf32>
    %111 = arith.mulf %102, %108 : vector<2x16xf32>
    %112 = arith.addf %110, %111 : vector<2x16xf32>
    %113 = math.tanh %112 : vector<2x16xf32>
    %114 = arith.mulf %109, %113 : vector<2x16xf32>
    %c4 = arith.constant 4 : index
    %c0_38 = arith.constant 0 : index
    %115 = vector.load %arg6[%c4, %c0_38] : memref<24x16xf32, #tpu.memory_space<vmem>>, vector<2x16xf32>
    tpu.vector_store %arg6[%c4, %c0_38], %114 {strides = array<i32>} : memref<24x16xf32, #tpu.memory_space<vmem>>, vector<2x16xf32>,
    %116 = vector.extract_strided_slice %12 {offsets = [6, 0], sizes = [2, 64], strides = [1, 1]} : vector<24x64xf32> to vector<2x64xf32>
    %cst_39 = arith.constant dense<0.000000e+00> : vector<2x64xf32>
    %117 = tpu.matmul %114, %41, %cst_39 {dimension_numbers = #tpu.dot_dimension_numbers<[1], [0], [0], [1], [0, 0, 1, 1], [], []>} : vector<2x16xf32>, vector<16x64xf32>, vector<2x64xf32> -> vector<2x64xf32>
    %118 = arith.addf %116, %117 : vector<2x64xf32>
    %119 = vector.broadcast %31 : vector<1x64xf32> to vector<2x64xf32>
    %120 = arith.mulf %118, %119 : vector<2x64xf32>
    %121 = arith.negf %120 : vector<2x64xf32>
    %122 = math.exp %121 : vector<2x64xf32>
    %cst_40 = arith.constant 1.000000e+00 : f32
    %123 = vector.broadcast %cst_40 : f32 to vector<2x64xf32>
    %124 = arith.addf %123, %122 : vector<2x64xf32>
    %125 = arith.divf %123, %124 : vector<2x64xf32>
    %126 = vector.extract_strided_slice %125 {offsets = [0, 0], sizes = [2, 16], strides = [1, 1]} : vector<2x64xf32> to vector<2x16xf32>
    %127 = vector.extract_strided_slice %125 {offsets = [0, 16], sizes = [2, 16], strides = [1, 1]} : vector<2x64xf32> to vector<2x16xf32>
    %128 = vector.extract_strided_slice %125 {offsets = [0, 32], sizes = [2, 16], strides = [1, 1]} : vector<2x64xf32> to vector<2x16xf32>
    %cst_41 = arith.constant 2.000000e+00 : f32
    %129 = vector.broadcast %cst_41 : f32 to vector<2x16xf32>
    %130 = arith.mulf %129, %128 : vector<2x16xf32>
    %cst_42 = arith.constant 1.000000e+00 : f32
    %131 = vector.broadcast %cst_42 : f32 to vector<2x16xf32>
    %132 = arith.subf %130, %131 : vector<2x16xf32>
    %133 = vector.extract_strided_slice %125 {offsets = [0, 48], sizes = [2, 16], strides = [1, 1]} : vector<2x64xf32> to vector<2x16xf32>
    %134 = arith.mulf %127, %112 : vector<2x16xf32>
    %135 = arith.mulf %126, %132 : vector<2x16xf32>
    %136 = arith.addf %134, %135 : vector<2x16xf32>
    %137 = math.tanh %136 : vector<2x16xf32>
    %138 = arith.mulf %133, %137 : vector<2x16xf32>
    %c6 = arith.constant 6 : index
    %c0_43 = arith.constant 0 : index
    %139 = vector.load %arg6[%c6, %c0_43] : memref<24x16xf32, #tpu.memory_space<vmem>>, vector<2x16xf32>
    tpu.vector_store %arg6[%c6, %c0_43], %138 {strides = array<i32>} : memref<24x16xf32, #tpu.memory_space<vmem>>, vector<2x16xf32>,
    %140 = vector.extract_strided_slice %12 {offsets = [8, 0], sizes = [2, 64], strides = [1, 1]} : vector<24x64xf32> to vector<2x64xf32>
    %cst_44 = arith.constant dense<0.000000e+00> : vector<2x64xf32>
    %141 = tpu.matmul %138, %41, %cst_44 {dimension_numbers = #tpu.dot_dimension_numbers<[1], [0], [0], [1], [0, 0, 1, 1], [], []>} : vector<2x16xf32>, vector<16x64xf32>, vector<2x64xf32> -> vector<2x64xf32>
    %142 = arith.addf %140, %141 : vector<2x64xf32>
    %143 = vector.broadcast %31 : vector<1x64xf32> to vector<2x64xf32>
    %144 = arith.mulf %142, %143 : vector<2x64xf32>
    %145 = arith.negf %144 : vector<2x64xf32>
    %146 = math.exp %145 : vector<2x64xf32>
    %cst_45 = arith.constant 1.000000e+00 : f32
    %147 = vector.broadcast %cst_45 : f32 to vector<2x64xf32>
    %148 = arith.addf %147, %146 : vector<2x64xf32>
    %149 = arith.divf %147, %148 : vector<2x64xf32>
    %150 = vector.extract_strided_slice %149 {offsets = [0, 0], sizes = [2, 16], strides = [1, 1]} : vector<2x64xf32> to vector<2x16xf32>
    %151 = vector.extract_strided_slice %149 {offsets = [0, 16], sizes = [2, 16], strides = [1, 1]} : vector<2x64xf32> to vector<2x16xf32>
    %152 = vector.extract_strided_slice %149 {offsets = [0, 32], sizes = [2, 16], strides = [1, 1]} : vector<2x64xf32> to vector<2x16xf32>
    %cst_46 = arith.constant 2.000000e+00 : f32
    %153 = vector.broadcast %cst_46 : f32 to vector<2x16xf32>
    %154 = arith.mulf %153, %152 : vector<2x16xf32>
    %cst_47 = arith.constant 1.000000e+00 : f32
    %155 = vector.broadcast %cst_47 : f32 to vector<2x16xf32>
    %156 = arith.subf %154, %155 : vector<2x16xf32>
    %157 = vector.extract_strided_slice %149 {offsets = [0, 48], sizes = [2, 16], strides = [1, 1]} : vector<2x64xf32> to vector<2x16xf32>
    %158 = arith.mulf %151, %136 : vector<2x16xf32>
    %159 = arith.mulf %150, %156 : vector<2x16xf32>
    %160 = arith.addf %158, %159 : vector<2x16xf32>
    %161 = math.tanh %160 : vector<2x16xf32>
    %162 = arith.mulf %157, %161 : vector<2x16xf32>
    %c8_48 = arith.constant 8 : index
    %c0_49 = arith.constant 0 : index
    %163 = vector.load %arg6[%c8_48, %c0_49] : memref<24x16xf32, #tpu.memory_space<vmem>>, vector<2x16xf32>
    tpu.vector_store %arg6[%c8_48, %c0_49], %162 {strides = array<i32>} : memref<24x16xf32, #tpu.memory_space<vmem>>, vector<2x16xf32>,
    %164 = vector.extract_strided_slice %12 {offsets = [10, 0], sizes = [2, 64], strides = [1, 1]} : vector<24x64xf32> to vector<2x64xf32>
    %cst_50 = arith.constant dense<0.000000e+00> : vector<2x64xf32>
    %165 = tpu.matmul %162, %41, %cst_50 {dimension_numbers = #tpu.dot_dimension_numbers<[1], [0], [0], [1], [0, 0, 1, 1], [], []>} : vector<2x16xf32>, vector<16x64xf32>, vector<2x64xf32> -> vector<2x64xf32>
    %166 = arith.addf %164, %165 : vector<2x64xf32>
    %167 = vector.broadcast %31 : vector<1x64xf32> to vector<2x64xf32>
    %168 = arith.mulf %166, %167 : vector<2x64xf32>
    %169 = arith.negf %168 : vector<2x64xf32>
    %170 = math.exp %169 : vector<2x64xf32>
    %cst_51 = arith.constant 1.000000e+00 : f32
    %171 = vector.broadcast %cst_51 : f32 to vector<2x64xf32>
    %172 = arith.addf %171, %170 : vector<2x64xf32>
    %173 = arith.divf %171, %172 : vector<2x64xf32>
    %174 = vector.extract_strided_slice %173 {offsets = [0, 0], sizes = [2, 16], strides = [1, 1]} : vector<2x64xf32> to vector<2x16xf32>
    %175 = vector.extract_strided_slice %173 {offsets = [0, 16], sizes = [2, 16], strides = [1, 1]} : vector<2x64xf32> to vector<2x16xf32>
    %176 = vector.extract_strided_slice %173 {offsets = [0, 32], sizes = [2, 16], strides = [1, 1]} : vector<2x64xf32> to vector<2x16xf32>
    %cst_52 = arith.constant 2.000000e+00 : f32
    %177 = vector.broadcast %cst_52 : f32 to vector<2x16xf32>
    %178 = arith.mulf %177, %176 : vector<2x16xf32>
    %cst_53 = arith.constant 1.000000e+00 : f32
    %179 = vector.broadcast %cst_53 : f32 to vector<2x16xf32>
    %180 = arith.subf %178, %179 : vector<2x16xf32>
    %181 = vector.extract_strided_slice %173 {offsets = [0, 48], sizes = [2, 16], strides = [1, 1]} : vector<2x64xf32> to vector<2x16xf32>
    %182 = arith.mulf %175, %160 : vector<2x16xf32>
    %183 = arith.mulf %174, %180 : vector<2x16xf32>
    %184 = arith.addf %182, %183 : vector<2x16xf32>
    %185 = math.tanh %184 : vector<2x16xf32>
    %186 = arith.mulf %181, %185 : vector<2x16xf32>
    %c10 = arith.constant 10 : index
    %c0_54 = arith.constant 0 : index
    %187 = vector.load %arg6[%c10, %c0_54] : memref<24x16xf32, #tpu.memory_space<vmem>>, vector<2x16xf32>
    tpu.vector_store %arg6[%c10, %c0_54], %186 {strides = array<i32>} : memref<24x16xf32, #tpu.memory_space<vmem>>, vector<2x16xf32>,
    %188 = vector.extract_strided_slice %12 {offsets = [12, 0], sizes = [2, 64], strides = [1, 1]} : vector<24x64xf32> to vector<2x64xf32>
    %cst_55 = arith.constant dense<0.000000e+00> : vector<2x64xf32>
    %189 = tpu.matmul %186, %41, %cst_55 {dimension_numbers = #tpu.dot_dimension_numbers<[1], [0], [0], [1], [0, 0, 1, 1], [], []>} : vector<2x16xf32>, vector<16x64xf32>, vector<2x64xf32> -> vector<2x64xf32>
    %190 = arith.addf %188, %189 : vector<2x64xf32>
    %191 = vector.broadcast %31 : vector<1x64xf32> to vector<2x64xf32>
    %192 = arith.mulf %190, %191 : vector<2x64xf32>
    %193 = arith.negf %192 : vector<2x64xf32>
    %194 = math.exp %193 : vector<2x64xf32>
    %cst_56 = arith.constant 1.000000e+00 : f32
    %195 = vector.broadcast %cst_56 : f32 to vector<2x64xf32>
    %196 = arith.addf %195, %194 : vector<2x64xf32>
    %197 = arith.divf %195, %196 : vector<2x64xf32>
    %198 = vector.extract_strided_slice %197 {offsets = [0, 0], sizes = [2, 16], strides = [1, 1]} : vector<2x64xf32> to vector<2x16xf32>
    %199 = vector.extract_strided_slice %197 {offsets = [0, 16], sizes = [2, 16], strides = [1, 1]} : vector<2x64xf32> to vector<2x16xf32>
    %200 = vector.extract_strided_slice %197 {offsets = [0, 32], sizes = [2, 16], strides = [1, 1]} : vector<2x64xf32> to vector<2x16xf32>
    %cst_57 = arith.constant 2.000000e+00 : f32
    %201 = vector.broadcast %cst_57 : f32 to vector<2x16xf32>
    %202 = arith.mulf %201, %200 : vector<2x16xf32>
    %cst_58 = arith.constant 1.000000e+00 : f32
    %203 = vector.broadcast %cst_58 : f32 to vector<2x16xf32>
    %204 = arith.subf %202, %203 : vector<2x16xf32>
    %205 = vector.extract_strided_slice %197 {offsets = [0, 48], sizes = [2, 16], strides = [1, 1]} : vector<2x64xf32> to vector<2x16xf32>
    %206 = arith.mulf %199, %184 : vector<2x16xf32>
    %207 = arith.mulf %198, %204 : vector<2x16xf32>
    %208 = arith.addf %206, %207 : vector<2x16xf32>
    %209 = math.tanh %208 : vector<2x16xf32>
    %210 = arith.mulf %205, %209 : vector<2x16xf32>
    %c12 = arith.constant 12 : index
    %c0_59 = arith.constant 0 : index
    %211 = vector.load %arg6[%c12, %c0_59] : memref<24x16xf32, #tpu.memory_space<vmem>>, vector<2x16xf32>
    tpu.vector_store %arg6[%c12, %c0_59], %210 {strides = array<i32>} : memref<24x16xf32, #tpu.memory_space<vmem>>, vector<2x16xf32>,
    %212 = vector.extract_strided_slice %12 {offsets = [14, 0], sizes = [2, 64], strides = [1, 1]} : vector<24x64xf32> to vector<2x64xf32>
    %cst_60 = arith.constant dense<0.000000e+00> : vector<2x64xf32>
    %213 = tpu.matmul %210, %41, %cst_60 {dimension_numbers = #tpu.dot_dimension_numbers<[1], [0], [0], [1], [0, 0, 1, 1], [], []>} : vector<2x16xf32>, vector<16x64xf32>, vector<2x64xf32> -> vector<2x64xf32>
    %214 = arith.addf %212, %213 : vector<2x64xf32>
    %215 = vector.broadcast %31 : vector<1x64xf32> to vector<2x64xf32>
    %216 = arith.mulf %214, %215 : vector<2x64xf32>
    %217 = arith.negf %216 : vector<2x64xf32>
    %218 = math.exp %217 : vector<2x64xf32>
    %cst_61 = arith.constant 1.000000e+00 : f32
    %219 = vector.broadcast %cst_61 : f32 to vector<2x64xf32>
    %220 = arith.addf %219, %218 : vector<2x64xf32>
    %221 = arith.divf %219, %220 : vector<2x64xf32>
    %222 = vector.extract_strided_slice %221 {offsets = [0, 0], sizes = [2, 16], strides = [1, 1]} : vector<2x64xf32> to vector<2x16xf32>
    %223 = vector.extract_strided_slice %221 {offsets = [0, 16], sizes = [2, 16], strides = [1, 1]} : vector<2x64xf32> to vector<2x16xf32>
    %224 = vector.extract_strided_slice %221 {offsets = [0, 32], sizes = [2, 16], strides = [1, 1]} : vector<2x64xf32> to vector<2x16xf32>
    %cst_62 = arith.constant 2.000000e+00 : f32
    %225 = vector.broadcast %cst_62 : f32 to vector<2x16xf32>
    %226 = arith.mulf %225, %224 : vector<2x16xf32>
    %cst_63 = arith.constant 1.000000e+00 : f32
    %227 = vector.broadcast %cst_63 : f32 to vector<2x16xf32>
    %228 = arith.subf %226, %227 : vector<2x16xf32>
    %229 = vector.extract_strided_slice %221 {offsets = [0, 48], sizes = [2, 16], strides = [1, 1]} : vector<2x64xf32> to vector<2x16xf32>
    %230 = arith.mulf %223, %208 : vector<2x16xf32>
    %231 = arith.mulf %222, %228 : vector<2x16xf32>
    %232 = arith.addf %230, %231 : vector<2x16xf32>
    %233 = math.tanh %232 : vector<2x16xf32>
    %234 = arith.mulf %229, %233 : vector<2x16xf32>
    %c14 = arith.constant 14 : index
    %c0_64 = arith.constant 0 : index
    %235 = vector.load %arg6[%c14, %c0_64] : memref<24x16xf32, #tpu.memory_space<vmem>>, vector<2x16xf32>
    tpu.vector_store %arg6[%c14, %c0_64], %234 {strides = array<i32>} : memref<24x16xf32, #tpu.memory_space<vmem>>, vector<2x16xf32>,
    %236 = vector.extract_strided_slice %12 {offsets = [16, 0], sizes = [2, 64], strides = [1, 1]} : vector<24x64xf32> to vector<2x64xf32>
    %cst_65 = arith.constant dense<0.000000e+00> : vector<2x64xf32>
    %237 = tpu.matmul %234, %41, %cst_65 {dimension_numbers = #tpu.dot_dimension_numbers<[1], [0], [0], [1], [0, 0, 1, 1], [], []>} : vector<2x16xf32>, vector<16x64xf32>, vector<2x64xf32> -> vector<2x64xf32>
    %238 = arith.addf %236, %237 : vector<2x64xf32>
    %239 = vector.broadcast %31 : vector<1x64xf32> to vector<2x64xf32>
    %240 = arith.mulf %238, %239 : vector<2x64xf32>
    %241 = arith.negf %240 : vector<2x64xf32>
    %242 = math.exp %241 : vector<2x64xf32>
    %cst_66 = arith.constant 1.000000e+00 : f32
    %243 = vector.broadcast %cst_66 : f32 to vector<2x64xf32>
    %244 = arith.addf %243, %242 : vector<2x64xf32>
    %245 = arith.divf %243, %244 : vector<2x64xf32>
    %246 = vector.extract_strided_slice %245 {offsets = [0, 0], sizes = [2, 16], strides = [1, 1]} : vector<2x64xf32> to vector<2x16xf32>
    %247 = vector.extract_strided_slice %245 {offsets = [0, 16], sizes = [2, 16], strides = [1, 1]} : vector<2x64xf32> to vector<2x16xf32>
    %248 = vector.extract_strided_slice %245 {offsets = [0, 32], sizes = [2, 16], strides = [1, 1]} : vector<2x64xf32> to vector<2x16xf32>
    %cst_67 = arith.constant 2.000000e+00 : f32
    %249 = vector.broadcast %cst_67 : f32 to vector<2x16xf32>
    %250 = arith.mulf %249, %248 : vector<2x16xf32>
    %cst_68 = arith.constant 1.000000e+00 : f32
    %251 = vector.broadcast %cst_68 : f32 to vector<2x16xf32>
    %252 = arith.subf %250, %251 : vector<2x16xf32>
    %253 = vector.extract_strided_slice %245 {offsets = [0, 48], sizes = [2, 16], strides = [1, 1]} : vector<2x64xf32> to vector<2x16xf32>
    %254 = arith.mulf %247, %232 : vector<2x16xf32>
    %255 = arith.mulf %246, %252 : vector<2x16xf32>
    %256 = arith.addf %254, %255 : vector<2x16xf32>
    %257 = math.tanh %256 : vector<2x16xf32>
    %258 = arith.mulf %253, %257 : vector<2x16xf32>
    %c16 = arith.constant 16 : index
    %c0_69 = arith.constant 0 : index
    %259 = vector.load %arg6[%c16, %c0_69] : memref<24x16xf32, #tpu.memory_space<vmem>>, vector<2x16xf32>
    tpu.vector_store %arg6[%c16, %c0_69], %258 {strides = array<i32>} : memref<24x16xf32, #tpu.memory_space<vmem>>, vector<2x16xf32>,
    %260 = vector.extract_strided_slice %12 {offsets = [18, 0], sizes = [2, 64], strides = [1, 1]} : vector<24x64xf32> to vector<2x64xf32>
    %cst_70 = arith.constant dense<0.000000e+00> : vector<2x64xf32>
    %261 = tpu.matmul %258, %41, %cst_70 {dimension_numbers = #tpu.dot_dimension_numbers<[1], [0], [0], [1], [0, 0, 1, 1], [], []>} : vector<2x16xf32>, vector<16x64xf32>, vector<2x64xf32> -> vector<2x64xf32>
    %262 = arith.addf %260, %261 : vector<2x64xf32>
    %263 = vector.broadcast %31 : vector<1x64xf32> to vector<2x64xf32>
    %264 = arith.mulf %262, %263 : vector<2x64xf32>
    %265 = arith.negf %264 : vector<2x64xf32>
    %266 = math.exp %265 : vector<2x64xf32>
    %cst_71 = arith.constant 1.000000e+00 : f32
    %267 = vector.broadcast %cst_71 : f32 to vector<2x64xf32>
    %268 = arith.addf %267, %266 : vector<2x64xf32>
    %269 = arith.divf %267, %268 : vector<2x64xf32>
    %270 = vector.extract_strided_slice %269 {offsets = [0, 0], sizes = [2, 16], strides = [1, 1]} : vector<2x64xf32> to vector<2x16xf32>
    %271 = vector.extract_strided_slice %269 {offsets = [0, 16], sizes = [2, 16], strides = [1, 1]} : vector<2x64xf32> to vector<2x16xf32>
    %272 = vector.extract_strided_slice %269 {offsets = [0, 32], sizes = [2, 16], strides = [1, 1]} : vector<2x64xf32> to vector<2x16xf32>
    %cst_72 = arith.constant 2.000000e+00 : f32
    %273 = vector.broadcast %cst_72 : f32 to vector<2x16xf32>
    %274 = arith.mulf %273, %272 : vector<2x16xf32>
    %cst_73 = arith.constant 1.000000e+00 : f32
    %275 = vector.broadcast %cst_73 : f32 to vector<2x16xf32>
    %276 = arith.subf %274, %275 : vector<2x16xf32>
    %277 = vector.extract_strided_slice %269 {offsets = [0, 48], sizes = [2, 16], strides = [1, 1]} : vector<2x64xf32> to vector<2x16xf32>
    %278 = arith.mulf %271, %256 : vector<2x16xf32>
    %279 = arith.mulf %270, %276 : vector<2x16xf32>
    %280 = arith.addf %278, %279 : vector<2x16xf32>
    %281 = math.tanh %280 : vector<2x16xf32>
    %282 = arith.mulf %277, %281 : vector<2x16xf32>
    %c18 = arith.constant 18 : index
    %c0_74 = arith.constant 0 : index
    %283 = vector.load %arg6[%c18, %c0_74] : memref<24x16xf32, #tpu.memory_space<vmem>>, vector<2x16xf32>
    tpu.vector_store %arg6[%c18, %c0_74], %282 {strides = array<i32>} : memref<24x16xf32, #tpu.memory_space<vmem>>, vector<2x16xf32>,
    %284 = vector.extract_strided_slice %12 {offsets = [20, 0], sizes = [2, 64], strides = [1, 1]} : vector<24x64xf32> to vector<2x64xf32>
    %cst_75 = arith.constant dense<0.000000e+00> : vector<2x64xf32>
    %285 = tpu.matmul %282, %41, %cst_75 {dimension_numbers = #tpu.dot_dimension_numbers<[1], [0], [0], [1], [0, 0, 1, 1], [], []>} : vector<2x16xf32>, vector<16x64xf32>, vector<2x64xf32> -> vector<2x64xf32>
    %286 = arith.addf %284, %285 : vector<2x64xf32>
    %287 = vector.broadcast %31 : vector<1x64xf32> to vector<2x64xf32>
    %288 = arith.mulf %286, %287 : vector<2x64xf32>
    %289 = arith.negf %288 : vector<2x64xf32>
    %290 = math.exp %289 : vector<2x64xf32>
    %cst_76 = arith.constant 1.000000e+00 : f32
    %291 = vector.broadcast %cst_76 : f32 to vector<2x64xf32>
    %292 = arith.addf %291, %290 : vector<2x64xf32>
    %293 = arith.divf %291, %292 : vector<2x64xf32>
    %294 = vector.extract_strided_slice %293 {offsets = [0, 0], sizes = [2, 16], strides = [1, 1]} : vector<2x64xf32> to vector<2x16xf32>
    %295 = vector.extract_strided_slice %293 {offsets = [0, 16], sizes = [2, 16], strides = [1, 1]} : vector<2x64xf32> to vector<2x16xf32>
    %296 = vector.extract_strided_slice %293 {offsets = [0, 32], sizes = [2, 16], strides = [1, 1]} : vector<2x64xf32> to vector<2x16xf32>
    %cst_77 = arith.constant 2.000000e+00 : f32
    %297 = vector.broadcast %cst_77 : f32 to vector<2x16xf32>
    %298 = arith.mulf %297, %296 : vector<2x16xf32>
    %cst_78 = arith.constant 1.000000e+00 : f32
    %299 = vector.broadcast %cst_78 : f32 to vector<2x16xf32>
    %300 = arith.subf %298, %299 : vector<2x16xf32>
    %301 = vector.extract_strided_slice %293 {offsets = [0, 48], sizes = [2, 16], strides = [1, 1]} : vector<2x64xf32> to vector<2x16xf32>
    %302 = arith.mulf %295, %280 : vector<2x16xf32>
    %303 = arith.mulf %294, %300 : vector<2x16xf32>
    %304 = arith.addf %302, %303 : vector<2x16xf32>
    %305 = math.tanh %304 : vector<2x16xf32>
    %306 = arith.mulf %301, %305 : vector<2x16xf32>
    %c20 = arith.constant 20 : index
    %c0_79 = arith.constant 0 : index
    %307 = vector.load %arg6[%c20, %c0_79] : memref<24x16xf32, #tpu.memory_space<vmem>>, vector<2x16xf32>
    tpu.vector_store %arg6[%c20, %c0_79], %306 {strides = array<i32>} : memref<24x16xf32, #tpu.memory_space<vmem>>, vector<2x16xf32>,
    %308 = vector.extract_strided_slice %12 {offsets = [22, 0], sizes = [2, 64], strides = [1, 1]} : vector<24x64xf32> to vector<2x64xf32>
    %cst_80 = arith.constant dense<0.000000e+00> : vector<2x64xf32>
    %309 = tpu.matmul %306, %41, %cst_80 {dimension_numbers = #tpu.dot_dimension_numbers<[1], [0], [0], [1], [0, 0, 1, 1], [], []>} : vector<2x16xf32>, vector<16x64xf32>, vector<2x64xf32> -> vector<2x64xf32>
    %310 = arith.addf %308, %309 : vector<2x64xf32>
    %311 = vector.broadcast %31 : vector<1x64xf32> to vector<2x64xf32>
    %312 = arith.mulf %310, %311 : vector<2x64xf32>
    %313 = arith.negf %312 : vector<2x64xf32>
    %314 = math.exp %313 : vector<2x64xf32>
    %cst_81 = arith.constant 1.000000e+00 : f32
    %315 = vector.broadcast %cst_81 : f32 to vector<2x64xf32>
    %316 = arith.addf %315, %314 : vector<2x64xf32>
    %317 = arith.divf %315, %316 : vector<2x64xf32>
    %318 = vector.extract_strided_slice %317 {offsets = [0, 0], sizes = [2, 16], strides = [1, 1]} : vector<2x64xf32> to vector<2x16xf32>
    %319 = vector.extract_strided_slice %317 {offsets = [0, 16], sizes = [2, 16], strides = [1, 1]} : vector<2x64xf32> to vector<2x16xf32>
    %320 = vector.extract_strided_slice %317 {offsets = [0, 32], sizes = [2, 16], strides = [1, 1]} : vector<2x64xf32> to vector<2x16xf32>
    %cst_82 = arith.constant 2.000000e+00 : f32
    %321 = vector.broadcast %cst_82 : f32 to vector<2x16xf32>
    %322 = arith.mulf %321, %320 : vector<2x16xf32>
    %cst_83 = arith.constant 1.000000e+00 : f32
    %323 = vector.broadcast %cst_83 : f32 to vector<2x16xf32>
    %324 = arith.subf %322, %323 : vector<2x16xf32>
    %325 = vector.extract_strided_slice %317 {offsets = [0, 48], sizes = [2, 16], strides = [1, 1]} : vector<2x64xf32> to vector<2x16xf32>
    %326 = arith.mulf %319, %304 : vector<2x16xf32>
    %327 = arith.mulf %318, %324 : vector<2x16xf32>
    %328 = arith.addf %326, %327 : vector<2x16xf32>
    %329 = math.tanh %328 : vector<2x16xf32>
    %330 = arith.mulf %325, %329 : vector<2x16xf32>
    %c22 = arith.constant 22 : index
    %c0_84 = arith.constant 0 : index
    %331 = vector.load %arg6[%c22, %c0_84] : memref<24x16xf32, #tpu.memory_space<vmem>>, vector<2x16xf32>
    tpu.vector_store %arg6[%c22, %c0_84], %330 {strides = array<i32>} : memref<24x16xf32, #tpu.memory_space<vmem>>, vector<2x16xf32>,
    %c0_85 = arith.constant 0 : index
    %c0_86 = arith.constant 0 : index
    %332 = vector.load %arg6[%c0_85, %c0_86] : memref<24x16xf32, #tpu.memory_space<vmem>>, vector<24x16xf32>
    %c32 = arith.constant 32 : index
    %c0_87 = arith.constant 0 : index
    %333 = vector.load %arg3[%c32, %c0_87] : memref<336x128xf32, #tpu.memory_space<vmem>>, vector<16x8xf32>
    %cst_88 = arith.constant dense<0.000000e+00> : vector<24x8xf32>
    %334 = tpu.matmul %332, %333, %cst_88 {dimension_numbers = #tpu.dot_dimension_numbers<[1], [0], [0], [1], [0, 0, 1, 1], [], []>} : vector<24x16xf32>, vector<16x8xf32>, vector<24x8xf32> -> vector<24x8xf32>
    %c88 = arith.constant 88 : index
    %c0_89 = arith.constant 0 : index
    %335 = vector.load %arg3[%c88, %c0_89] : memref<336x128xf32, #tpu.memory_space<vmem>>, vector<16x8xf32>
    %cst_90 = arith.constant dense<0.000000e+00> : vector<24x8xf32>
    %336 = tpu.matmul %332, %335, %cst_90 {dimension_numbers = #tpu.dot_dimension_numbers<[1], [0], [0], [1], [0, 0, 1, 1], [], []>} : vector<24x16xf32>, vector<16x8xf32>, vector<24x8xf32> -> vector<24x8xf32>
    %337 = tpu.concatenate %7, %7, %7 in 1 : vector<2x2xf32>, vector<2x2xf32>, vector<2x2xf32> -> vector<2x6xf32>
    %338 = tpu.concatenate %7, %7, %7 in 0 : vector<2x2xf32>, vector<2x2xf32>, vector<2x2xf32> -> vector<6x2xf32>
    %c48 = arith.constant 48 : index
    %c0_91 = arith.constant 0 : index
    %339 = vector.load %arg3[%c48, %c0_91] : memref<336x128xf32, #tpu.memory_space<vmem>>, vector<16x8xf32>
    %c64 = arith.constant 64 : index
    %c0_92 = arith.constant 0 : index
    %340 = vector.load %arg3[%c64, %c0_92] : memref<336x128xf32, #tpu.memory_space<vmem>>, vector<1x8xf32>
    %c72 = arith.constant 72 : index
    %c0_93 = arith.constant 0 : index
    %341 = vector.load %arg3[%c72, %c0_93] : memref<336x128xf32, #tpu.memory_space<vmem>>, vector<1x8xf32>
    %c80 = arith.constant 80 : index
    %c0_94 = arith.constant 0 : index
    %342 = vector.load %arg3[%c80, %c0_94] : memref<336x128xf32, #tpu.memory_space<vmem>>, vector<1x1xf32>
    %c144 = arith.constant 144 : index
    %c0_95 = arith.constant 0 : index
    %343 = vector.load %arg3[%c144, %c0_95] : memref<336x128xf32, #tpu.memory_space<vmem>>, vector<32x64xf32>
    %cst_96 = arith.constant 0.000000e+00 : f32
    %344 = vector.broadcast %cst_96 : f32 to vector<2x16xf32>
    %cst_97 = arith.constant 0.000000e+00 : f32
    %345 = vector.broadcast %cst_97 : f32 to vector<2x16xf32>
    %346 = vector.extract_strided_slice %332 {offsets = [0, 0], sizes = [6, 16], strides = [1, 1]} : vector<24x16xf32> to vector<6x16xf32>
    %347 = vector.extract_strided_slice %334 {offsets = [0, 0], sizes = [6, 8], strides = [1, 1]} : vector<24x8xf32> to vector<6x8xf32>
    %cst_98 = arith.constant dense<0.000000e+00> : vector<2x8xf32>
    %348 = tpu.matmul %344, %339, %cst_98 {dimension_numbers = #tpu.dot_dimension_numbers<[1], [0], [0], [1], [0, 0, 1, 1], [], []>} : vector<2x16xf32>, vector<16x8xf32>, vector<2x8xf32> -> vector<2x8xf32>
    %349 = vector.broadcast %340 : vector<1x8xf32> to vector<2x8xf32>
    %350 = arith.addf %348, %349 : vector<2x8xf32>
    %cst_99 = arith.constant dense<0.000000e+00> : vector<6x8xf32>
    %351 = tpu.matmul %338, %350, %cst_99 {dimension_numbers = #tpu.dot_dimension_numbers<[1], [0], [0], [1], [0, 0, 1, 1], [], []>} : vector<6x2xf32>, vector<2x8xf32>, vector<6x8xf32> -> vector<6x8xf32>
    %352 = arith.addf %347, %351 : vector<6x8xf32>
    %353 = math.tanh %352 : vector<6x8xf32>
    %354 = vector.broadcast %341 : vector<1x8xf32> to vector<6x8xf32>
    %355 = arith.mulf %353, %354 : vector<6x8xf32>
    %cst_100 = arith.constant dense<0.000000e+00> : vector<6xf32>
    %356 = vector.multi_reduction <add>, %355, %cst_100 [1] : vector<6x8xf32> to vector<6xf32>
    %357 = vector.shape_cast %356 : vector<6xf32> to vector<6x1xf32>
    %358 = vector.broadcast %342 : vector<1x1xf32> to vector<6x1xf32>
    %359 = arith.addf %357, %358 : vector<6x1xf32>
    %cst_101 = arith.constant 0.000000e+00 : f32
    %360 = vector.broadcast %cst_101 : f32 to vector<6x1xf32>
    %361 = arith.maximumf %359, %360 : vector<6x1xf32>
    %cst_102 = arith.constant dense<0xFF800000> : vector<1xf32>
    %362 = vector.multi_reduction <maximumf>, %361, %cst_102 [0] : vector<6x1xf32> to vector<1xf32>
    %363 = vector.shape_cast %362 : vector<1xf32> to vector<1x1xf32>
    %364 = vector.broadcast %363 : vector<1x1xf32> to vector<6x1xf32>
    %365 = arith.subf %361, %364 : vector<6x1xf32>
    %366 = math.exp %365 : vector<6x1xf32>
    %367 = vector.broadcast %366 : vector<6x1xf32> to vector<6x16xf32>
    %368 = arith.mulf %367, %346 : vector<6x16xf32>
    %369 = tpu.concatenate %368, %366 in 1 : vector<6x16xf32>, vector<6x1xf32> -> vector<6x17xf32>
    %cst_103 = arith.constant dense<0.000000e+00> : vector<2x17xf32>
    %370 = tpu.matmul %337, %369, %cst_103 {dimension_numbers = #tpu.dot_dimension_numbers<[1], [0], [0], [1], [0, 0, 1, 1], [], []>} : vector<2x6xf32>, vector<6x17xf32>, vector<2x17xf32> -> vector<2x17xf32>
    %371 = vector.extract_strided_slice %370 {offsets = [0, 0], sizes = [2, 16], strides = [1, 1]} : vector<2x17xf32> to vector<2x16xf32>
    %372 = vector.extract_strided_slice %370 {offsets = [0, 16], sizes = [2, 1], strides = [1, 1]} : vector<2x17xf32> to vector<2x1xf32>
    %373 = vector.broadcast %372 : vector<2x1xf32> to vector<2x16xf32>
    %374 = arith.divf %371, %373 : vector<2x16xf32>
    %375 = tpu.concatenate %374, %344 in 1 : vector<2x16xf32>, vector<2x16xf32> -> vector<2x32xf32>
    %cst_104 = arith.constant dense<0.000000e+00> : vector<2x64xf32>
    %376 = tpu.matmul %375, %343, %cst_104 {dimension_numbers = #tpu.dot_dimension_numbers<[1], [0], [0], [1], [0, 0, 1, 1], [], []>} : vector<2x32xf32>, vector<32x64xf32>, vector<2x64xf32> -> vector<2x64xf32>
    %377 = vector.extract_strided_slice %17 {offsets = [0, 0], sizes = [2, 64], strides = [1, 1]} : vector<8x64xf32> to vector<2x64xf32>
    %378 = arith.addf %376, %377 : vector<2x64xf32>
    %379 = vector.broadcast %40 : vector<1x64xf32> to vector<2x64xf32>
    %380 = arith.mulf %378, %379 : vector<2x64xf32>
    %381 = arith.negf %380 : vector<2x64xf32>
    %382 = math.exp %381 : vector<2x64xf32>
    %cst_105 = arith.constant 1.000000e+00 : f32
    %383 = vector.broadcast %cst_105 : f32 to vector<2x64xf32>
    %384 = arith.addf %383, %382 : vector<2x64xf32>
    %385 = arith.divf %383, %384 : vector<2x64xf32>
    %386 = vector.extract_strided_slice %385 {offsets = [0, 0], sizes = [2, 16], strides = [1, 1]} : vector<2x64xf32> to vector<2x16xf32>
    %387 = vector.extract_strided_slice %385 {offsets = [0, 16], sizes = [2, 16], strides = [1, 1]} : vector<2x64xf32> to vector<2x16xf32>
    %388 = vector.extract_strided_slice %385 {offsets = [0, 32], sizes = [2, 16], strides = [1, 1]} : vector<2x64xf32> to vector<2x16xf32>
    %cst_106 = arith.constant 2.000000e+00 : f32
    %389 = vector.broadcast %cst_106 : f32 to vector<2x16xf32>
    %390 = arith.mulf %389, %388 : vector<2x16xf32>
    %cst_107 = arith.constant 1.000000e+00 : f32
    %391 = vector.broadcast %cst_107 : f32 to vector<2x16xf32>
    %392 = arith.subf %390, %391 : vector<2x16xf32>
    %393 = vector.extract_strided_slice %385 {offsets = [0, 48], sizes = [2, 16], strides = [1, 1]} : vector<2x64xf32> to vector<2x16xf32>
    %394 = arith.mulf %387, %345 : vector<2x16xf32>
    %395 = arith.mulf %386, %392 : vector<2x16xf32>
    %396 = arith.addf %394, %395 : vector<2x16xf32>
    %397 = math.tanh %396 : vector<2x16xf32>
    %398 = arith.mulf %393, %397 : vector<2x16xf32>
    %399 = vector.extract_strided_slice %332 {offsets = [6, 0], sizes = [6, 16], strides = [1, 1]} : vector<24x16xf32> to vector<6x16xf32>
    %400 = vector.extract_strided_slice %334 {offsets = [6, 0], sizes = [6, 8], strides = [1, 1]} : vector<24x8xf32> to vector<6x8xf32>
    %cst_108 = arith.constant dense<0.000000e+00> : vector<2x8xf32>
    %401 = tpu.matmul %398, %339, %cst_108 {dimension_numbers = #tpu.dot_dimension_numbers<[1], [0], [0], [1], [0, 0, 1, 1], [], []>} : vector<2x16xf32>, vector<16x8xf32>, vector<2x8xf32> -> vector<2x8xf32>
    %402 = vector.broadcast %340 : vector<1x8xf32> to vector<2x8xf32>
    %403 = arith.addf %401, %402 : vector<2x8xf32>
    %cst_109 = arith.constant dense<0.000000e+00> : vector<6x8xf32>
    %404 = tpu.matmul %338, %403, %cst_109 {dimension_numbers = #tpu.dot_dimension_numbers<[1], [0], [0], [1], [0, 0, 1, 1], [], []>} : vector<6x2xf32>, vector<2x8xf32>, vector<6x8xf32> -> vector<6x8xf32>
    %405 = arith.addf %400, %404 : vector<6x8xf32>
    %406 = math.tanh %405 : vector<6x8xf32>
    %407 = vector.broadcast %341 : vector<1x8xf32> to vector<6x8xf32>
    %408 = arith.mulf %406, %407 : vector<6x8xf32>
    %cst_110 = arith.constant dense<0.000000e+00> : vector<6xf32>
    %409 = vector.multi_reduction <add>, %408, %cst_110 [1] : vector<6x8xf32> to vector<6xf32>
    %410 = vector.shape_cast %409 : vector<6xf32> to vector<6x1xf32>
    %411 = vector.broadcast %342 : vector<1x1xf32> to vector<6x1xf32>
    %412 = arith.addf %410, %411 : vector<6x1xf32>
    %cst_111 = arith.constant 0.000000e+00 : f32
    %413 = vector.broadcast %cst_111 : f32 to vector<6x1xf32>
    %414 = arith.maximumf %412, %413 : vector<6x1xf32>
    %cst_112 = arith.constant dense<0xFF800000> : vector<1xf32>
    %415 = vector.multi_reduction <maximumf>, %414, %cst_112 [0] : vector<6x1xf32> to vector<1xf32>
    %416 = vector.shape_cast %415 : vector<1xf32> to vector<1x1xf32>
    %417 = vector.broadcast %416 : vector<1x1xf32> to vector<6x1xf32>
    %418 = arith.subf %414, %417 : vector<6x1xf32>
    %419 = math.exp %418 : vector<6x1xf32>
    %420 = vector.broadcast %419 : vector<6x1xf32> to vector<6x16xf32>
    %421 = arith.mulf %420, %399 : vector<6x16xf32>
    %422 = tpu.concatenate %421, %419 in 1 : vector<6x16xf32>, vector<6x1xf32> -> vector<6x17xf32>
    %cst_113 = arith.constant dense<0.000000e+00> : vector<2x17xf32>
    %423 = tpu.matmul %337, %422, %cst_113 {dimension_numbers = #tpu.dot_dimension_numbers<[1], [0], [0], [1], [0, 0, 1, 1], [], []>} : vector<2x6xf32>, vector<6x17xf32>, vector<2x17xf32> -> vector<2x17xf32>
    %424 = vector.extract_strided_slice %423 {offsets = [0, 0], sizes = [2, 16], strides = [1, 1]} : vector<2x17xf32> to vector<2x16xf32>
    %425 = vector.extract_strided_slice %423 {offsets = [0, 16], sizes = [2, 1], strides = [1, 1]} : vector<2x17xf32> to vector<2x1xf32>
    %426 = vector.broadcast %425 : vector<2x1xf32> to vector<2x16xf32>
    %427 = arith.divf %424, %426 : vector<2x16xf32>
    %428 = tpu.concatenate %427, %398 in 1 : vector<2x16xf32>, vector<2x16xf32> -> vector<2x32xf32>
    %cst_114 = arith.constant dense<0.000000e+00> : vector<2x64xf32>
    %429 = tpu.matmul %428, %343, %cst_114 {dimension_numbers = #tpu.dot_dimension_numbers<[1], [0], [0], [1], [0, 0, 1, 1], [], []>} : vector<2x32xf32>, vector<32x64xf32>, vector<2x64xf32> -> vector<2x64xf32>
    %430 = vector.extract_strided_slice %17 {offsets = [2, 0], sizes = [2, 64], strides = [1, 1]} : vector<8x64xf32> to vector<2x64xf32>
    %431 = arith.addf %429, %430 : vector<2x64xf32>
    %432 = vector.broadcast %40 : vector<1x64xf32> to vector<2x64xf32>
    %433 = arith.mulf %431, %432 : vector<2x64xf32>
    %434 = arith.negf %433 : vector<2x64xf32>
    %435 = math.exp %434 : vector<2x64xf32>
    %cst_115 = arith.constant 1.000000e+00 : f32
    %436 = vector.broadcast %cst_115 : f32 to vector<2x64xf32>
    %437 = arith.addf %436, %435 : vector<2x64xf32>
    %438 = arith.divf %436, %437 : vector<2x64xf32>
    %439 = vector.extract_strided_slice %438 {offsets = [0, 0], sizes = [2, 16], strides = [1, 1]} : vector<2x64xf32> to vector<2x16xf32>
    %440 = vector.extract_strided_slice %438 {offsets = [0, 16], sizes = [2, 16], strides = [1, 1]} : vector<2x64xf32> to vector<2x16xf32>
    %441 = vector.extract_strided_slice %438 {offsets = [0, 32], sizes = [2, 16], strides = [1, 1]} : vector<2x64xf32> to vector<2x16xf32>
    %cst_116 = arith.constant 2.000000e+00 : f32
    %442 = vector.broadcast %cst_116 : f32 to vector<2x16xf32>
    %443 = arith.mulf %442, %441 : vector<2x16xf32>
    %cst_117 = arith.constant 1.000000e+00 : f32
    %444 = vector.broadcast %cst_117 : f32 to vector<2x16xf32>
    %445 = arith.subf %443, %444 : vector<2x16xf32>
    %446 = vector.extract_strided_slice %438 {offsets = [0, 48], sizes = [2, 16], strides = [1, 1]} : vector<2x64xf32> to vector<2x16xf32>
    %447 = arith.mulf %440, %396 : vector<2x16xf32>
    %448 = arith.mulf %439, %445 : vector<2x16xf32>
    %449 = arith.addf %447, %448 : vector<2x16xf32>
    %450 = math.tanh %449 : vector<2x16xf32>
    %451 = arith.mulf %446, %450 : vector<2x16xf32>
    %452 = vector.extract_strided_slice %332 {offsets = [12, 0], sizes = [6, 16], strides = [1, 1]} : vector<24x16xf32> to vector<6x16xf32>
    %453 = vector.extract_strided_slice %334 {offsets = [12, 0], sizes = [6, 8], strides = [1, 1]} : vector<24x8xf32> to vector<6x8xf32>
    %cst_118 = arith.constant dense<0.000000e+00> : vector<2x8xf32>
    %454 = tpu.matmul %451, %339, %cst_118 {dimension_numbers = #tpu.dot_dimension_numbers<[1], [0], [0], [1], [0, 0, 1, 1], [], []>} : vector<2x16xf32>, vector<16x8xf32>, vector<2x8xf32> -> vector<2x8xf32>
    %455 = vector.broadcast %340 : vector<1x8xf32> to vector<2x8xf32>
    %456 = arith.addf %454, %455 : vector<2x8xf32>
    %cst_119 = arith.constant dense<0.000000e+00> : vector<6x8xf32>
    %457 = tpu.matmul %338, %456, %cst_119 {dimension_numbers = #tpu.dot_dimension_numbers<[1], [0], [0], [1], [0, 0, 1, 1], [], []>} : vector<6x2xf32>, vector<2x8xf32>, vector<6x8xf32> -> vector<6x8xf32>
    %458 = arith.addf %453, %457 : vector<6x8xf32>
    %459 = math.tanh %458 : vector<6x8xf32>
    %460 = vector.broadcast %341 : vector<1x8xf32> to vector<6x8xf32>
    %461 = arith.mulf %459, %460 : vector<6x8xf32>
    %cst_120 = arith.constant dense<0.000000e+00> : vector<6xf32>
    %462 = vector.multi_reduction <add>, %461, %cst_120 [1] : vector<6x8xf32> to vector<6xf32>
    %463 = vector.shape_cast %462 : vector<6xf32> to vector<6x1xf32>
    %464 = vector.broadcast %342 : vector<1x1xf32> to vector<6x1xf32>
    %465 = arith.addf %463, %464 : vector<6x1xf32>
    %cst_121 = arith.constant 0.000000e+00 : f32
    %466 = vector.broadcast %cst_121 : f32 to vector<6x1xf32>
    %467 = arith.maximumf %465, %466 : vector<6x1xf32>
    %cst_122 = arith.constant dense<0xFF800000> : vector<1xf32>
    %468 = vector.multi_reduction <maximumf>, %467, %cst_122 [0] : vector<6x1xf32> to vector<1xf32>
    %469 = vector.shape_cast %468 : vector<1xf32> to vector<1x1xf32>
    %470 = vector.broadcast %469 : vector<1x1xf32> to vector<6x1xf32>
    %471 = arith.subf %467, %470 : vector<6x1xf32>
    %472 = math.exp %471 : vector<6x1xf32>
    %473 = vector.broadcast %472 : vector<6x1xf32> to vector<6x16xf32>
    %474 = arith.mulf %473, %452 : vector<6x16xf32>
    %475 = tpu.concatenate %474, %472 in 1 : vector<6x16xf32>, vector<6x1xf32> -> vector<6x17xf32>
    %cst_123 = arith.constant dense<0.000000e+00> : vector<2x17xf32>
    %476 = tpu.matmul %337, %475, %cst_123 {dimension_numbers = #tpu.dot_dimension_numbers<[1], [0], [0], [1], [0, 0, 1, 1], [], []>} : vector<2x6xf32>, vector<6x17xf32>, vector<2x17xf32> -> vector<2x17xf32>
    %477 = vector.extract_strided_slice %476 {offsets = [0, 0], sizes = [2, 16], strides = [1, 1]} : vector<2x17xf32> to vector<2x16xf32>
    %478 = vector.extract_strided_slice %476 {offsets = [0, 16], sizes = [2, 1], strides = [1, 1]} : vector<2x17xf32> to vector<2x1xf32>
    %479 = vector.broadcast %478 : vector<2x1xf32> to vector<2x16xf32>
    %480 = arith.divf %477, %479 : vector<2x16xf32>
    %481 = tpu.concatenate %480, %451 in 1 : vector<2x16xf32>, vector<2x16xf32> -> vector<2x32xf32>
    %cst_124 = arith.constant dense<0.000000e+00> : vector<2x64xf32>
    %482 = tpu.matmul %481, %343, %cst_124 {dimension_numbers = #tpu.dot_dimension_numbers<[1], [0], [0], [1], [0, 0, 1, 1], [], []>} : vector<2x32xf32>, vector<32x64xf32>, vector<2x64xf32> -> vector<2x64xf32>
    %483 = vector.extract_strided_slice %17 {offsets = [4, 0], sizes = [2, 64], strides = [1, 1]} : vector<8x64xf32> to vector<2x64xf32>
    %484 = arith.addf %482, %483 : vector<2x64xf32>
    %485 = vector.broadcast %40 : vector<1x64xf32> to vector<2x64xf32>
    %486 = arith.mulf %484, %485 : vector<2x64xf32>
    %487 = arith.negf %486 : vector<2x64xf32>
    %488 = math.exp %487 : vector<2x64xf32>
    %cst_125 = arith.constant 1.000000e+00 : f32
    %489 = vector.broadcast %cst_125 : f32 to vector<2x64xf32>
    %490 = arith.addf %489, %488 : vector<2x64xf32>
    %491 = arith.divf %489, %490 : vector<2x64xf32>
    %492 = vector.extract_strided_slice %491 {offsets = [0, 0], sizes = [2, 16], strides = [1, 1]} : vector<2x64xf32> to vector<2x16xf32>
    %493 = vector.extract_strided_slice %491 {offsets = [0, 16], sizes = [2, 16], strides = [1, 1]} : vector<2x64xf32> to vector<2x16xf32>
    %494 = vector.extract_strided_slice %491 {offsets = [0, 32], sizes = [2, 16], strides = [1, 1]} : vector<2x64xf32> to vector<2x16xf32>
    %cst_126 = arith.constant 2.000000e+00 : f32
    %495 = vector.broadcast %cst_126 : f32 to vector<2x16xf32>
    %496 = arith.mulf %495, %494 : vector<2x16xf32>
    %cst_127 = arith.constant 1.000000e+00 : f32
    %497 = vector.broadcast %cst_127 : f32 to vector<2x16xf32>
    %498 = arith.subf %496, %497 : vector<2x16xf32>
    %499 = vector.extract_strided_slice %491 {offsets = [0, 48], sizes = [2, 16], strides = [1, 1]} : vector<2x64xf32> to vector<2x16xf32>
    %500 = arith.mulf %493, %449 : vector<2x16xf32>
    %501 = arith.mulf %492, %498 : vector<2x16xf32>
    %502 = arith.addf %500, %501 : vector<2x16xf32>
    %503 = math.tanh %502 : vector<2x16xf32>
    %504 = arith.mulf %499, %503 : vector<2x16xf32>
    %505 = vector.extract_strided_slice %332 {offsets = [18, 0], sizes = [6, 16], strides = [1, 1]} : vector<24x16xf32> to vector<6x16xf32>
    %506 = vector.extract_strided_slice %334 {offsets = [18, 0], sizes = [6, 8], strides = [1, 1]} : vector<24x8xf32> to vector<6x8xf32>
    %cst_128 = arith.constant dense<0.000000e+00> : vector<2x8xf32>
    %507 = tpu.matmul %504, %339, %cst_128 {dimension_numbers = #tpu.dot_dimension_numbers<[1], [0], [0], [1], [0, 0, 1, 1], [], []>} : vector<2x16xf32>, vector<16x8xf32>, vector<2x8xf32> -> vector<2x8xf32>
    %508 = vector.broadcast %340 : vector<1x8xf32> to vector<2x8xf32>
    %509 = arith.addf %507, %508 : vector<2x8xf32>
    %cst_129 = arith.constant dense<0.000000e+00> : vector<6x8xf32>
    %510 = tpu.matmul %338, %509, %cst_129 {dimension_numbers = #tpu.dot_dimension_numbers<[1], [0], [0], [1], [0, 0, 1, 1], [], []>} : vector<6x2xf32>, vector<2x8xf32>, vector<6x8xf32> -> vector<6x8xf32>
    %511 = arith.addf %506, %510 : vector<6x8xf32>
    %512 = math.tanh %511 : vector<6x8xf32>
    %513 = vector.broadcast %341 : vector<1x8xf32> to vector<6x8xf32>
    %514 = arith.mulf %512, %513 : vector<6x8xf32>
    %cst_130 = arith.constant dense<0.000000e+00> : vector<6xf32>
    %515 = vector.multi_reduction <add>, %514, %cst_130 [1] : vector<6x8xf32> to vector<6xf32>
    %516 = vector.shape_cast %515 : vector<6xf32> to vector<6x1xf32>
    %517 = vector.broadcast %342 : vector<1x1xf32> to vector<6x1xf32>
    %518 = arith.addf %516, %517 : vector<6x1xf32>
    %cst_131 = arith.constant 0.000000e+00 : f32
    %519 = vector.broadcast %cst_131 : f32 to vector<6x1xf32>
    %520 = arith.maximumf %518, %519 : vector<6x1xf32>
    %cst_132 = arith.constant dense<0xFF800000> : vector<1xf32>
    %521 = vector.multi_reduction <maximumf>, %520, %cst_132 [0] : vector<6x1xf32> to vector<1xf32>
    %522 = vector.shape_cast %521 : vector<1xf32> to vector<1x1xf32>
    %523 = vector.broadcast %522 : vector<1x1xf32> to vector<6x1xf32>
    %524 = arith.subf %520, %523 : vector<6x1xf32>
    %525 = math.exp %524 : vector<6x1xf32>
    %526 = vector.broadcast %525 : vector<6x1xf32> to vector<6x16xf32>
    %527 = arith.mulf %526, %505 : vector<6x16xf32>
    %528 = tpu.concatenate %527, %525 in 1 : vector<6x16xf32>, vector<6x1xf32> -> vector<6x17xf32>
    %cst_133 = arith.constant dense<0.000000e+00> : vector<2x17xf32>
    %529 = tpu.matmul %337, %528, %cst_133 {dimension_numbers = #tpu.dot_dimension_numbers<[1], [0], [0], [1], [0, 0, 1, 1], [], []>} : vector<2x6xf32>, vector<6x17xf32>, vector<2x17xf32> -> vector<2x17xf32>
    %530 = vector.extract_strided_slice %529 {offsets = [0, 0], sizes = [2, 16], strides = [1, 1]} : vector<2x17xf32> to vector<2x16xf32>
    %531 = vector.extract_strided_slice %529 {offsets = [0, 16], sizes = [2, 1], strides = [1, 1]} : vector<2x17xf32> to vector<2x1xf32>
    %532 = vector.broadcast %531 : vector<2x1xf32> to vector<2x16xf32>
    %533 = arith.divf %530, %532 : vector<2x16xf32>
    %534 = tpu.concatenate %533, %504 in 1 : vector<2x16xf32>, vector<2x16xf32> -> vector<2x32xf32>
    %cst_134 = arith.constant dense<0.000000e+00> : vector<2x64xf32>
    %535 = tpu.matmul %534, %343, %cst_134 {dimension_numbers = #tpu.dot_dimension_numbers<[1], [0], [0], [1], [0, 0, 1, 1], [], []>} : vector<2x32xf32>, vector<32x64xf32>, vector<2x64xf32> -> vector<2x64xf32>
    %536 = vector.extract_strided_slice %17 {offsets = [6, 0], sizes = [2, 64], strides = [1, 1]} : vector<8x64xf32> to vector<2x64xf32>
    %537 = arith.addf %535, %536 : vector<2x64xf32>
    %538 = vector.broadcast %40 : vector<1x64xf32> to vector<2x64xf32>
    %539 = arith.mulf %537, %538 : vector<2x64xf32>
    %540 = arith.negf %539 : vector<2x64xf32>
    %541 = math.exp %540 : vector<2x64xf32>
    %cst_135 = arith.constant 1.000000e+00 : f32
    %542 = vector.broadcast %cst_135 : f32 to vector<2x64xf32>
    %543 = arith.addf %542, %541 : vector<2x64xf32>
    %544 = arith.divf %542, %543 : vector<2x64xf32>
    %545 = vector.extract_strided_slice %544 {offsets = [0, 0], sizes = [2, 16], strides = [1, 1]} : vector<2x64xf32> to vector<2x16xf32>
    %546 = vector.extract_strided_slice %544 {offsets = [0, 16], sizes = [2, 16], strides = [1, 1]} : vector<2x64xf32> to vector<2x16xf32>
    %547 = vector.extract_strided_slice %544 {offsets = [0, 32], sizes = [2, 16], strides = [1, 1]} : vector<2x64xf32> to vector<2x16xf32>
    %cst_136 = arith.constant 2.000000e+00 : f32
    %548 = vector.broadcast %cst_136 : f32 to vector<2x16xf32>
    %549 = arith.mulf %548, %547 : vector<2x16xf32>
    %cst_137 = arith.constant 1.000000e+00 : f32
    %550 = vector.broadcast %cst_137 : f32 to vector<2x16xf32>
    %551 = arith.subf %549, %550 : vector<2x16xf32>
    %552 = vector.extract_strided_slice %544 {offsets = [0, 48], sizes = [2, 16], strides = [1, 1]} : vector<2x64xf32> to vector<2x16xf32>
    %553 = arith.mulf %546, %502 : vector<2x16xf32>
    %554 = arith.mulf %545, %551 : vector<2x16xf32>
    %555 = arith.addf %553, %554 : vector<2x16xf32>
    %556 = math.tanh %555 : vector<2x16xf32>
    %557 = arith.mulf %552, %556 : vector<2x16xf32>
    %c240 = arith.constant 240 : index
    %c0_138 = arith.constant 0 : index
    %558 = vector.load %arg3[%c240, %c0_138] : memref<336x128xf32, #tpu.memory_space<vmem>>, vector<16x16xf32>
    %cst_139 = arith.constant dense<0.000000e+00> : vector<2x16xf32>
    %559 = tpu.matmul %557, %558, %cst_139 {dimension_numbers = #tpu.dot_dimension_numbers<[1], [0], [0], [1], [0, 0, 1, 1], [], []>} : vector<2x16xf32>, vector<16x16xf32>, vector<2x16xf32> -> vector<2x16xf32>
    %c256 = arith.constant 256 : index
    %c0_140 = arith.constant 0 : index
    %560 = vector.load %arg3[%c256, %c0_140] : memref<336x128xf32, #tpu.memory_space<vmem>>, vector<1x16xf32>
    %561 = vector.broadcast %560 : vector<1x16xf32> to vector<2x16xf32>
    %562 = arith.addf %559, %561 : vector<2x16xf32>
    %c264 = arith.constant 264 : index
    %c0_141 = arith.constant 0 : index
    %563 = vector.load %arg3[%c264, %c0_141] : memref<336x128xf32, #tpu.memory_space<vmem>>, vector<16x3xf32>
    %cst_142 = arith.constant dense<0.000000e+00> : vector<2x3xf32>
    %564 = tpu.matmul %562, %563, %cst_142 {dimension_numbers = #tpu.dot_dimension_numbers<[1], [0], [0], [1], [0, 0, 1, 1], [], []>} : vector<2x16xf32>, vector<16x3xf32>, vector<2x3xf32> -> vector<2x3xf32>
    %c280 = arith.constant 280 : index
    %c0_143 = arith.constant 0 : index
    %565 = vector.load %arg3[%c280, %c0_143] : memref<336x128xf32, #tpu.memory_space<vmem>>, vector<1x3xf32>
    %566 = vector.broadcast %565 : vector<1x3xf32> to vector<2x3xf32>
    %567 = arith.addf %564, %566 : vector<2x3xf32>
    %568 = tpu.concatenate %7, %7, %7, %7, %7, %7, %7, %7, %7, %7, %7, %7 in 1 : vector<2x2xf32>, vector<2x2xf32>, vector<2x2xf32>, vector<2x2xf32>, vector<2x2xf32>, vector<2x2xf32>, vector<2x2xf32>, vector<2x2xf32>, vector<2x2xf32>, vector<2x2xf32>, vector<2x2xf32>, vector<2x2xf32> -> vector<2x24xf32>
    %569 = tpu.concatenate %7, %7, %7, %7, %7, %7, %7, %7, %7, %7, %7, %7 in 0 : vector<2x2xf32>, vector<2x2xf32>, vector<2x2xf32>, vector<2x2xf32>, vector<2x2xf32>, vector<2x2xf32>, vector<2x2xf32>, vector<2x2xf32>, vector<2x2xf32>, vector<2x2xf32>, vector<2x2xf32>, vector<2x2xf32> -> vector<24x2xf32>
    %c104 = arith.constant 104 : index
    %c0_144 = arith.constant 0 : index
    %570 = vector.load %arg3[%c104, %c0_144] : memref<336x128xf32, #tpu.memory_space<vmem>>, vector<16x8xf32>
    %c120 = arith.constant 120 : index
    %c0_145 = arith.constant 0 : index
    %571 = vector.load %arg3[%c120, %c0_145] : memref<336x128xf32, #tpu.memory_space<vmem>>, vector<1x8xf32>
    %c128 = arith.constant 128 : index
    %c0_146 = arith.constant 0 : index
    %572 = vector.load %arg3[%c128, %c0_146] : memref<336x128xf32, #tpu.memory_space<vmem>>, vector<1x8xf32>
    %c136 = arith.constant 136 : index
    %c0_147 = arith.constant 0 : index
    %573 = vector.load %arg3[%c136, %c0_147] : memref<336x128xf32, #tpu.memory_space<vmem>>, vector<1x1xf32>
    %c192 = arith.constant 192 : index
    %c0_148 = arith.constant 0 : index
    %574 = vector.load %arg3[%c192, %c0_148] : memref<336x128xf32, #tpu.memory_space<vmem>>, vector<32x64xf32>
    %cst_149 = arith.constant 0.000000e+00 : f32
    %575 = vector.broadcast %cst_149 : f32 to vector<2x16xf32>
    %cst_150 = arith.constant dense<0.000000e+00> : vector<2x8xf32>
    %576 = tpu.matmul %330, %570, %cst_150 {dimension_numbers = #tpu.dot_dimension_numbers<[1], [0], [0], [1], [0, 0, 1, 1], [], []>} : vector<2x16xf32>, vector<16x8xf32>, vector<2x8xf32> -> vector<2x8xf32>
    %577 = vector.broadcast %571 : vector<1x8xf32> to vector<2x8xf32>
    %578 = arith.addf %576, %577 : vector<2x8xf32>
    %cst_151 = arith.constant dense<0.000000e+00> : vector<24x8xf32>
    %579 = tpu.matmul %569, %578, %cst_151 {dimension_numbers = #tpu.dot_dimension_numbers<[1], [0], [0], [1], [0, 0, 1, 1], [], []>} : vector<24x2xf32>, vector<2x8xf32>, vector<24x8xf32> -> vector<24x8xf32>
    %580 = arith.addf %336, %579 : vector<24x8xf32>
    %581 = math.tanh %580 : vector<24x8xf32>
    %582 = vector.broadcast %572 : vector<1x8xf32> to vector<24x8xf32>
    %583 = arith.mulf %581, %582 : vector<24x8xf32>
    %cst_152 = arith.constant dense<0.000000e+00> : vector<24xf32>
    %584 = vector.multi_reduction <add>, %583, %cst_152 [1] : vector<24x8xf32> to vector<24xf32>
    %585 = vector.shape_cast %584 : vector<24xf32> to vector<24x1xf32>
    %586 = vector.broadcast %573 : vector<1x1xf32> to vector<24x1xf32>
    %587 = arith.addf %585, %586 : vector<24x1xf32>
    %cst_153 = arith.constant 0.000000e+00 : f32
    %588 = vector.broadcast %cst_153 : f32 to vector<24x1xf32>
    %589 = arith.maximumf %587, %588 : vector<24x1xf32>
    %cst_154 = arith.constant dense<0xFF800000> : vector<1xf32>
    %590 = vector.multi_reduction <maximumf>, %589, %cst_154 [0] : vector<24x1xf32> to vector<1xf32>
    %591 = vector.shape_cast %590 : vector<1xf32> to vector<1x1xf32>
    %592 = vector.broadcast %591 : vector<1x1xf32> to vector<24x1xf32>
    %593 = arith.subf %589, %592 : vector<24x1xf32>
    %594 = math.exp %593 : vector<24x1xf32>
    %595 = vector.broadcast %594 : vector<24x1xf32> to vector<24x16xf32>
    %596 = arith.mulf %595, %332 : vector<24x16xf32>
    %597 = tpu.concatenate %596, %594 in 1 : vector<24x16xf32>, vector<24x1xf32> -> vector<24x17xf32>
    %cst_155 = arith.constant dense<0.000000e+00> : vector<2x17xf32>
    %598 = tpu.matmul %568, %597, %cst_155 {dimension_numbers = #tpu.dot_dimension_numbers<[1], [0], [0], [1], [0, 0, 1, 1], [], []>} : vector<2x24xf32>, vector<24x17xf32>, vector<2x17xf32> -> vector<2x17xf32>
    %599 = vector.extract_strided_slice %598 {offsets = [0, 0], sizes = [2, 16], strides = [1, 1]} : vector<2x17xf32> to vector<2x16xf32>
    %600 = vector.extract_strided_slice %598 {offsets = [0, 16], sizes = [2, 1], strides = [1, 1]} : vector<2x17xf32> to vector<2x1xf32>
    %601 = vector.broadcast %600 : vector<2x1xf32> to vector<2x16xf32>
    %602 = arith.divf %599, %601 : vector<2x16xf32>
    %603 = tpu.concatenate %602, %330 in 1 : vector<2x16xf32>, vector<2x16xf32> -> vector<2x32xf32>
    %cst_156 = arith.constant dense<0.000000e+00> : vector<2x64xf32>
    %604 = tpu.matmul %603, %574, %cst_156 {dimension_numbers = #tpu.dot_dimension_numbers<[1], [0], [0], [1], [0, 0, 1, 1], [], []>} : vector<2x32xf32>, vector<32x64xf32>, vector<2x64xf32> -> vector<2x64xf32>
    %605 = vector.extract_strided_slice %22 {offsets = [0, 0], sizes = [2, 64], strides = [1, 1]} : vector<12x64xf32> to vector<2x64xf32>
    %606 = arith.addf %604, %605 : vector<2x64xf32>
    %607 = vector.broadcast %31 : vector<1x64xf32> to vector<2x64xf32>
    %608 = arith.mulf %606, %607 : vector<2x64xf32>
    %609 = arith.negf %608 : vector<2x64xf32>
    %610 = math.exp %609 : vector<2x64xf32>
    %cst_157 = arith.constant 1.000000e+00 : f32
    %611 = vector.broadcast %cst_157 : f32 to vector<2x64xf32>
    %612 = arith.addf %611, %610 : vector<2x64xf32>
    %613 = arith.divf %611, %612 : vector<2x64xf32>
    %614 = vector.extract_strided_slice %613 {offsets = [0, 0], sizes = [2, 16], strides = [1, 1]} : vector<2x64xf32> to vector<2x16xf32>
    %615 = vector.extract_strided_slice %613 {offsets = [0, 16], sizes = [2, 16], strides = [1, 1]} : vector<2x64xf32> to vector<2x16xf32>
    %616 = vector.extract_strided_slice %613 {offsets = [0, 32], sizes = [2, 16], strides = [1, 1]} : vector<2x64xf32> to vector<2x16xf32>
    %cst_158 = arith.constant 2.000000e+00 : f32
    %617 = vector.broadcast %cst_158 : f32 to vector<2x16xf32>
    %618 = arith.mulf %617, %616 : vector<2x16xf32>
    %cst_159 = arith.constant 1.000000e+00 : f32
    %619 = vector.broadcast %cst_159 : f32 to vector<2x16xf32>
    %620 = arith.subf %618, %619 : vector<2x16xf32>
    %621 = vector.extract_strided_slice %613 {offsets = [0, 48], sizes = [2, 16], strides = [1, 1]} : vector<2x64xf32> to vector<2x16xf32>
    %622 = arith.mulf %615, %575 : vector<2x16xf32>
    %623 = arith.mulf %614, %620 : vector<2x16xf32>
    %624 = arith.addf %622, %623 : vector<2x16xf32>
    %625 = math.tanh %624 : vector<2x16xf32>
    %626 = arith.mulf %621, %625 : vector<2x16xf32>
    %c0_160 = arith.constant 0 : index
    %c0_161 = arith.constant 0 : index
    %627 = vector.load %arg7[%c0_160, %c0_161] : memref<12x16xf32, #tpu.memory_space<vmem>>, vector<2x16xf32>
    tpu.vector_store %arg7[%c0_160, %c0_161], %626 {strides = array<i32>} : memref<12x16xf32, #tpu.memory_space<vmem>>, vector<2x16xf32>,
    %cst_162 = arith.constant dense<0.000000e+00> : vector<2x8xf32>
    %628 = tpu.matmul %626, %570, %cst_162 {dimension_numbers = #tpu.dot_dimension_numbers<[1], [0], [0], [1], [0, 0, 1, 1], [], []>} : vector<2x16xf32>, vector<16x8xf32>, vector<2x8xf32> -> vector<2x8xf32>
    %629 = vector.broadcast %571 : vector<1x8xf32> to vector<2x8xf32>
    %630 = arith.addf %628, %629 : vector<2x8xf32>
    %cst_163 = arith.constant dense<0.000000e+00> : vector<24x8xf32>
    %631 = tpu.matmul %569, %630, %cst_163 {dimension_numbers = #tpu.dot_dimension_numbers<[1], [0], [0], [1], [0, 0, 1, 1], [], []>} : vector<24x2xf32>, vector<2x8xf32>, vector<24x8xf32> -> vector<24x8xf32>
    %632 = arith.addf %336, %631 : vector<24x8xf32>
    %633 = math.tanh %632 : vector<24x8xf32>
    %634 = vector.broadcast %572 : vector<1x8xf32> to vector<24x8xf32>
    %635 = arith.mulf %633, %634 : vector<24x8xf32>
    %cst_164 = arith.constant dense<0.000000e+00> : vector<24xf32>
    %636 = vector.multi_reduction <add>, %635, %cst_164 [1] : vector<24x8xf32> to vector<24xf32>
    %637 = vector.shape_cast %636 : vector<24xf32> to vector<24x1xf32>
    %638 = vector.broadcast %573 : vector<1x1xf32> to vector<24x1xf32>
    %639 = arith.addf %637, %638 : vector<24x1xf32>
    %cst_165 = arith.constant 0.000000e+00 : f32
    %640 = vector.broadcast %cst_165 : f32 to vector<24x1xf32>
    %641 = arith.maximumf %639, %640 : vector<24x1xf32>
    %cst_166 = arith.constant dense<0xFF800000> : vector<1xf32>
    %642 = vector.multi_reduction <maximumf>, %641, %cst_166 [0] : vector<24x1xf32> to vector<1xf32>
    %643 = vector.shape_cast %642 : vector<1xf32> to vector<1x1xf32>
    %644 = vector.broadcast %643 : vector<1x1xf32> to vector<24x1xf32>
    %645 = arith.subf %641, %644 : vector<24x1xf32>
    %646 = math.exp %645 : vector<24x1xf32>
    %647 = vector.broadcast %646 : vector<24x1xf32> to vector<24x16xf32>
    %648 = arith.mulf %647, %332 : vector<24x16xf32>
    %649 = tpu.concatenate %648, %646 in 1 : vector<24x16xf32>, vector<24x1xf32> -> vector<24x17xf32>
    %cst_167 = arith.constant dense<0.000000e+00> : vector<2x17xf32>
    %650 = tpu.matmul %568, %649, %cst_167 {dimension_numbers = #tpu.dot_dimension_numbers<[1], [0], [0], [1], [0, 0, 1, 1], [], []>} : vector<2x24xf32>, vector<24x17xf32>, vector<2x17xf32> -> vector<2x17xf32>
    %651 = vector.extract_strided_slice %650 {offsets = [0, 0], sizes = [2, 16], strides = [1, 1]} : vector<2x17xf32> to vector<2x16xf32>
    %652 = vector.extract_strided_slice %650 {offsets = [0, 16], sizes = [2, 1], strides = [1, 1]} : vector<2x17xf32> to vector<2x1xf32>
    %653 = vector.broadcast %652 : vector<2x1xf32> to vector<2x16xf32>
    %654 = arith.divf %651, %653 : vector<2x16xf32>
    %655 = tpu.concatenate %654, %626 in 1 : vector<2x16xf32>, vector<2x16xf32> -> vector<2x32xf32>
    %cst_168 = arith.constant dense<0.000000e+00> : vector<2x64xf32>
    %656 = tpu.matmul %655, %574, %cst_168 {dimension_numbers = #tpu.dot_dimension_numbers<[1], [0], [0], [1], [0, 0, 1, 1], [], []>} : vector<2x32xf32>, vector<32x64xf32>, vector<2x64xf32> -> vector<2x64xf32>
    %657 = vector.extract_strided_slice %22 {offsets = [2, 0], sizes = [2, 64], strides = [1, 1]} : vector<12x64xf32> to vector<2x64xf32>
    %658 = arith.addf %656, %657 : vector<2x64xf32>
    %659 = vector.broadcast %31 : vector<1x64xf32> to vector<2x64xf32>
    %660 = arith.mulf %658, %659 : vector<2x64xf32>
    %661 = arith.negf %660 : vector<2x64xf32>
    %662 = math.exp %661 : vector<2x64xf32>
    %cst_169 = arith.constant 1.000000e+00 : f32
    %663 = vector.broadcast %cst_169 : f32 to vector<2x64xf32>
    %664 = arith.addf %663, %662 : vector<2x64xf32>
    %665 = arith.divf %663, %664 : vector<2x64xf32>
    %666 = vector.extract_strided_slice %665 {offsets = [0, 0], sizes = [2, 16], strides = [1, 1]} : vector<2x64xf32> to vector<2x16xf32>
    %667 = vector.extract_strided_slice %665 {offsets = [0, 16], sizes = [2, 16], strides = [1, 1]} : vector<2x64xf32> to vector<2x16xf32>
    %668 = vector.extract_strided_slice %665 {offsets = [0, 32], sizes = [2, 16], strides = [1, 1]} : vector<2x64xf32> to vector<2x16xf32>
    %cst_170 = arith.constant 2.000000e+00 : f32
    %669 = vector.broadcast %cst_170 : f32 to vector<2x16xf32>
    %670 = arith.mulf %669, %668 : vector<2x16xf32>
    %cst_171 = arith.constant 1.000000e+00 : f32
    %671 = vector.broadcast %cst_171 : f32 to vector<2x16xf32>
    %672 = arith.subf %670, %671 : vector<2x16xf32>
    %673 = vector.extract_strided_slice %665 {offsets = [0, 48], sizes = [2, 16], strides = [1, 1]} : vector<2x64xf32> to vector<2x16xf32>
    %674 = arith.mulf %667, %624 : vector<2x16xf32>
    %675 = arith.mulf %666, %672 : vector<2x16xf32>
    %676 = arith.addf %674, %675 : vector<2x16xf32>
    %677 = math.tanh %676 : vector<2x16xf32>
    %678 = arith.mulf %673, %677 : vector<2x16xf32>
    %c2_172 = arith.constant 2 : index
    %c0_173 = arith.constant 0 : index
    %679 = vector.load %arg7[%c2_172, %c0_173] : memref<12x16xf32, #tpu.memory_space<vmem>>, vector<2x16xf32>
    tpu.vector_store %arg7[%c2_172, %c0_173], %678 {strides = array<i32>} : memref<12x16xf32, #tpu.memory_space<vmem>>, vector<2x16xf32>,
    %cst_174 = arith.constant dense<0.000000e+00> : vector<2x8xf32>
    %680 = tpu.matmul %678, %570, %cst_174 {dimension_numbers = #tpu.dot_dimension_numbers<[1], [0], [0], [1], [0, 0, 1, 1], [], []>} : vector<2x16xf32>, vector<16x8xf32>, vector<2x8xf32> -> vector<2x8xf32>
    %681 = vector.broadcast %571 : vector<1x8xf32> to vector<2x8xf32>
    %682 = arith.addf %680, %681 : vector<2x8xf32>
    %cst_175 = arith.constant dense<0.000000e+00> : vector<24x8xf32>
    %683 = tpu.matmul %569, %682, %cst_175 {dimension_numbers = #tpu.dot_dimension_numbers<[1], [0], [0], [1], [0, 0, 1, 1], [], []>} : vector<24x2xf32>, vector<2x8xf32>, vector<24x8xf32> -> vector<24x8xf32>
    %684 = arith.addf %336, %683 : vector<24x8xf32>
    %685 = math.tanh %684 : vector<24x8xf32>
    %686 = vector.broadcast %572 : vector<1x8xf32> to vector<24x8xf32>
    %687 = arith.mulf %685, %686 : vector<24x8xf32>
    %cst_176 = arith.constant dense<0.000000e+00> : vector<24xf32>
    %688 = vector.multi_reduction <add>, %687, %cst_176 [1] : vector<24x8xf32> to vector<24xf32>
    %689 = vector.shape_cast %688 : vector<24xf32> to vector<24x1xf32>
    %690 = vector.broadcast %573 : vector<1x1xf32> to vector<24x1xf32>
    %691 = arith.addf %689, %690 : vector<24x1xf32>
    %cst_177 = arith.constant 0.000000e+00 : f32
    %692 = vector.broadcast %cst_177 : f32 to vector<24x1xf32>
    %693 = arith.maximumf %691, %692 : vector<24x1xf32>
    %cst_178 = arith.constant dense<0xFF800000> : vector<1xf32>
    %694 = vector.multi_reduction <maximumf>, %693, %cst_178 [0] : vector<24x1xf32> to vector<1xf32>
    %695 = vector.shape_cast %694 : vector<1xf32> to vector<1x1xf32>
    %696 = vector.broadcast %695 : vector<1x1xf32> to vector<24x1xf32>
    %697 = arith.subf %693, %696 : vector<24x1xf32>
    %698 = math.exp %697 : vector<24x1xf32>
    %699 = vector.broadcast %698 : vector<24x1xf32> to vector<24x16xf32>
    %700 = arith.mulf %699, %332 : vector<24x16xf32>
    %701 = tpu.concatenate %700, %698 in 1 : vector<24x16xf32>, vector<24x1xf32> -> vector<24x17xf32>
    %cst_179 = arith.constant dense<0.000000e+00> : vector<2x17xf32>
    %702 = tpu.matmul %568, %701, %cst_179 {dimension_numbers = #tpu.dot_dimension_numbers<[1], [0], [0], [1], [0, 0, 1, 1], [], []>} : vector<2x24xf32>, vector<24x17xf32>, vector<2x17xf32> -> vector<2x17xf32>
    %703 = vector.extract_strided_slice %702 {offsets = [0, 0], sizes = [2, 16], strides = [1, 1]} : vector<2x17xf32> to vector<2x16xf32>
    %704 = vector.extract_strided_slice %702 {offsets = [0, 16], sizes = [2, 1], strides = [1, 1]} : vector<2x17xf32> to vector<2x1xf32>
    %705 = vector.broadcast %704 : vector<2x1xf32> to vector<2x16xf32>
    %706 = arith.divf %703, %705 : vector<2x16xf32>
    %707 = tpu.concatenate %706, %678 in 1 : vector<2x16xf32>, vector<2x16xf32> -> vector<2x32xf32>
    %cst_180 = arith.constant dense<0.000000e+00> : vector<2x64xf32>
    %708 = tpu.matmul %707, %574, %cst_180 {dimension_numbers = #tpu.dot_dimension_numbers<[1], [0], [0], [1], [0, 0, 1, 1], [], []>} : vector<2x32xf32>, vector<32x64xf32>, vector<2x64xf32> -> vector<2x64xf32>
    %709 = vector.extract_strided_slice %22 {offsets = [4, 0], sizes = [2, 64], strides = [1, 1]} : vector<12x64xf32> to vector<2x64xf32>
    %710 = arith.addf %708, %709 : vector<2x64xf32>
    %711 = vector.broadcast %31 : vector<1x64xf32> to vector<2x64xf32>
    %712 = arith.mulf %710, %711 : vector<2x64xf32>
    %713 = arith.negf %712 : vector<2x64xf32>
    %714 = math.exp %713 : vector<2x64xf32>
    %cst_181 = arith.constant 1.000000e+00 : f32
    %715 = vector.broadcast %cst_181 : f32 to vector<2x64xf32>
    %716 = arith.addf %715, %714 : vector<2x64xf32>
    %717 = arith.divf %715, %716 : vector<2x64xf32>
    %718 = vector.extract_strided_slice %717 {offsets = [0, 0], sizes = [2, 16], strides = [1, 1]} : vector<2x64xf32> to vector<2x16xf32>
    %719 = vector.extract_strided_slice %717 {offsets = [0, 16], sizes = [2, 16], strides = [1, 1]} : vector<2x64xf32> to vector<2x16xf32>
    %720 = vector.extract_strided_slice %717 {offsets = [0, 32], sizes = [2, 16], strides = [1, 1]} : vector<2x64xf32> to vector<2x16xf32>
    %cst_182 = arith.constant 2.000000e+00 : f32
    %721 = vector.broadcast %cst_182 : f32 to vector<2x16xf32>
    %722 = arith.mulf %721, %720 : vector<2x16xf32>
    %cst_183 = arith.constant 1.000000e+00 : f32
    %723 = vector.broadcast %cst_183 : f32 to vector<2x16xf32>
    %724 = arith.subf %722, %723 : vector<2x16xf32>
    %725 = vector.extract_strided_slice %717 {offsets = [0, 48], sizes = [2, 16], strides = [1, 1]} : vector<2x64xf32> to vector<2x16xf32>
    %726 = arith.mulf %719, %676 : vector<2x16xf32>
    %727 = arith.mulf %718, %724 : vector<2x16xf32>
    %728 = arith.addf %726, %727 : vector<2x16xf32>
    %729 = math.tanh %728 : vector<2x16xf32>
    %730 = arith.mulf %725, %729 : vector<2x16xf32>
    %c4_184 = arith.constant 4 : index
    %c0_185 = arith.constant 0 : index
    %731 = vector.load %arg7[%c4_184, %c0_185] : memref<12x16xf32, #tpu.memory_space<vmem>>, vector<2x16xf32>
    tpu.vector_store %arg7[%c4_184, %c0_185], %730 {strides = array<i32>} : memref<12x16xf32, #tpu.memory_space<vmem>>, vector<2x16xf32>,
    %cst_186 = arith.constant dense<0.000000e+00> : vector<2x8xf32>
    %732 = tpu.matmul %730, %570, %cst_186 {dimension_numbers = #tpu.dot_dimension_numbers<[1], [0], [0], [1], [0, 0, 1, 1], [], []>} : vector<2x16xf32>, vector<16x8xf32>, vector<2x8xf32> -> vector<2x8xf32>
    %733 = vector.broadcast %571 : vector<1x8xf32> to vector<2x8xf32>
    %734 = arith.addf %732, %733 : vector<2x8xf32>
    %cst_187 = arith.constant dense<0.000000e+00> : vector<24x8xf32>
    %735 = tpu.matmul %569, %734, %cst_187 {dimension_numbers = #tpu.dot_dimension_numbers<[1], [0], [0], [1], [0, 0, 1, 1], [], []>} : vector<24x2xf32>, vector<2x8xf32>, vector<24x8xf32> -> vector<24x8xf32>
    %736 = arith.addf %336, %735 : vector<24x8xf32>
    %737 = math.tanh %736 : vector<24x8xf32>
    %738 = vector.broadcast %572 : vector<1x8xf32> to vector<24x8xf32>
    %739 = arith.mulf %737, %738 : vector<24x8xf32>
    %cst_188 = arith.constant dense<0.000000e+00> : vector<24xf32>
    %740 = vector.multi_reduction <add>, %739, %cst_188 [1] : vector<24x8xf32> to vector<24xf32>
    %741 = vector.shape_cast %740 : vector<24xf32> to vector<24x1xf32>
    %742 = vector.broadcast %573 : vector<1x1xf32> to vector<24x1xf32>
    %743 = arith.addf %741, %742 : vector<24x1xf32>
    %cst_189 = arith.constant 0.000000e+00 : f32
    %744 = vector.broadcast %cst_189 : f32 to vector<24x1xf32>
    %745 = arith.maximumf %743, %744 : vector<24x1xf32>
    %cst_190 = arith.constant dense<0xFF800000> : vector<1xf32>
    %746 = vector.multi_reduction <maximumf>, %745, %cst_190 [0] : vector<24x1xf32> to vector<1xf32>
    %747 = vector.shape_cast %746 : vector<1xf32> to vector<1x1xf32>
    %748 = vector.broadcast %747 : vector<1x1xf32> to vector<24x1xf32>
    %749 = arith.subf %745, %748 : vector<24x1xf32>
    %750 = math.exp %749 : vector<24x1xf32>
    %751 = vector.broadcast %750 : vector<24x1xf32> to vector<24x16xf32>
    %752 = arith.mulf %751, %332 : vector<24x16xf32>
    %753 = tpu.concatenate %752, %750 in 1 : vector<24x16xf32>, vector<24x1xf32> -> vector<24x17xf32>
    %cst_191 = arith.constant dense<0.000000e+00> : vector<2x17xf32>
    %754 = tpu.matmul %568, %753, %cst_191 {dimension_numbers = #tpu.dot_dimension_numbers<[1], [0], [0], [1], [0, 0, 1, 1], [], []>} : vector<2x24xf32>, vector<24x17xf32>, vector<2x17xf32> -> vector<2x17xf32>
    %755 = vector.extract_strided_slice %754 {offsets = [0, 0], sizes = [2, 16], strides = [1, 1]} : vector<2x17xf32> to vector<2x16xf32>
    %756 = vector.extract_strided_slice %754 {offsets = [0, 16], sizes = [2, 1], strides = [1, 1]} : vector<2x17xf32> to vector<2x1xf32>
    %757 = vector.broadcast %756 : vector<2x1xf32> to vector<2x16xf32>
    %758 = arith.divf %755, %757 : vector<2x16xf32>
    %759 = tpu.concatenate %758, %730 in 1 : vector<2x16xf32>, vector<2x16xf32> -> vector<2x32xf32>
    %cst_192 = arith.constant dense<0.000000e+00> : vector<2x64xf32>
    %760 = tpu.matmul %759, %574, %cst_192 {dimension_numbers = #tpu.dot_dimension_numbers<[1], [0], [0], [1], [0, 0, 1, 1], [], []>} : vector<2x32xf32>, vector<32x64xf32>, vector<2x64xf32> -> vector<2x64xf32>
    %761 = vector.extract_strided_slice %22 {offsets = [6, 0], sizes = [2, 64], strides = [1, 1]} : vector<12x64xf32> to vector<2x64xf32>
    %762 = arith.addf %760, %761 : vector<2x64xf32>
    %763 = vector.broadcast %31 : vector<1x64xf32> to vector<2x64xf32>
    %764 = arith.mulf %762, %763 : vector<2x64xf32>
    %765 = arith.negf %764 : vector<2x64xf32>
    %766 = math.exp %765 : vector<2x64xf32>
    %cst_193 = arith.constant 1.000000e+00 : f32
    %767 = vector.broadcast %cst_193 : f32 to vector<2x64xf32>
    %768 = arith.addf %767, %766 : vector<2x64xf32>
    %769 = arith.divf %767, %768 : vector<2x64xf32>
    %770 = vector.extract_strided_slice %769 {offsets = [0, 0], sizes = [2, 16], strides = [1, 1]} : vector<2x64xf32> to vector<2x16xf32>
    %771 = vector.extract_strided_slice %769 {offsets = [0, 16], sizes = [2, 16], strides = [1, 1]} : vector<2x64xf32> to vector<2x16xf32>
    %772 = vector.extract_strided_slice %769 {offsets = [0, 32], sizes = [2, 16], strides = [1, 1]} : vector<2x64xf32> to vector<2x16xf32>
    %cst_194 = arith.constant 2.000000e+00 : f32
    %773 = vector.broadcast %cst_194 : f32 to vector<2x16xf32>
    %774 = arith.mulf %773, %772 : vector<2x16xf32>
    %cst_195 = arith.constant 1.000000e+00 : f32
    %775 = vector.broadcast %cst_195 : f32 to vector<2x16xf32>
    %776 = arith.subf %774, %775 : vector<2x16xf32>
    %777 = vector.extract_strided_slice %769 {offsets = [0, 48], sizes = [2, 16], strides = [1, 1]} : vector<2x64xf32> to vector<2x16xf32>
    %778 = arith.mulf %771, %728 : vector<2x16xf32>
    %779 = arith.mulf %770, %776 : vector<2x16xf32>
    %780 = arith.addf %778, %779 : vector<2x16xf32>
    %781 = math.tanh %780 : vector<2x16xf32>
    %782 = arith.mulf %777, %781 : vector<2x16xf32>
    %c6_196 = arith.constant 6 : index
    %c0_197 = arith.constant 0 : index
    %783 = vector.load %arg7[%c6_196, %c0_197] : memref<12x16xf32, #tpu.memory_space<vmem>>, vector<2x16xf32>
    tpu.vector_store %arg7[%c6_196, %c0_197], %782 {strides = array<i32>} : memref<12x16xf32, #tpu.memory_space<vmem>>, vector<2x16xf32>,
    %cst_198 = arith.constant dense<0.000000e+00> : vector<2x8xf32>
    %784 = tpu.matmul %782, %570, %cst_198 {dimension_numbers = #tpu.dot_dimension_numbers<[1], [0], [0], [1], [0, 0, 1, 1], [], []>} : vector<2x16xf32>, vector<16x8xf32>, vector<2x8xf32> -> vector<2x8xf32>
    %785 = vector.broadcast %571 : vector<1x8xf32> to vector<2x8xf32>
    %786 = arith.addf %784, %785 : vector<2x8xf32>
    %cst_199 = arith.constant dense<0.000000e+00> : vector<24x8xf32>
    %787 = tpu.matmul %569, %786, %cst_199 {dimension_numbers = #tpu.dot_dimension_numbers<[1], [0], [0], [1], [0, 0, 1, 1], [], []>} : vector<24x2xf32>, vector<2x8xf32>, vector<24x8xf32> -> vector<24x8xf32>
    %788 = arith.addf %336, %787 : vector<24x8xf32>
    %789 = math.tanh %788 : vector<24x8xf32>
    %790 = vector.broadcast %572 : vector<1x8xf32> to vector<24x8xf32>
    %791 = arith.mulf %789, %790 : vector<24x8xf32>
    %cst_200 = arith.constant dense<0.000000e+00> : vector<24xf32>
    %792 = vector.multi_reduction <add>, %791, %cst_200 [1] : vector<24x8xf32> to vector<24xf32>
    %793 = vector.shape_cast %792 : vector<24xf32> to vector<24x1xf32>
    %794 = vector.broadcast %573 : vector<1x1xf32> to vector<24x1xf32>
    %795 = arith.addf %793, %794 : vector<24x1xf32>
    %cst_201 = arith.constant 0.000000e+00 : f32
    %796 = vector.broadcast %cst_201 : f32 to vector<24x1xf32>
    %797 = arith.maximumf %795, %796 : vector<24x1xf32>
    %cst_202 = arith.constant dense<0xFF800000> : vector<1xf32>
    %798 = vector.multi_reduction <maximumf>, %797, %cst_202 [0] : vector<24x1xf32> to vector<1xf32>
    %799 = vector.shape_cast %798 : vector<1xf32> to vector<1x1xf32>
    %800 = vector.broadcast %799 : vector<1x1xf32> to vector<24x1xf32>
    %801 = arith.subf %797, %800 : vector<24x1xf32>
    %802 = math.exp %801 : vector<24x1xf32>
    %803 = vector.broadcast %802 : vector<24x1xf32> to vector<24x16xf32>
    %804 = arith.mulf %803, %332 : vector<24x16xf32>
    %805 = tpu.concatenate %804, %802 in 1 : vector<24x16xf32>, vector<24x1xf32> -> vector<24x17xf32>
    %cst_203 = arith.constant dense<0.000000e+00> : vector<2x17xf32>
    %806 = tpu.matmul %568, %805, %cst_203 {dimension_numbers = #tpu.dot_dimension_numbers<[1], [0], [0], [1], [0, 0, 1, 1], [], []>} : vector<2x24xf32>, vector<24x17xf32>, vector<2x17xf32> -> vector<2x17xf32>
    %807 = vector.extract_strided_slice %806 {offsets = [0, 0], sizes = [2, 16], strides = [1, 1]} : vector<2x17xf32> to vector<2x16xf32>
    %808 = vector.extract_strided_slice %806 {offsets = [0, 16], sizes = [2, 1], strides = [1, 1]} : vector<2x17xf32> to vector<2x1xf32>
    %809 = vector.broadcast %808 : vector<2x1xf32> to vector<2x16xf32>
    %810 = arith.divf %807, %809 : vector<2x16xf32>
    %811 = tpu.concatenate %810, %782 in 1 : vector<2x16xf32>, vector<2x16xf32> -> vector<2x32xf32>
    %cst_204 = arith.constant dense<0.000000e+00> : vector<2x64xf32>
    %812 = tpu.matmul %811, %574, %cst_204 {dimension_numbers = #tpu.dot_dimension_numbers<[1], [0], [0], [1], [0, 0, 1, 1], [], []>} : vector<2x32xf32>, vector<32x64xf32>, vector<2x64xf32> -> vector<2x64xf32>
    %813 = vector.extract_strided_slice %22 {offsets = [8, 0], sizes = [2, 64], strides = [1, 1]} : vector<12x64xf32> to vector<2x64xf32>
    %814 = arith.addf %812, %813 : vector<2x64xf32>
    %815 = vector.broadcast %31 : vector<1x64xf32> to vector<2x64xf32>
    %816 = arith.mulf %814, %815 : vector<2x64xf32>
    %817 = arith.negf %816 : vector<2x64xf32>
    %818 = math.exp %817 : vector<2x64xf32>
    %cst_205 = arith.constant 1.000000e+00 : f32
    %819 = vector.broadcast %cst_205 : f32 to vector<2x64xf32>
    %820 = arith.addf %819, %818 : vector<2x64xf32>
    %821 = arith.divf %819, %820 : vector<2x64xf32>
    %822 = vector.extract_strided_slice %821 {offsets = [0, 0], sizes = [2, 16], strides = [1, 1]} : vector<2x64xf32> to vector<2x16xf32>
    %823 = vector.extract_strided_slice %821 {offsets = [0, 16], sizes = [2, 16], strides = [1, 1]} : vector<2x64xf32> to vector<2x16xf32>
    %824 = vector.extract_strided_slice %821 {offsets = [0, 32], sizes = [2, 16], strides = [1, 1]} : vector<2x64xf32> to vector<2x16xf32>
    %cst_206 = arith.constant 2.000000e+00 : f32
    %825 = vector.broadcast %cst_206 : f32 to vector<2x16xf32>
    %826 = arith.mulf %825, %824 : vector<2x16xf32>
    %cst_207 = arith.constant 1.000000e+00 : f32
    %827 = vector.broadcast %cst_207 : f32 to vector<2x16xf32>
    %828 = arith.subf %826, %827 : vector<2x16xf32>
    %829 = vector.extract_strided_slice %821 {offsets = [0, 48], sizes = [2, 16], strides = [1, 1]} : vector<2x64xf32> to vector<2x16xf32>
    %830 = arith.mulf %823, %780 : vector<2x16xf32>
    %831 = arith.mulf %822, %828 : vector<2x16xf32>
    %832 = arith.addf %830, %831 : vector<2x16xf32>
    %833 = math.tanh %832 : vector<2x16xf32>
    %834 = arith.mulf %829, %833 : vector<2x16xf32>
    %c8_208 = arith.constant 8 : index
    %c0_209 = arith.constant 0 : index
    %835 = vector.load %arg7[%c8_208, %c0_209] : memref<12x16xf32, #tpu.memory_space<vmem>>, vector<2x16xf32>
    tpu.vector_store %arg7[%c8_208, %c0_209], %834 {strides = array<i32>} : memref<12x16xf32, #tpu.memory_space<vmem>>, vector<2x16xf32>,
    %cst_210 = arith.constant dense<0.000000e+00> : vector<2x8xf32>
    %836 = tpu.matmul %834, %570, %cst_210 {dimension_numbers = #tpu.dot_dimension_numbers<[1], [0], [0], [1], [0, 0, 1, 1], [], []>} : vector<2x16xf32>, vector<16x8xf32>, vector<2x8xf32> -> vector<2x8xf32>
    %837 = vector.broadcast %571 : vector<1x8xf32> to vector<2x8xf32>
    %838 = arith.addf %836, %837 : vector<2x8xf32>
    %cst_211 = arith.constant dense<0.000000e+00> : vector<24x8xf32>
    %839 = tpu.matmul %569, %838, %cst_211 {dimension_numbers = #tpu.dot_dimension_numbers<[1], [0], [0], [1], [0, 0, 1, 1], [], []>} : vector<24x2xf32>, vector<2x8xf32>, vector<24x8xf32> -> vector<24x8xf32>
    %840 = arith.addf %336, %839 : vector<24x8xf32>
    %841 = math.tanh %840 : vector<24x8xf32>
    %842 = vector.broadcast %572 : vector<1x8xf32> to vector<24x8xf32>
    %843 = arith.mulf %841, %842 : vector<24x8xf32>
    %cst_212 = arith.constant dense<0.000000e+00> : vector<24xf32>
    %844 = vector.multi_reduction <add>, %843, %cst_212 [1] : vector<24x8xf32> to vector<24xf32>
    %845 = vector.shape_cast %844 : vector<24xf32> to vector<24x1xf32>
    %846 = vector.broadcast %573 : vector<1x1xf32> to vector<24x1xf32>
    %847 = arith.addf %845, %846 : vector<24x1xf32>
    %cst_213 = arith.constant 0.000000e+00 : f32
    %848 = vector.broadcast %cst_213 : f32 to vector<24x1xf32>
    %849 = arith.maximumf %847, %848 : vector<24x1xf32>
    %cst_214 = arith.constant dense<0xFF800000> : vector<1xf32>
    %850 = vector.multi_reduction <maximumf>, %849, %cst_214 [0] : vector<24x1xf32> to vector<1xf32>
    %851 = vector.shape_cast %850 : vector<1xf32> to vector<1x1xf32>
    %852 = vector.broadcast %851 : vector<1x1xf32> to vector<24x1xf32>
    %853 = arith.subf %849, %852 : vector<24x1xf32>
    %854 = math.exp %853 : vector<24x1xf32>
    %855 = vector.broadcast %854 : vector<24x1xf32> to vector<24x16xf32>
    %856 = arith.mulf %855, %332 : vector<24x16xf32>
    %857 = tpu.concatenate %856, %854 in 1 : vector<24x16xf32>, vector<24x1xf32> -> vector<24x17xf32>
    %cst_215 = arith.constant dense<0.000000e+00> : vector<2x17xf32>
    %858 = tpu.matmul %568, %857, %cst_215 {dimension_numbers = #tpu.dot_dimension_numbers<[1], [0], [0], [1], [0, 0, 1, 1], [], []>} : vector<2x24xf32>, vector<24x17xf32>, vector<2x17xf32> -> vector<2x17xf32>
    %859 = vector.extract_strided_slice %858 {offsets = [0, 0], sizes = [2, 16], strides = [1, 1]} : vector<2x17xf32> to vector<2x16xf32>
    %860 = vector.extract_strided_slice %858 {offsets = [0, 16], sizes = [2, 1], strides = [1, 1]} : vector<2x17xf32> to vector<2x1xf32>
    %861 = vector.broadcast %860 : vector<2x1xf32> to vector<2x16xf32>
    %862 = arith.divf %859, %861 : vector<2x16xf32>
    %863 = tpu.concatenate %862, %834 in 1 : vector<2x16xf32>, vector<2x16xf32> -> vector<2x32xf32>
    %cst_216 = arith.constant dense<0.000000e+00> : vector<2x64xf32>
    %864 = tpu.matmul %863, %574, %cst_216 {dimension_numbers = #tpu.dot_dimension_numbers<[1], [0], [0], [1], [0, 0, 1, 1], [], []>} : vector<2x32xf32>, vector<32x64xf32>, vector<2x64xf32> -> vector<2x64xf32>
    %865 = vector.extract_strided_slice %22 {offsets = [10, 0], sizes = [2, 64], strides = [1, 1]} : vector<12x64xf32> to vector<2x64xf32>
    %866 = arith.addf %864, %865 : vector<2x64xf32>
    %867 = vector.broadcast %31 : vector<1x64xf32> to vector<2x64xf32>
    %868 = arith.mulf %866, %867 : vector<2x64xf32>
    %869 = arith.negf %868 : vector<2x64xf32>
    %870 = math.exp %869 : vector<2x64xf32>
    %cst_217 = arith.constant 1.000000e+00 : f32
    %871 = vector.broadcast %cst_217 : f32 to vector<2x64xf32>
    %872 = arith.addf %871, %870 : vector<2x64xf32>
    %873 = arith.divf %871, %872 : vector<2x64xf32>
    %874 = vector.extract_strided_slice %873 {offsets = [0, 0], sizes = [2, 16], strides = [1, 1]} : vector<2x64xf32> to vector<2x16xf32>
    %875 = vector.extract_strided_slice %873 {offsets = [0, 16], sizes = [2, 16], strides = [1, 1]} : vector<2x64xf32> to vector<2x16xf32>
    %876 = vector.extract_strided_slice %873 {offsets = [0, 32], sizes = [2, 16], strides = [1, 1]} : vector<2x64xf32> to vector<2x16xf32>
    %cst_218 = arith.constant 2.000000e+00 : f32
    %877 = vector.broadcast %cst_218 : f32 to vector<2x16xf32>
    %878 = arith.mulf %877, %876 : vector<2x16xf32>
    %cst_219 = arith.constant 1.000000e+00 : f32
    %879 = vector.broadcast %cst_219 : f32 to vector<2x16xf32>
    %880 = arith.subf %878, %879 : vector<2x16xf32>
    %881 = vector.extract_strided_slice %873 {offsets = [0, 48], sizes = [2, 16], strides = [1, 1]} : vector<2x64xf32> to vector<2x16xf32>
    %882 = arith.mulf %875, %832 : vector<2x16xf32>
    %883 = arith.mulf %874, %880 : vector<2x16xf32>
    %884 = arith.addf %882, %883 : vector<2x16xf32>
    %885 = math.tanh %884 : vector<2x16xf32>
    %886 = arith.mulf %881, %885 : vector<2x16xf32>
    %c10_220 = arith.constant 10 : index
    %c0_221 = arith.constant 0 : index
    %887 = vector.load %arg7[%c10_220, %c0_221] : memref<12x16xf32, #tpu.memory_space<vmem>>, vector<2x16xf32>
    tpu.vector_store %arg7[%c10_220, %c0_221], %886 {strides = array<i32>} : memref<12x16xf32, #tpu.memory_space<vmem>>, vector<2x16xf32>,
    %c0_222 = arith.constant 0 : index
    %c0_223 = arith.constant 0 : index
    %888 = vector.load %arg7[%c0_222, %c0_223] : memref<12x16xf32, #tpu.memory_space<vmem>>, vector<12x16xf32>
    %c288 = arith.constant 288 : index
    %c0_224 = arith.constant 0 : index
    %889 = vector.load %arg3[%c288, %c0_224] : memref<336x128xf32, #tpu.memory_space<vmem>>, vector<16x16xf32>
    %cst_225 = arith.constant dense<0.000000e+00> : vector<12x16xf32>
    %890 = tpu.matmul %888, %889, %cst_225 {dimension_numbers = #tpu.dot_dimension_numbers<[1], [0], [0], [1], [0, 0, 1, 1], [], []>} : vector<12x16xf32>, vector<16x16xf32>, vector<12x16xf32> -> vector<12x16xf32>
    %c304 = arith.constant 304 : index
    %c0_226 = arith.constant 0 : index
    %891 = vector.load %arg3[%c304, %c0_226] : memref<336x128xf32, #tpu.memory_space<vmem>>, vector<1x16xf32>
    %892 = vector.broadcast %891 : vector<1x16xf32> to vector<12x16xf32>
    %893 = arith.addf %890, %892 : vector<12x16xf32>
    %c312 = arith.constant 312 : index
    %c0_227 = arith.constant 0 : index
    %894 = vector.load %arg3[%c312, %c0_227] : memref<336x128xf32, #tpu.memory_space<vmem>>, vector<16x4xf32>
    %cst_228 = arith.constant dense<0.000000e+00> : vector<12x4xf32>
    %895 = tpu.matmul %893, %894, %cst_228 {dimension_numbers = #tpu.dot_dimension_numbers<[1], [0], [0], [1], [0, 0, 1, 1], [], []>} : vector<12x16xf32>, vector<16x4xf32>, vector<12x4xf32> -> vector<12x4xf32>
    %c328 = arith.constant 328 : index
    %c0_229 = arith.constant 0 : index
    %896 = vector.load %arg3[%c328, %c0_229] : memref<336x128xf32, #tpu.memory_space<vmem>>, vector<1x4xf32>
    %897 = vector.broadcast %896 : vector<1x4xf32> to vector<12x4xf32>
    %898 = arith.addf %895, %897 : vector<12x4xf32>
    %c0_230 = arith.constant 0 : index
    %c0_231 = arith.constant 0 : index
    %899 = vector.load %arg4[%c0_230, %c0_231] : memref<12x4xf32, #tpu.memory_space<vmem>>, vector<12x4xf32>
    tpu.vector_store %arg4[%c0_230, %c0_231], %898 {strides = array<i32>} : memref<12x4xf32, #tpu.memory_space<vmem>>, vector<12x4xf32>,
    %c0_232 = arith.constant 0 : index
    %c0_233 = arith.constant 0 : index
    %900 = vector.load %arg5[%c0_232, %c0_233] : memref<2x3xf32, #tpu.memory_space<vmem>>, vector<2x3xf32>
    tpu.vector_store %arg5[%c0_232, %c0_233], %567 {strides = array<i32>} : memref<2x3xf32, #tpu.memory_space<vmem>>, vector<2x3xf32>,
    return
  }
}

</mosaic_0001>

<bundles_post_ra>
// kernel: tpu_custom_call.1
= control target key start
LH: loop header
LB: loop body
LE: loop exit
PB: predicated region body
PF: predicated region fallthrough
CT: control target
= control target key end

     0   :  { %11 = vsyncpa [#allocation5], 0  ;;  %s5111_s0 = inlined_call_operand.vmem [shape: f32[24,4], index: 0, kind: input, shape index: {}]   ;;  %s5112_s1 = inlined_call_operand.vmem [shape: f32[12,4], index: 1, kind: input, shape index: {}]   ;;  %s5113_s2 = inlined_call_operand.vmem [shape: f32[8,3], index: 2, kind: input, shape index: {}]   ;;  %s5114_s3 = inlined_call_operand.hbm [shape: f32[336,128], index: 3, kind: input, shape index: {}]   ;;  %s5115_s4 = inlined_call_operand.vmem [shape: f32[12,4], index: 4, kind: output, shape index: {0}]   ;;  %s5116_s5 = inlined_call_operand.hbm [shape: f32[2,3], index: 5, kind: output, shape index: {1}]  }
   0x1   :  { %12 = vsyncpa [#allocation6], 0  ;;  %s23_s20 = sshll.u32 %s5114_s3, 4  ;;  %s4168_s21 = smov [#allocation4]   ;;  %s24_s20 = int_to_ptr.hbm [resolvable:$true] %s23_s20 }
   0x2   :  { %s25_s22 = sshll.u32 %s4168_s21, 4  ;;  %s4169_s23 = smov 128   ;;  %s26_s22 = int_to_ptr.vmem [resolvable:$true] %s25_s22 }
   0x3   :  { %s4170_s24 = smov 8  }
   0x4   :  { %31 = dma.hbm_to_vmem [thread:$0]  %s24_s20, 5376, %s26_s22, [#allocation5], %s4169_s23, %s4169_s23, %s4170_s24  }
   0x5   :  { %4164 = dma.done.wait [#allocation5], 5376  }
   0x6   :  { %4165 = vsyncadd [#allocation5], 4294961920  ;;  %v42_v0 = vlaneseq  ;;  %vm62_vm1 = vcmask 1043456   ;;  %vm52_vm2 = vcmask 31744   ;;  %v4229_v3 = vld [vmem:[#allocation4 + $0x10] sm:$0xff]  ;;  %v4231_v4 = vld [vmem:[#allocation4 + $0x8] sm:$0xff] }
   0x7   :  { %v49_v5 = vld [vmem:[#allocation4] sm:$0xf]  ;;  %182 = vmatpush.msra.mxu3 %v4229_v3  ;;  %v36_v6 = vld [vmem:[%s5111_s0] sm:$0xff]  ;;  %v4171_v7 = vmov 0.0   ;;  %v4172_v11 = vmov 1.0   ;;  %s4173_s26 = smov 96  }
   0x8   :  { %v4223_v1 = vshrl.u32 %v42_v0, 7  ;;  %v4225_v2 = vand.u32 127, %v42_v0  ;;  %3625 = vmatpush.msk.msra.mxu0 %vm62_vm1, %v49_v5  ;;  %v4247_v8 = vld [vmem:[#allocation4 + $0x18] ss:$0 sm:$0xff]  ;;  %s4174_s27 = smov 16   ;;  %s4175_s28 = smov 32  }
   0x9   :  { %3626 = vmatmul.msk.f32.vlgmr.msra.gmra.mxu0 %vm52_vm2, %v36_v6  ;;  %183 = vmatpush.msra.mxu3 %v4231_v4  ;;  %v92_v37 = vld [vmem:[#allocation4 + $0xb0] sm:$0x7]  ;;  %vm99_vm10 = vcmask 1042432   ;;  %v41_v38 = vld [vmem:[%s5113_s2] sm:$0xff]  ;;  %vm95_vm11 = vcmask 23552   ;;  %s4176_s6 = smov 80  }
   0xa   :  { %vm46_vm0 = vcmp.eq.s32.totalorder %v4223_v1, %v4225_v2  ;;  %925 = vmatpush.msrb.mxu0 %v4229_v3  ;;  %184 = vmatmul.f32.vlgmr.msra.gmra.mxu3 %v4171_v7  ;;  %vm158_vm3 = vcmp.ge.s32.totalorder %v4225_v2, 32  ;;  %vm159_vm4 = vcmp.lt.s32.totalorder %v4225_v2, 48  ;;  %vm232_vm12 = vcmask 123904   ;;  %s4179_s13 = smov 4   ;;  %s4181_s14 = smov 6  }
   0xb   :  { %327 = vmatpush.msrb.mxu3 %v4229_v3  ;;  %vm160_vm5 = vmand %vm158_vm3, %vm159_vm4  ;;  %3629 = vmatpush.msk.msra.mxu1 %vm99_vm10, %v92_v37  ;;  %vm164_vm13 = vcmask 130048   ;;  %s4182_s15 = smov 10   ;;  %s4183_s16 = smov 12  }
   0xc   :  { %926 = vmatpush.msrb.mxu0 %v4231_v4  ;;  %v4254_v12 = vsel %vm160_vm5, 2.0, %v4172_v11  ;;  %3630 = vmatmul.msk.f32.vlgmr.msra.gmra.mxu1 %vm95_vm11, %v41_v38  ;;  %s4184_s17 = smov 20   ;;  %s4185_s18 = smov 14  }
   0xd   :  { %328 = vmatpush.msrb.mxu3 %v4231_v4  ;;  %250 = vmatpush.msrb.mxu1 %v4229_v3  ;;  %s4186_s19 = smov 22   ;;  %s4187_s20 = smov 18  }
   0xe   :  { %s4188_s23 = smov [#allocation7]  }
   0xf   :  { %551 = vmatpush.msra.mxu3 %v4229_v3  ;;  %251 = vmatpush.msrb.mxu1 %v4231_v4 }
  0x11   :  { %552 = vmatpush.msra.mxu3 %v4231_v4  ;;  %404 = vmatpush.msra.mxu1 %v4229_v3 }
  0x13   :  { %405 = vmatpush.msra.mxu1 %v4231_v4 }
  0x86   :  { %v83_v9 = vpop.f32.mrf.mxu0 }
  0x87   :  { %v4252_v10 = vadd.f32 %v4247_v8, %v83_v9 }
  0x89   :  { %v4273_v42 = vpop.f32.mrf.mxu1 }
  0x8d   :  { %v185_v13 = vpop.f32.mrf.mxu3 }
  0x8e   :  { %v188_v14 = vadd.f32 %v185_v13, %v4252_v10 }
  0x90   :  { %v189_v15 = vmul.f32 %v188_v14, %v4254_v12 }
  0x92   :  { %v3634_v16 = vmul.f32 -1.442695, %v189_v15 }
  0x94   :  { %3852 = vpow2.f32 %v3634_v16 }
  0x9a   :  { %v3853_v17 = vpop.eup %3852 }
  0x9b   :  { %v193_v18 = vadd.f32 1.0, %v3853_v17 }
  0x9d   :  { %3854 = vrcp.f32 %v193_v18  ;;  %v205_v22 = vand.u32 2147483648, %v193_v18  ;;  %v203_v24 = vand.u32 2147483647, %v193_v18  ;;  %vm199_vm7 = vweird.f32 %v193_v18 }
  0x9f   :  { %v206_v26 = vor.u32 1.1754944e-38, %v205_v22  ;;  %vm204_vm9 = vcmp.eq.f32.partialorder %v203_v24, 8.507059e+37 }
  0xa3   :  { %v3855_v19 = vpop.eup %3854 }
  0xa4   :  { %v195_v20 = vmul.f32 %v3855_v19, %v193_v18  ;;  %vm200_vm6 = vweird.f32 %v3855_v19 }
  0xa5   :  { %vm201_vm8 = vmor %vm199_vm7, %vm200_vm6 }
  0xa6   :  { %v196_v21 = vsub.f32 1.0, %v195_v20 }
  0xa8   :  { %v197_v23 = vmul.f32 %v3855_v19, %v196_v21 }
  0xaa   :  { %v198_v25 = vadd.f32 %v3855_v19, %v197_v23 }
  0xac   :  { %v202_v27 = vsel %vm201_vm8, %v3855_v19, %v198_v25 }
  0xad   :  { %v207_v28 = vsel %vm204_vm9, %v206_v26, %v202_v27 }
  0xae   :  { %v209_v29 = vmul.f32 2.0, %v207_v28  ;;  %v211_v33 = vmul.f32 0.0, %v207_v28 }
  0xb0   :  { %v3635_v30 = vadd.f32 -1.0, %v209_v29 }
  0xb2   :  { %213 = vrot.lane.b32.xlu0 %v3635_v30, %s4173_s26 }
 0x124   :  { %v214_v31 = vpop.permute.xlu0 %213 }
 0x125   :  { %v216_v32 = vmul.f32 %v214_v31, %v207_v28 }
 0x127   :  { %218 = vrot.lane.b32.xlu0 %v216_v32, %s4174_s27 }
 0x199   :  { %v219_v34 = vpop.permute.xlu0 %218 }
 0x19a   :  { %v221_v35 = vadd.f32 %v219_v34, %v211_v33 }
 0x19c   :  { %3856 = vtanh.f32 %v221_v35  ;;  %v283_v0 = vrot.slane %v221_v35, 6 }
 0x1a2   :  { %v3857_v36 = vpop.eup %3856 }
 0x1a3   :  { %224 = vrot.lane.b32.xlu1 %v3857_v36, %s4175_s28 }
 0x215   :  { %v225_v39 = vpop.permute.xlu1 %224 }
 0x216   :  { %v227_v40 = vmul.f32 %v225_v39, %v207_v28 }
 0x218   :  { %229 = vrot.lane.b32.xlu1 %v227_v40, %s4176_s6 }
 0x28a   :  { %v230_v41 = vpop.permute.xlu1 %229 }
 0x28b   :  { %233 = vst.msk [vmem:[#allocation2] sm:$0x3] %vm232_vm12, %v230_v41  ;;  %3636 = vmatmul.msk.f32.vlgmr.msrb.gmra.mxu1 %vm164_vm13, %v230_v41 }
 0x28c   :  { %703 = vmatpush.msrb.mxu1 %v4229_v3 }
 0x28e   :  { %704 = vmatpush.msrb.mxu1 %v4231_v4 }
 0x308   :  { %v253_v43 = vpop.f32.mrf.mxu1 }
 0x309   :  { %v257_v44 = vrot.slane %v253_v43, 6 }
 0x30b   :  { %v259_v45 = vadd.f32 %v257_v44, %v4252_v10 }
 0x30d   :  { %v260_v46 = vmul.f32 %v259_v45, %v4254_v12 }
 0x30f   :  { %v3637_v47 = vmul.f32 -1.442695, %v260_v46 }
 0x311   :  { %3858 = vpow2.f32 %v3637_v47 }
 0x317   :  { %v3859_v48 = vpop.eup %3858 }
 0x318   :  { %v264_v49 = vadd.f32 1.0, %v3859_v48 }
 0x31a   :  { %3860 = vrcp.f32 %v264_v49  ;;  %v276_v53 = vand.u32 2147483648, %v264_v49  ;;  %v274_v55 = vand.u32 2147483647, %v264_v49  ;;  %vm270_vm15 = vweird.f32 %v264_v49 }
 0x31c   :  { %v277_v57 = vor.u32 1.1754944e-38, %v276_v53  ;;  %vm275_vm4 = vcmp.eq.f32.partialorder %v274_v55, 8.507059e+37 }
 0x320   :  { %v3861_v50 = vpop.eup %3860 }
 0x321   :  { %v266_v51 = vmul.f32 %v3861_v50, %v264_v49  ;;  %vm271_vm14 = vweird.f32 %v3861_v50 }
 0x322   :  { %vm272_vm3 = vmor %vm270_vm15, %vm271_vm14 }
 0x323   :  { %v267_v52 = vsub.f32 1.0, %v266_v51 }
 0x325   :  { %v268_v54 = vmul.f32 %v3861_v50, %v267_v52 }
 0x327   :  { %v269_v56 = vadd.f32 %v3861_v50, %v268_v54 }
 0x329   :  { %v273_v58 = vsel %vm272_vm3, %v3861_v50, %v269_v56 }
 0x32a   :  { %v278_v59 = vsel %vm275_vm4, %v277_v57, %v273_v58 }
 0x32b   :  { %v280_v60 = vmul.f32 2.0, %v278_v59  ;;  %v285_v5 = vmul.f32 %v283_v0, %v278_v59 }
 0x32d   :  { %v3638_v61 = vadd.f32 -1.0, %v280_v60 }
 0x32f   :  { %287 = vrot.lane.b32.xlu2 %v3638_v61, %s4173_s26 }
 0x389   :  { %v288_v62 = vpop.permute.xlu2 %287 }
 0x38a   :  { %v290_v63 = vmul.f32 %v288_v62, %v278_v59 }
 0x38c   :  { %292 = vrot.lane.b32.xlu2 %v290_v63, %s4174_s27 }
 0x3e6   :  { %v293_v6 = vpop.permute.xlu2 %292 }
 0x3e7   :  { %v295_v9 = vadd.f32 %v293_v6, %v285_v5 }
 0x3e9   :  { %3862 = vtanh.f32 %v295_v9  ;;  %v360_v38 = vrot.slane %v295_v9, 6 }
 0x3ef   :  { %v3863_v11 = vpop.eup %3862 }
 0x3f0   :  { %298 = vrot.lane.b32.xlu0 %v3863_v11, %s4175_s28 }
 0x462   :  { %v299_v13 = vpop.permute.xlu0 %298 }
 0x463   :  { %v4280_v14 = vmul.f32 %v299_v13, %v278_v59 }
 0x465   :  { %v308_v15 = vrot.slane %v4280_v14, 2 }
 0x467   :  { %309 = vrot.lane.b32.xlu1 %v308_v15, %s4176_s6 }
 0x4d9   :  { %v310_v16 = vpop.permute.xlu1 %309 }
 0x4da   :  { %3639 = vmatmul.msk.f32.vlgmr.msrb.gmra.mxu3 %vm164_vm13, %v310_v16 }
 0x4db   :  { %627 = vmatpush.msrb.mxu3 %v4229_v3 }
 0x4dd   :  { %628 = vmatpush.msrb.mxu3 %v4231_v4 }
 0x55d   :  { %v330_v17 = vpop.f32.mrf.mxu3 }
 0x55e   :  { %v334_v18 = vrot.slane %v330_v17, 4 }
 0x560   :  { %v336_v19 = vadd.f32 %v334_v18, %v4252_v10  ;;  %v123_v18 = vld [vmem:[#allocation4 + $0xe0] sm:$0xf] }
 0x561   :  { %3631 = vmatpush.msk.msra.mxu2 %vm62_vm1, %v123_v18 }
 0x562   :  { %v337_v20 = vmul.f32 %v336_v19, %v4254_v12  ;;  %v39_v19 = vld [vmem:[%s5112_s1] sm:$0xff] }
 0x563   :  { %3632 = vmatmul.msk.f32.vlgmr.msra.gmra.mxu2 %vm52_vm2, %v39_v19 }
 0x564   :  { %v3640_v21 = vmul.f32 -1.442695, %v337_v20  ;;  %481 = vmatpush.msrb.mxu2 %v4229_v3  ;;  %v40_v20 = vld [vmem:[%s5112_s1 + $0x8] sm:$0xf] }
 0x566   :  { %3864 = vpow2.f32 %v3640_v21  ;;  %482 = vmatpush.msrb.mxu2 %v4231_v4 }
 0x568   :  { %779 = vmatpush.msra.mxu2 %v4229_v3 }
 0x56a   :  { %780 = vmatpush.msra.mxu2 %v4231_v4 }
 0x56b   :  { %3633 = vmatmul.msk.f32.gmra.mxu2 %vm52_vm2, %v40_v20 }
 0x56c   :  { %v3865_v22 = vpop.eup %3864 }
 0x56d   :  { %v341_v23 = vadd.f32 1.0, %v3865_v22 }
 0x56f   :  { %3866 = vrcp.f32 %v341_v23  ;;  %v353_v27 = vand.u32 2147483648, %v341_v23  ;;  %v351_v29 = vand.u32 2147483647, %v341_v23  ;;  %vm347_vm6 = vweird.f32 %v341_v23 }
 0x571   :  { %v354_v31 = vor.u32 1.1754944e-38, %v353_v27  ;;  %vm352_vm8 = vcmp.eq.f32.partialorder %v351_v29, 8.507059e+37 }
 0x575   :  { %v3867_v24 = vpop.eup %3866 }
 0x576   :  { %v343_v25 = vmul.f32 %v3867_v24, %v341_v23  ;;  %vm348_vm5 = vweird.f32 %v3867_v24 }
 0x577   :  { %vm349_vm7 = vmor %vm347_vm6, %vm348_vm5 }
 0x578   :  { %v344_v26 = vsub.f32 1.0, %v343_v25 }
 0x57a   :  { %v345_v28 = vmul.f32 %v3867_v24, %v344_v26 }
 0x57c   :  { %v346_v30 = vadd.f32 %v3867_v24, %v345_v28 }
 0x57e   :  { %v350_v32 = vsel %vm349_vm7, %v3867_v24, %v346_v30  ;;  %v37_v24 = vld [vmem:[%s5111_s0 + $0x8] sm:$0xff] }
 0x57f   :  { %v355_v33 = vsel %vm352_vm8, %v354_v31, %v350_v32  ;;  %3627 = vmatmul.msk.f32.gmra.mxu0 %vm52_vm2, %v37_v24 }
 0x580   :  { %v357_v34 = vmul.f32 2.0, %v355_v33  ;;  %v362_v39 = vmul.f32 %v360_v38, %v355_v33 }
 0x582   :  { %v3641_v35 = vadd.f32 -1.0, %v357_v34 }
 0x584   :  { %364 = vrot.lane.b32.xlu2 %v3641_v35, %s4173_s26 }
 0x5de   :  { %v365_v36 = vpop.permute.xlu2 %364 }
 0x5df   :  { %v367_v37 = vmul.f32 %v365_v36, %v355_v33 }
 0x5e1   :  { %369 = vrot.lane.b32.xlu0 %v367_v37, %s4174_s27 }
 0x5e6   :  { %v4326_v26 = vpop.f32.mrf.mxu2 }
 0x5ee   :  { %v4328_v27 = vpop.f32.mrf.mxu2 }
 0x5fc   :  { %v86_v28 = vpop.f32.mrf.mxu0 }
 0x5fd   :  { %v4331_v29 = vadd.f32 %v4247_v8, %v86_v28 }
 0x653   :  { %v370_v40 = vpop.permute.xlu0 %369 }
 0x654   :  { %v372_v41 = vadd.f32 %v370_v40, %v362_v39 }
 0x656   :  { %3868 = vtanh.f32 %v372_v41  ;;  %v437_v11 = vrot.slane %v372_v41, 6 }
 0x65c   :  { %v3869_v43 = vpop.eup %3868 }
 0x65d   :  { %375 = vrot.lane.b32.xlu1 %v3869_v43, %s4175_s28 }
 0x6cf   :  { %v376_v44 = vpop.permute.xlu1 %375 }
 0x6d0   :  { %v4292_v45 = vmul.f32 %v376_v44, %v355_v33 }
 0x6d2   :  { %v385_v46 = vrot.slane %v4292_v45, 4 }
 0x6d4   :  { %386 = vrot.lane.b32.xlu2 %v385_v46, %s4176_s6 }
 0x72e   :  { %v387_v47 = vpop.permute.xlu2 %386 }
 0x72f   :  { %3642 = vmatmul.msk.f32.vlgmr.msra.gmra.mxu1 %vm164_vm13, %v387_v47 }
 0x730   :  { %1001 = vmatpush.msra.mxu1 %v4229_v3 }
 0x732   :  { %1002 = vmatpush.msra.mxu1 %v4231_v4 }
 0x7ac   :  { %v407_v48 = vpop.f32.mrf.mxu1 }
 0x7ad   :  { %v411_v49 = vrot.slane %v407_v48, 2 }
 0x7af   :  { %v413_v50 = vadd.f32 %v411_v49, %v4252_v10 }
 0x7b1   :  { %v414_v51 = vmul.f32 %v413_v50, %v4254_v12 }
 0x7b3   :  { %v3643_v52 = vmul.f32 -1.442695, %v414_v51 }
 0x7b5   :  { %3870 = vpow2.f32 %v3643_v52 }
 0x7bb   :  { %v3871_v53 = vpop.eup %3870 }
 0x7bc   :  { %v418_v54 = vadd.f32 1.0, %v3871_v53 }
 0x7be   :  { %3872 = vrcp.f32 %v418_v54  ;;  %v430_v58 = vand.u32 2147483648, %v418_v54  ;;  %v428_v60 = vand.u32 2147483647, %v418_v54  ;;  %vm424_vm10 = vweird.f32 %v418_v54 }
 0x7c0   :  { %v431_v62 = vor.u32 1.1754944e-38, %v430_v58  ;;  %vm429_vm14 = vcmp.eq.f32.partialorder %v428_v60, 8.507059e+37 }
 0x7c4   :  { %v3873_v55 = vpop.eup %3872 }
 0x7c5   :  { %v420_v56 = vmul.f32 %v3873_v55, %v418_v54  ;;  %vm425_vm9 = vweird.f32 %v3873_v55 }
 0x7c6   :  { %vm426_vm11 = vmor %vm424_vm10, %vm425_vm9 }
 0x7c7   :  { %v421_v57 = vsub.f32 1.0, %v420_v56 }
 0x7c9   :  { %v422_v59 = vmul.f32 %v3873_v55, %v421_v57 }
 0x7cb   :  { %v423_v61 = vadd.f32 %v3873_v55, %v422_v59 }
 0x7cd   :  { %v427_v63 = vsel %vm426_vm11, %v3873_v55, %v423_v61 }
 0x7ce   :  { %v432_v10 = vsel %vm429_vm14, %v431_v62, %v427_v63 }
 0x7cf   :  { %v434_v0 = vmul.f32 2.0, %v432_v10  ;;  %v439_v13 = vmul.f32 %v437_v11, %v432_v10 }
 0x7d1   :  { %v3644_v5 = vadd.f32 -1.0, %v434_v0 }
 0x7d3   :  { %441 = vrot.lane.b32.xlu0 %v3644_v5, %s4173_s26 }
 0x845   :  { %v442_v6 = vpop.permute.xlu0 %441 }
 0x846   :  { %v444_v9 = vmul.f32 %v442_v6, %v432_v10 }
 0x848   :  { %446 = vrot.lane.b32.xlu1 %v444_v9, %s4174_s27 }
 0x8ba   :  { %v447_v15 = vpop.permute.xlu1 %446 }
 0x8bb   :  { %v449_v16 = vadd.f32 %v447_v15, %v439_v13 }
 0x8bd   :  { %3874 = vtanh.f32 %v449_v16  ;;  %v511_v52 = vrot.slane %v449_v16, 6 }
 0x8c3   :  { %v3875_v17 = vpop.eup %3874 }
 0x8c4   :  { %452 = vrot.lane.b32.xlu2 %v3875_v17, %s4175_s28 }
 0x91e   :  { %v453_v21 = vpop.permute.xlu2 %452 }
 0x91f   :  { %v4317_v22 = vmul.f32 %v453_v21, %v432_v10 }
 0x921   :  { %v462_v23 = vrot.slane %v4317_v22, 6 }
 0x923   :  { %463 = vrot.lane.b32.xlu0 %v462_v23, %s4176_s6 }
 0x995   :  { %v464_v25 = vpop.permute.xlu0 %463 }
 0x996   :  { %3645 = vmatmul.msk.f32.vlgmr.msrb.gmra.mxu2 %vm164_vm13, %v464_v25 }
 0xa19   :  { %v484_v30 = vpop.f32.mrf.mxu2 }
 0xa1a   :  { %v487_v31 = vadd.f32 %v484_v30, %v4331_v29 }
 0xa1c   :  { %v488_v32 = vmul.f32 %v487_v31, %v4254_v12 }
 0xa1e   :  { %v3646_v33 = vmul.f32 -1.442695, %v488_v32 }
 0xa20   :  { %3876 = vpow2.f32 %v3646_v33 }
 0xa26   :  { %v3877_v34 = vpop.eup %3876 }
 0xa27   :  { %v492_v35 = vadd.f32 1.0, %v3877_v34 }
 0xa29   :  { %3878 = vrcp.f32 %v492_v35  ;;  %v504_v39 = vand.u32 2147483648, %v492_v35  ;;  %v502_v41 = vand.u32 2147483647, %v492_v35  ;;  %vm498_vm3 = vweird.f32 %v492_v35 }
 0xa2b   :  { %v505_v44 = vor.u32 1.1754944e-38, %v504_v39  ;;  %vm503_vm5 = vcmp.eq.f32.partialorder %v502_v41, 8.507059e+37 }
 0xa2f   :  { %v3879_v36 = vpop.eup %3878 }
 0xa30   :  { %v494_v37 = vmul.f32 %v3879_v36, %v492_v35  ;;  %vm499_vm15 = vweird.f32 %v3879_v36 }
 0xa31   :  { %vm500_vm4 = vmor %vm498_vm3, %vm499_vm15 }
 0xa32   :  { %v495_v38 = vsub.f32 1.0, %v494_v37 }
 0xa34   :  { %v496_v40 = vmul.f32 %v3879_v36, %v495_v38 }
 0xa36   :  { %v497_v43 = vadd.f32 %v3879_v36, %v496_v40 }
 0xa38   :  { %v501_v46 = vsel %vm500_vm4, %v3879_v36, %v497_v43 }
 0xa39   :  { %v506_v47 = vsel %vm503_vm5, %v505_v44, %v501_v46 }
 0xa3a   :  { %v508_v48 = vmul.f32 2.0, %v506_v47  ;;  %v513_v53 = vmul.f32 %v511_v52, %v506_v47 }
 0xa3c   :  { %v3647_v49 = vadd.f32 -1.0, %v508_v48 }
 0xa3e   :  { %515 = vrot.lane.b32.xlu1 %v3647_v49, %s4173_s26 }
 0xab0   :  { %v516_v50 = vpop.permute.xlu1 %515 }
 0xab1   :  { %v518_v51 = vmul.f32 %v516_v50, %v506_v47 }
 0xab3   :  { %520 = vrot.lane.b32.xlu2 %v518_v51, %s4174_s27 }
 0xb0d   :  { %v521_v54 = vpop.permute.xlu2 %520 }
 0xb0e   :  { %v523_v55 = vadd.f32 %v521_v54, %v513_v53 }
 0xb10   :  { %3880 = vtanh.f32 %v523_v55  ;;  %v584_v24 = vrot.slane %v523_v55, 6 }
 0xb16   :  { %v3881_v56 = vpop.eup %3880 }
 0xb17   :  { %526 = vrot.lane.b32.xlu0 %v3881_v56, %s4175_s28 }
 0xb89   :  { %v527_v57 = vpop.permute.xlu0 %526 }
 0xb8a   :  { %v529_v58 = vmul.f32 %v527_v57, %v506_v47 }
 0xb8c   :  { %531 = vrot.lane.b32.xlu1 %v529_v58, %s4176_s6 }
 0xbfe   :  { %v532_v59 = vpop.permute.xlu1 %531 }
 0xbff   :  { %534 = vst.msk [vmem:[#allocation2 + $0x8] sm:$0x3] %vm232_vm12, %v532_v59  ;;  %3648 = vmatmul.msk.f32.vlgmr.msra.gmra.mxu3 %vm164_vm13, %v532_v59 }
 0xc00   :  { %849 = vmatpush.msra.mxu3 %v4229_v3 }
 0xc02   :  { %850 = vmatpush.msra.mxu3 %v4231_v4 }
 0xc82   :  { %v554_v60 = vpop.f32.mrf.mxu3 }
 0xc83   :  { %v558_v61 = vrot.slane %v554_v60, 6 }
 0xc85   :  { %v560_v62 = vadd.f32 %v558_v61, %v4331_v29 }
 0xc87   :  { %v561_v63 = vmul.f32 %v560_v62, %v4254_v12 }
 0xc89   :  { %v3649_v10 = vmul.f32 -1.442695, %v561_v63 }
 0xc8b   :  { %3882 = vpow2.f32 %v3649_v10 }
 0xc91   :  { %v3883_v0 = vpop.eup %3882 }
 0xc92   :  { %v565_v5 = vadd.f32 1.0, %v3883_v0 }
 0xc94   :  { %3884 = vrcp.f32 %v565_v5  ;;  %v577_v13 = vand.u32 2147483648, %v565_v5  ;;  %v575_v3 = vand.u32 2147483647, %v565_v5  ;;  %vm571_vm7 = vweird.f32 %v565_v5 }
 0xc96   :  { %v578_v4 = vor.u32 1.1754944e-38, %v577_v13  ;;  %vm576_vm9 = vcmp.eq.f32.partialorder %v575_v3, 8.507059e+37 }
 0xc9a   :  { %v3885_v6 = vpop.eup %3884 }
 0xc9b   :  { %v567_v9 = vmul.f32 %v3885_v6, %v565_v5  ;;  %vm572_vm6 = vweird.f32 %v3885_v6 }
 0xc9c   :  { %vm573_vm8 = vmor %vm571_vm7, %vm572_vm6 }
 0xc9d   :  { %v568_v11 = vsub.f32 1.0, %v567_v9 }
 0xc9f   :  { %v569_v15 = vmul.f32 %v3885_v6, %v568_v11 }
 0xca1   :  { %v570_v16 = vadd.f32 %v3885_v6, %v569_v15 }
 0xca3   :  { %v574_v17 = vsel %vm573_vm8, %v3885_v6, %v570_v16 }
 0xca4   :  { %v579_v18 = vsel %vm576_vm9, %v578_v4, %v574_v17 }
 0xca5   :  { %v581_v19 = vmul.f32 2.0, %v579_v18  ;;  %v586_v25 = vmul.f32 %v584_v24, %v579_v18 }
 0xca7   :  { %v3650_v20 = vadd.f32 -1.0, %v581_v19 }
 0xca9   :  { %588 = vrot.lane.b32.xlu2 %v3650_v20, %s4173_s26 }
 0xd03   :  { %v589_v21 = vpop.permute.xlu2 %588 }
 0xd04   :  { %v591_v23 = vmul.f32 %v589_v21, %v579_v18 }
 0xd06   :  { %593 = vrot.lane.b32.xlu0 %v591_v23, %s4174_s27 }
 0xd78   :  { %v594_v28 = vpop.permute.xlu0 %593 }
 0xd79   :  { %v596_v30 = vadd.f32 %v594_v28, %v586_v25 }
 0xd7b   :  { %3886 = vtanh.f32 %v596_v30  ;;  %v660_v59 = vrot.slane %v596_v30, 6 }
 0xd81   :  { %v3887_v31 = vpop.eup %3886 }
 0xd82   :  { %599 = vrot.lane.b32.xlu1 %v3887_v31, %s4175_s28 }
 0xdf4   :  { %v600_v32 = vpop.permute.xlu1 %599 }
 0xdf5   :  { %v4348_v33 = vmul.f32 %v600_v32, %v579_v18 }
 0xdf7   :  { %v608_v34 = vrot.slane %v4348_v33, 2 }
 0xdf9   :  { %609 = vrot.lane.b32.xlu2 %v608_v34, %s4176_s6 }
 0xe53   :  { %v610_v35 = vpop.permute.xlu2 %609 }
 0xe54   :  { %3651 = vmatmul.msk.f32.vlgmr.msrb.gmra.mxu3 %vm164_vm13, %v610_v35 }
 0xed7   :  { %v630_v36 = vpop.f32.mrf.mxu3 }
 0xed8   :  { %v634_v37 = vrot.slane %v630_v36, 4 }
 0xeda   :  { %v636_v38 = vadd.f32 %v634_v37, %v4331_v29 }
 0xedc   :  { %v637_v39 = vmul.f32 %v636_v38, %v4254_v12 }
 0xede   :  { %v3652_v40 = vmul.f32 -1.442695, %v637_v39 }
 0xee0   :  { %3888 = vpow2.f32 %v3652_v40 }
 0xee6   :  { %v3889_v41 = vpop.eup %3888 }
 0xee7   :  { %v641_v43 = vadd.f32 1.0, %v3889_v41 }
 0xee9   :  { %3890 = vrcp.f32 %v641_v43  ;;  %v653_v48 = vand.u32 2147483648, %v641_v43  ;;  %v651_v50 = vand.u32 2147483647, %v641_v43  ;;  %vm647_vm11 = vweird.f32 %v641_v43 }
 0xeeb   :  { %v654_v52 = vor.u32 1.1754944e-38, %v653_v48  ;;  %vm652_vm15 = vcmp.eq.f32.partialorder %v651_v50, 8.507059e+37 }
 0xeef   :  { %v3891_v44 = vpop.eup %3890 }
 0xef0   :  { %v643_v46 = vmul.f32 %v3891_v44, %v641_v43  ;;  %vm648_vm10 = vweird.f32 %v3891_v44 }
 0xef1   :  { %vm649_vm14 = vmor %vm647_vm11, %vm648_vm10 }
 0xef2   :  { %v644_v47 = vsub.f32 1.0, %v643_v46 }
 0xef4   :  { %v645_v49 = vmul.f32 %v3891_v44, %v644_v47 }
 0xef6   :  { %v646_v51 = vadd.f32 %v3891_v44, %v645_v49 }
 0xef8   :  { %v650_v53 = vsel %vm649_vm14, %v3891_v44, %v646_v51  ;;  %v38_v44 = vld [vmem:[%s5111_s0 + $0x10] sm:$0xff]  ;;  %s4177_s0 = smov 2  }
 0xef9   :  { %v655_v54 = vsel %vm652_vm15, %v654_v52, %v650_v53  ;;  %3628 = vmatmul.msk.f32.gmra.mxu0 %vm52_vm2, %v38_v44 }
 0xefa   :  { %v657_v55 = vmul.f32 2.0, %v655_v54  ;;  %v662_v60 = vmul.f32 %v660_v59, %v655_v54 }
 0xefc   :  { %v3653_v56 = vadd.f32 -1.0, %v657_v55 }
 0xefe   :  { %664 = vrot.lane.b32.xlu0 %v3653_v56, %s4173_s26 }
 0xf70   :  { %v665_v57 = vpop.permute.xlu0 %664 }
 0xf71   :  { %v667_v58 = vmul.f32 %v665_v57, %v655_v54 }
 0xf73   :  { %669 = vrot.lane.b32.xlu1 %v667_v58, %s4174_s27 }
 0xf76   :  { %v89_v47 = vpop.f32.mrf.mxu0 }
 0xf77   :  { %v4378_v48 = vadd.f32 %v4247_v8, %v89_v47 }
 0xfe5   :  { %v670_v61 = vpop.permute.xlu1 %669 }
 0xfe6   :  { %v672_v62 = vadd.f32 %v670_v61, %v662_v60 }
 0xfe8   :  { %3892 = vtanh.f32 %v672_v62  ;;  %v736_v35 = vrot.slane %v672_v62, 6 }
 0xfee   :  { %v3893_v63 = vpop.eup %3892 }
 0xfef   :  { %675 = vrot.lane.b32.xlu2 %v3893_v63, %s4175_s28 }
0x1049   :  { %v676_v10 = vpop.permute.xlu2 %675 }
0x104a   :  { %v4358_v0 = vmul.f32 %v676_v10, %v655_v54 }
0x104c   :  { %v684_v5 = vrot.slane %v4358_v0, 4 }
0x104e   :  { %685 = vrot.lane.b32.xlu0 %v684_v5, %s4176_s6 }
0x10c0   :  { %v686_v6 = vpop.permute.xlu0 %685 }
0x10c1   :  { %3654 = vmatmul.msk.f32.vlgmr.msrb.gmra.mxu1 %vm164_vm13, %v686_v6 }
0x113e   :  { %v706_v9 = vpop.f32.mrf.mxu1 }
0x113f   :  { %v710_v11 = vrot.slane %v706_v9, 2 }
0x1141   :  { %v712_v13 = vadd.f32 %v710_v11, %v4331_v29 }
0x1143   :  { %v713_v15 = vmul.f32 %v712_v13, %v4254_v12 }
0x1145   :  { %v3655_v3 = vmul.f32 -1.442695, %v713_v15 }
0x1147   :  { %3894 = vpow2.f32 %v3655_v3 }
0x114d   :  { %v3895_v16 = vpop.eup %3894 }
0x114e   :  { %v717_v4 = vadd.f32 1.0, %v3895_v16 }
0x1150   :  { %3896 = vrcp.f32 %v717_v4  ;;  %v729_v20 = vand.u32 2147483648, %v717_v4  ;;  %v727_v23 = vand.u32 2147483647, %v717_v4  ;;  %vm723_vm4 = vweird.f32 %v717_v4 }
0x1152   :  { %v730_v25 = vor.u32 1.1754944e-38, %v729_v20  ;;  %vm728_vm6 = vcmp.eq.f32.partialorder %v727_v23, 8.507059e+37 }
0x1156   :  { %v3897_v17 = vpop.eup %3896 }
0x1157   :  { %v719_v18 = vmul.f32 %v3897_v17, %v717_v4  ;;  %vm724_vm3 = vweird.f32 %v3897_v17 }
0x1158   :  { %vm725_vm5 = vmor %vm723_vm4, %vm724_vm3 }
0x1159   :  { %v720_v19 = vsub.f32 1.0, %v719_v18 }
0x115b   :  { %v721_v21 = vmul.f32 %v3897_v17, %v720_v19 }
0x115d   :  { %v722_v24 = vadd.f32 %v3897_v17, %v721_v21 }
0x115f   :  { %v726_v28 = vsel %vm725_vm5, %v3897_v17, %v722_v24 }
0x1160   :  { %v731_v29 = vsel %vm728_vm6, %v730_v25, %v726_v28 }
0x1161   :  { %v733_v30 = vmul.f32 2.0, %v731_v29  ;;  %v738_v36 = vmul.f32 %v736_v35, %v731_v29 }
0x1163   :  { %v3656_v31 = vadd.f32 -1.0, %v733_v30 }
0x1165   :  { %740 = vrot.lane.b32.xlu1 %v3656_v31, %s4173_s26 }
0x11d7   :  { %v741_v32 = vpop.permute.xlu1 %740 }
0x11d8   :  { %v743_v34 = vmul.f32 %v741_v32, %v731_v29 }
0x11da   :  { %745 = vrot.lane.b32.xlu2 %v743_v34, %s4174_s27 }
0x1234   :  { %v746_v37 = vpop.permute.xlu2 %745 }
0x1235   :  { %v748_v38 = vadd.f32 %v746_v37, %v738_v36 }
0x1237   :  { %3898 = vtanh.f32 %v748_v38  ;;  %v809_v11 = vrot.slane %v748_v38, 6 }
0x123d   :  { %v3899_v39 = vpop.eup %3898 }
0x123e   :  { %751 = vrot.lane.b32.xlu0 %v3899_v39, %s4175_s28 }
0x12b0   :  { %v752_v40 = vpop.permute.xlu0 %751 }
0x12b1   :  { %v4368_v41 = vmul.f32 %v752_v40, %v731_v29 }
0x12b3   :  { %v760_v43 = vrot.slane %v4368_v41, 6 }
0x12b5   :  { %761 = vrot.lane.b32.xlu1 %v760_v43, %s4176_s6 }
0x1327   :  { %v762_v46 = vpop.permute.xlu1 %761 }
0x1328   :  { %3657 = vmatmul.msk.f32.vlgmr.msra.gmra.mxu2 %vm164_vm13, %v762_v46 }
0x13ab   :  { %v782_v49 = vpop.f32.mrf.mxu2 }
0x13ac   :  { %v785_v50 = vadd.f32 %v782_v49, %v4378_v48 }
0x13ae   :  { %v786_v51 = vmul.f32 %v785_v50, %v4254_v12 }
0x13b0   :  { %v3658_v52 = vmul.f32 -1.442695, %v786_v51 }
0x13b2   :  { %3900 = vpow2.f32 %v3658_v52 }
0x13b8   :  { %v3901_v53 = vpop.eup %3900 }
0x13b9   :  { %v790_v54 = vadd.f32 1.0, %v3901_v53 }
0x13bb   :  { %3902 = vrcp.f32 %v790_v54  ;;  %v802_v58 = vand.u32 2147483648, %v790_v54  ;;  %v800_v60 = vand.u32 2147483647, %v790_v54  ;;  %vm796_vm8 = vweird.f32 %v790_v54 }
0x13bd   :  { %v803_v8 = vor.u32 1.1754944e-38, %v802_v58  ;;  %vm801_vm10 = vcmp.eq.f32.partialorder %v800_v60, 8.507059e+37 }
0x13c1   :  { %v3903_v55 = vpop.eup %3902 }
0x13c2   :  { %v792_v56 = vmul.f32 %v3903_v55, %v790_v54  ;;  %vm797_vm7 = vweird.f32 %v3903_v55 }
0x13c3   :  { %vm798_vm9 = vmor %vm796_vm8, %vm797_vm7  ;;  %vm306_vm8 = vcmask 125954  }
0x13c4   :  { %v793_v57 = vsub.f32 1.0, %v792_v56 }
0x13c6   :  { %v794_v59 = vmul.f32 %v3903_v55, %v793_v57 }
0x13c8   :  { %v795_v61 = vadd.f32 %v3903_v55, %v794_v59 }
0x13ca   :  { %v799_v62 = vsel %vm798_vm9, %v3903_v55, %v795_v61  ;;  %vm383_vm9 = vcmask 128004  }
0x13cb   :  { %v804_v63 = vsel %vm801_vm10, %v803_v8, %v799_v62  ;;  %vm460_vm10 = vcmask 130054  }
0x13cc   :  { %v806_v10 = vmul.f32 2.0, %v804_v63  ;;  %v811_v13 = vmul.f32 %v809_v11, %v804_v63 }
0x13ce   :  { %v3659_v5 = vadd.f32 -1.0, %v806_v10 }
0x13d0   :  { %813 = vrot.lane.b32.xlu2 %v3659_v5, %s4173_s26 }
0x142a   :  { %v814_v6 = vpop.permute.xlu2 %813 }
0x142b   :  { %v816_v9 = vmul.f32 %v814_v6, %v804_v63 }
0x142d   :  { %818 = vrot.lane.b32.xlu0 %v816_v9, %s4174_s27 }
0x149f   :  { %v819_v15 = vpop.permute.xlu0 %818 }
0x14a0   :  { %v821_v3 = vadd.f32 %v819_v15, %v811_v13 }
0x14a2   :  { %3904 = vtanh.f32 %v821_v3  ;;  %v882_v47 = vrot.slane %v821_v3, 6 }
0x14a8   :  { %v3905_v16 = vpop.eup %3904 }
0x14a9   :  { %824 = vrot.lane.b32.xlu1 %v3905_v16, %s4175_s28 }
0x151b   :  { %v825_v4 = vpop.permute.xlu1 %824 }
0x151c   :  { %v827_v17 = vmul.f32 %v825_v4, %v804_v63 }
0x151e   :  { %829 = vrot.lane.b32.xlu2 %v827_v17, %s4176_s6 }
0x1578   :  { %v830_v18 = vpop.permute.xlu2 %829 }
0x1579   :  { %832 = vst.msk [vmem:[#allocation2 + $0x10] sm:$0x3] %vm232_vm12, %v830_v18  ;;  %3660 = vmatmul.msk.f32.vlgmr.msra.gmra.mxu3 %vm164_vm13, %v830_v18 }
0x15fc   :  { %v852_v19 = vpop.f32.mrf.mxu3 }
0x15fd   :  { %v856_v20 = vrot.slane %v852_v19, 6 }
0x15ff   :  { %v858_v21 = vadd.f32 %v856_v20, %v4378_v48 }
0x1601   :  { %v859_v23 = vmul.f32 %v858_v21, %v4254_v12  ;;  %v4407_v21 = vld [vmem:[#allocation4 + $0x38] sm:$0xff] }
0x1602   :  { %1167 = vmatpush.msra.mxu0 %v4407_v21 }
0x1603   :  { %v3661_v24 = vmul.f32 -1.442695, %v859_v23  ;;  %v4409_v23 = vld [vmem:[#allocation4 + $0x30] sm:$0xff] }
0x1604   :  { %1168 = vmatpush.msra.mxu0 %v4409_v23 }
0x1605   :  { %3906 = vpow2.f32 %v3661_v24 }
0x160b   :  { %v3907_v25 = vpop.eup %3906 }
0x160c   :  { %v863_v28 = vadd.f32 1.0, %v3907_v25 }
0x160e   :  { %3908 = vrcp.f32 %v863_v28  ;;  %v875_v32 = vand.u32 2147483648, %v863_v28  ;;  %v873_v35 = vand.u32 2147483647, %v863_v28  ;;  %vm869_vm14 = vweird.f32 %v863_v28 }
0x1610   :  { %v876_v37 = vor.u32 1.1754944e-38, %v875_v32  ;;  %vm874_vm3 = vcmp.eq.f32.partialorder %v873_v35, 8.507059e+37  ;;  %v1061_v32 = vld [vmem:[#allocation4 + $0x20] sm:$0xff] }
0x1614   :  { %v3909_v29 = vpop.eup %3908 }
0x1615   :  { %v865_v30 = vmul.f32 %v3909_v29, %v863_v28  ;;  %vm870_vm11 = vweird.f32 %v3909_v29 }
0x1616   :  { %vm871_vm15 = vmor %vm869_vm14, %vm870_vm11  ;;  %vm1140_vm11 = vcmask 1041408   ;;  %vm1133_vm14 = vcmask 15360  }
0x1617   :  { %v866_v31 = vsub.f32 1.0, %v865_v30  ;;  %v1062_v30 = vld [vmem:[#allocation4 + $0x28] sm:$0xff] }
0x1618   :  { %1086 = vmatpush.msrb.mxu2 %v1062_v30  ;;  %v4490_v30 = vld [vmem:[#allocation4 + $0xa0] sm:$0xff] }
0x1619   :  { %v867_v34 = vmul.f32 %v3909_v29, %v866_v31  ;;  %v1099_v31 = vld [vmem:[#allocation4 + $0x60] sm:$0xff] }
0x161a   :  { %1114 = vmatpush.msrb.mxu3 %v1099_v31  ;;  %1087 = vmatpush.msrb.mxu2 %v1061_v32  ;;  %v4493_v31 = vld [vmem:[#allocation4 + $0x98] sm:$0xff]  ;;  %v4497_v32 = vld [vmem:[#allocation4 + $0x90] sm:$0xff] }
0x161b   :  { %v868_v36 = vadd.f32 %v3909_v29, %v867_v34  ;;  %v1098_v34 = vld [vmem:[#allocation4 + $0x58] sm:$0xff] }
0x161c   :  { %1115 = vmatpush.msrb.mxu3 %v1098_v34 }
0x161d   :  { %v872_v38 = vsel %vm871_vm15, %v3909_v29, %v868_v36  ;;  %vm1210_vm15 = vcmask 5120  }
0x161e   :  { %v877_v39 = vsel %vm874_vm3, %v876_v37, %v872_v38  ;;  %vm1235_vm3 = vcmask 1045504  }
0x161f   :  { %v879_v40 = vmul.f32 2.0, %v877_v39  ;;  %v884_v49 = vmul.f32 %v882_v47, %v877_v39 }
0x1621   :  { %v3662_v43 = vadd.f32 -1.0, %v879_v40 }
0x1623   :  { %886 = vrot.lane.b32.xlu0 %v3662_v43, %s4173_s26 }
0x1695   :  { %v887_v44 = vpop.permute.xlu0 %886 }
0x1696   :  { %v889_v46 = vmul.f32 %v887_v44, %v877_v39  ;;  %v4440_v44 = vsel %vm46_vm0, 1.0, %v4171_v7  ;;  %vm1203_vm0 = vcmask 62464  }
0x1698   :  { %891 = vrot.lane.b32.xlu1 %v889_v46, %s4174_s27  ;;  %v1136_v46 = vrot.slane %v4440_v44, 6 }
0x170a   :  { %v892_v50 = vpop.permute.xlu1 %891 }
0x170b   :  { %v894_v51 = vadd.f32 %v892_v50, %v884_v49  ;;  %v1138_v49 = vrot.slane %v4440_v44, 4  ;;  %v1141_v50 = vsel %vm1140_vm11, %v4440_v44, %v1136_v46 }
0x170d   :  { %3910 = vtanh.f32 %v894_v51 }
0x1713   :  { %v3911_v52 = vpop.eup %3910 }
0x1714   :  { %897 = vrot.lane.b32.xlu2 %v3911_v52, %s4175_s28 }
0x176e   :  { %v898_v53 = vpop.permute.xlu2 %897 }
0x176f   :  { %v4393_v54 = vmul.f32 %v898_v53, %v877_v39  ;;  %v4432_v39 = vld [vmem:[#allocation4 + $0x40] ss:$0 sm:$0xff]  ;;  %v4457_v53 = vld [vmem:[#allocation4 + $0x48] ss:$0 sm:$0xff] }
0x1771   :  { %v906_v55 = vrot.slane %v4393_v54, 2 }
0x1773   :  { %907 = vrot.lane.b32.xlu0 %v906_v55, %s4176_s6 }
0x17e5   :  { %v908_v56 = vpop.permute.xlu0 %907 }
0x17e6   :  { %3663 = vmatmul.msk.f32.vlgmr.msrb.gmra.mxu0 %vm164_vm13, %v908_v56 }
0x17ee   :  { %1169 = vmatmul.f32.vlgmr.msra.gmra.mxu0 %v4171_v7 }
0x1863   :  { %v928_v57 = vpop.f32.mrf.mxu0 }
0x1864   :  { %v932_v58 = vrot.slane %v928_v57, 4 }
0x1866   :  { %v934_v59 = vadd.f32 %v932_v58, %v4378_v48  ;;  %v4178_v58 = vmov 0  }
0x1867   :  { %3787 = vset.pattern.permute.xlu0 %v4178_v58  ;;  %3789 = vset.pattern.permute.xlu2 %v4178_v58 }
0x1868   :  { %v935_v60 = vmul.f32 %v934_v59, %v4254_v12  ;;  %v4465_v59 = vld [vmem:[#allocation4 + $0x50] ss:$0 sm:$0xff] }
0x186a   :  { %v3664_v61 = vmul.f32 -1.442695, %v935_v60 }
0x186b   :  { %v1170_v40 = vpop.f32.mrf.mxu0 }
0x186c   :  { %3912 = vpow2.f32 %v3664_v61  ;;  %v1171_v43 = vadd.f32 %v4432_v39, %v1170_v40 }
0x186e   :  { %3675 = vmatpush.msk.msrb.mxu1 %vm1140_vm11, %v1171_v43 }
0x1872   :  { %v3913_v8 = vpop.eup %3912 }
0x1873   :  { %v939_v62 = vadd.f32 1.0, %v3913_v8 }
0x1875   :  { %3914 = vrcp.f32 %v939_v62  ;;  %v951_v6 = vand.u32 2147483648, %v939_v62  ;;  %v949_v11 = vand.u32 2147483647, %v939_v62  ;;  %vm945_vm5 = vweird.f32 %v939_v62 }
0x1877   :  { %v952_v15 = vor.u32 1.1754944e-38, %v951_v6  ;;  %vm950_vm7 = vcmp.eq.f32.partialorder %v949_v11, 8.507059e+37 }
0x187b   :  { %v3915_v63 = vpop.eup %3914 }
0x187c   :  { %v941_v10 = vmul.f32 %v3915_v63, %v939_v62  ;;  %vm946_vm4 = vweird.f32 %v3915_v63 }
0x187d   :  { %vm947_vm6 = vmor %vm945_vm5, %vm946_vm4  ;;  %vm1231_vm4 = vcmask 48128  }
0x187e   :  { %v942_v5 = vsub.f32 1.0, %v941_v10 }
0x1880   :  { %v943_v9 = vmul.f32 %v3915_v63, %v942_v5 }
0x1882   :  { %v944_v13 = vadd.f32 %v3915_v63, %v943_v9 }
0x1884   :  { %v948_v3 = vsel %vm947_vm6, %v3915_v63, %v944_v13 }
0x1885   :  { %v953_v16 = vsel %vm950_vm7, %v952_v15, %v948_v3 }
0x1886   :  { %v955_v4 = vmul.f32 2.0, %v953_v16 }
0x1888   :  { %v3665_v17 = vadd.f32 -1.0, %v955_v4 }
0x188a   :  { %962 = vrot.lane.b32.xlu1 %v3665_v17, %s4173_s26 }
0x1892   :  { %303 = vrot.lane.b32.xlu1 %v4280_v14, %s4176_s6  ;;  %v958_v14 = vrot.slane %v894_v51, 6  ;;  %v4448_v51 = vsel %vm62_vm1, %v1141_v50, %v1138_v49 }
0x1894   :  { %v960_v24 = vmul.f32 %v958_v14, %v953_v16 }
0x18fc   :  { %v963_v18 = vpop.permute.xlu1 %962 }
0x18fd   :  { %v965_v19 = vmul.f32 %v963_v18, %v953_v16 }
0x18ff   :  { %967 = vrot.lane.b32.xlu2 %v965_v19, %s4174_s27 }
0x1904   :  { %v304_v20 = vpop.permute.xlu1 %303 }
0x1905   :  { %307 = vst.msk [vmem:[#allocation2] sm:$0xc] %vm306_vm8, %v304_v20 }
0x1907   :  { %380 = vrot.lane.b32.xlu2 %v4292_v45, %s4176_s6 }
0x1959   :  { %v968_v25 = vpop.permute.xlu2 %967 }
0x195a   :  { %v4414_v28 = vadd.f32 %v968_v25, %v960_v24 }
0x195c   :  { %3916 = vtanh.f32 %v4414_v28 }
0x1961   :  { %v381_v29 = vpop.permute.xlu2 %380 }
0x1962   :  { %v3917_v45 = vpop.eup %3916  ;;  %384 = vst.msk [vmem:[#allocation2] sm:$0x30] %vm383_vm9, %v381_v29 }
0x1963   :  { %973 = vrot.lane.b32.xlu0 %v3917_v45, %s4175_s28  ;;  %v4487_v45 = vld [vmem:[#allocation4 + $0xa8] sm:$0xff] }
0x1964   :  { %1518 = vmatpush.msra.mxu3 %v4487_v45 }
0x1966   :  { %1519 = vmatpush.msra.mxu3 %v4490_v30 }
0x1968   :  { %1520 = vmatpush.msra.mxu3 %v4493_v31 }
0x196a   :  { %1521 = vmatpush.msra.mxu3 %v4497_v32 }
0x196b   :  { %457 = vrot.lane.b32.xlu0 %v4317_v22, %s4176_s6 }
0x19d5   :  { %v974_v35 = vpop.permute.xlu0 %973 }
0x19d6   :  { %v4421_v36 = vmul.f32 %v974_v35, %v953_v16  ;;  %v4180_v16 = vmov 16  }
0x19d7   :  { %3788 = vset.pattern.permute.xlu1 %v4180_v16 }
0x19d8   :  { %v982_v37 = vrot.slane %v4421_v36, 4 }
0x19da   :  { %983 = vrot.lane.b32.xlu1 %v982_v37, %s4176_s6 }
0x19dd   :  { %v458_v38 = vpop.permute.xlu0 %457 }
0x19de   :  { %461 = vst.msk [vmem:[#allocation2] sm:$0xc0] %vm460_vm10, %v458_v38 }
0x19e2   :  { %1127 = vrot.lane.b32.xlu1 %v4440_v44, %s4177_s0 }
0x19e5   :  { %v4426_v22 = vld [vmem:[#allocation2] sm:$0xff] }
0x19e6   :  { %3669 = vmatmul.msk.f32.vlgmr.msrb.gmra.mxu2 %vm164_vm13, %v4426_v22  ;;  %3672 = vmatmul.msk.f32.vlgmr.msrb.gmra.mxu3 %vm164_vm13, %v4426_v22 }
0x19e7   :  { %1739 = vmatpush.msrb.mxu3 %v4487_v45 }
0x19e9   :  { %1740 = vmatpush.msrb.mxu3 %v4490_v30 }
0x19eb   :  { %1741 = vmatpush.msrb.mxu3 %v4493_v31 }
0x19ed   :  { %1742 = vmatpush.msrb.mxu3 %v4497_v32 }
0x1a4c   :  { %v984_v47 = vpop.permute.xlu1 %983 }
0x1a4d   :  { %3666 = vmatmul.msk.f32.vlgmr.msra.gmra.mxu1 %vm164_vm13, %v984_v47 }
0x1a4e   :  { %1296 = vmatpush.msra.mxu1 %v4487_v45 }
0x1a50   :  { %1297 = vmatpush.msra.mxu1 %v4490_v30 }
0x1a52   :  { %1298 = vmatpush.msra.mxu1 %v4493_v31 }
0x1a54   :  { %v1128_v4 = vpop.permute.xlu1 %1127  ;;  %1299 = vmatpush.msra.mxu1 %v4497_v32 }
0x1a55   :  { %3676 = vmatmul.msk.f32.vlgmr.msrb.gmra.mxu1 %vm1133_vm14, %v4448_v51  ;;  %v1134_v14 = vsel %vm1133_vm14, %v4440_v44, %v1128_v4 }
0x1a69   :  { %v4454_v2 = vpop.f32.mrf.mxu2 }
0x1aca   :  { %v4452_v1 = vpop.f32.mrf.mxu1 }
0x1ad2   :  { %v1196_v7 = vpop.f32.mrf.mxu1 }
0x1ad3   :  { %v1199_v52 = vadd.f32 %v1196_v7, %v4454_v2 }
0x1ad5   :  { %3918 = vtanh.f32 %v1199_v52 }
0x1adb   :  { %v3919_v55 = vpop.eup %3918 }
0x1adc   :  { %v1202_v56 = vmul.f32 %v3919_v55, %v4457_v53 }
0x1ade   :  { %v1204_v57 = vsel %vm1203_vm0, %v1202_v56, 0.0  ;;  %v3840_v56 = vld [vmem:[#allocation4 + $0xb8] ss:$0 sm:$0xff] }
0x1adf   :  { %1205 = vadd.xlane.f32.xlu2 %v1204_v57  ;;  %v4510_v57 = vadd.f32 %v3840_v56, %v4273_v42 }
0x1af7   :  { %604 = vrot.lane.b32.xlu2 %v4348_v33, %s4176_s6 }
0x1b52   :  { %v1206_v60 = vpop.xlane.xlu2 %1205 }
0x1b53   :  { %v1208_v61 = vadd.f32 %v4465_v59, %v1206_v60 }
0x1b55   :  { %v1209_v8 = vmax.f32 %v1208_v61, 0.0 }
0x1b57   :  { %v1211_v62 = vsel %vm1210_vm15, %v1209_v8, -inf  ;;  %vm1280_vm15 = vcmask 261120  }
0x1b58   :  { %v1212_v63 = vrot.slane %v1211_v62, 4 }
0x1b5a   :  { %v1213_v10 = vmax.f32 %v1211_v62, %v1212_v63  ;;  %v605_v5 = vpop.permute.xlu2 %604 }
0x1b5b   :  { %607 = vst.msk [vmem:[#allocation2 + $0x8] sm:$0xc] %vm306_vm8, %v605_v5 }
0x1b5c   :  { %v1214_v6 = vrot.slane %v1213_v10, 2 }
0x1b5e   :  { %v1215_v33 = vmax.f32 %v1213_v10, %v1214_v6 }
0x1b60   :  { %v1216_v9 = vrot.slane %v1215_v33, 1 }
0x1b62   :  { %v1217_v11 = vmax.f32 %v1215_v33, %v1216_v9 }
0x1b64   :  { %v1218_v13 = vsub.f32 %v1209_v8, %v1217_v11 }
0x1b66   :  { %v1219_v15 = vmul.f32 1.442695, %v1218_v13 }
0x1b68   :  { %3920 = vpow2.f32 %v1219_v15 }
0x1b6e   :  { %v3921_v3 = vpop.eup %3920 }
0x1b6f   :  { %1227 = vrot.lane.b32.xlu1 %v3921_v3, %s4174_s27  ;;  %1223 = vperm.xlu0 %3787, %v3921_v3  }
0x1b77   :  { %1130 = vrot.lane.b32.xlu0 %v4440_v44, %s4179_s13 }
0x1be1   :  { %v1224_v17 = vpop.permute.xlu0 %1223  ;;  %v1228_v19 = vpop.permute.xlu1 %1227 }
0x1be2   :  { %v1226_v18 = vmul.f32 %v1224_v17, %v4426_v22 }
0x1be4   :  { %v1230_v20 = vsel %vm164_vm13, %v1226_v18, %v1228_v19 }
0x1be5   :  { %3677 = vmatpush.msk.msrb.mxu0 %vm1235_vm3, %v1230_v20 }
0x1be7   :  { %1362 = vmatpush.msra.mxu0 %v4407_v21 }
0x1be9   :  { %1363 = vmatpush.msra.mxu0 %v4409_v23  ;;  %v1131_v24 = vpop.permute.xlu0 %1130 }
0x1bea   :  { %v4480_v25 = vsel %vm52_vm2, %v1134_v14, %v1131_v24  ;;  %v1008_v14 = vrot.slane %v4452_v1, 2 }
0x1beb   :  { %3678 = vmatmul.msk.f32.vlgmr.msrb.gmra.mxu0 %vm1231_vm4, %v4480_v25 }
0x1bec   :  { %1584 = vmatpush.msrb.mxu0 %v4407_v21  ;;  %v1010_v24 = vadd.f32 %v1008_v14, %v4378_v48 }
0x1bee   :  { %1585 = vmatpush.msrb.mxu0 %v4409_v23 }
0x1c68   :  { %v1256_v29 = vpop.f32.mrf.mxu0 }
0x1c69   :  { %1261 = vperm.xlu1 %3788, %v1256_v29  }
0x1c71   :  { %3792 = vset.pattern.permute.xlu1 %v4178_v58 }
0x1cdb   :  { %v1262_v34 = vpop.permute.xlu1 %1261 }
0x1cdc   :  { %3922 = vrcp.f32 %v1262_v34  ;;  %v1275_v40 = vand.u32 2147483648, %v1262_v34  ;;  %v1273_v46 = vand.u32 2147483647, %v1262_v34  ;;  %vm1269_vm6 = vweird.f32 %v1262_v34 }
0x1cde   :  { %v1276_v49 = vor.u32 1.1754944e-38, %v1275_v40  ;;  %vm1274_vm0 = vcmp.eq.f32.partialorder %v1273_v46, 8.507059e+37 }
0x1ce2   :  { %v3923_v35 = vpop.eup %3922 }
0x1ce3   :  { %v1265_v37 = vmul.f32 %v3923_v35, %v1262_v34  ;;  %vm1270_vm5 = vweird.f32 %v3923_v35 }
0x1ce4   :  { %vm1271_vm7 = vmor %vm1269_vm6, %vm1270_vm5 }
0x1ce5   :  { %v1266_v38 = vsub.f32 1.0, %v1265_v37 }
0x1ce7   :  { %v1267_v43 = vmul.f32 %v3923_v35, %v1266_v38 }
0x1ce9   :  { %v1268_v47 = vadd.f32 %v3923_v35, %v1267_v43 }
0x1ceb   :  { %v1272_v50 = vsel %vm1271_vm7, %v3923_v35, %v1268_v47 }
0x1cec   :  { %v1277_v7 = vsel %vm1274_vm0, %v1276_v49, %v1272_v50 }
0x1ced   :  { %v1278_v52 = vmul.f32 %v1277_v7, %v1256_v29  ;;  %v1011_v29 = vmul.f32 %v1010_v24, %v4254_v12 }
0x1cef   :  { %v1279_v55 = vsel %vm164_vm13, %v1278_v52, 0.0  ;;  %v3667_v34 = vmul.f32 -1.442695, %v1011_v29 }
0x1cf0   :  { %3679 = vmatmul.msk.f32.vlgmr.msra.gmra.mxu1 %vm1280_vm15, %v1279_v55 }
0x1d6d   :  { %v1301_v60 = vpop.f32.mrf.mxu1 }
0x1d6e   :  { %v1302_v61 = vadd.f32 %v1301_v60, %v4510_v57 }
0x1d70   :  { %v1304_v8 = vmul.f32 %v1302_v61, %v4254_v12 }
0x1d72   :  { %v3680_v62 = vmul.f32 -1.442695, %v1304_v8 }
0x1d74   :  { %3924 = vpow2.f32 %v3680_v62 }
0x1d7a   :  { %v3925_v63 = vpop.eup %3924 }
0x1d7b   :  { %v1308_v10 = vadd.f32 1.0, %v3925_v63 }
0x1d7d   :  { %3926 = vrcp.f32 %v1308_v10  ;;  %v1320_v9 = vand.u32 2147483648, %v1308_v10  ;;  %v1318_v13 = vand.u32 2147483647, %v1308_v10  ;;  %vm1314_vm6 = vweird.f32 %v1308_v10 }
0x1d7e   :  { %3928 = vpow2.f32 %v3667_v34 }
0x1d7f   :  { %v1321_v42 = vor.u32 1.1754944e-38, %v1320_v9  ;;  %vm1319_vm0 = vcmp.eq.f32.partialorder %v1318_v13, 8.507059e+37  ;;  %v1034_v9 = vrot.slane %v4414_v28, 6 }
0x1d83   :  { %v3927_v5 = vpop.eup %3926 }
0x1d84   :  { %v1310_v6 = vmul.f32 %v3927_v5, %v1308_v10  ;;  %vm1315_vm5 = vweird.f32 %v3927_v5  ;;  %v3929_v35 = vpop.eup %3928 }
0x1d85   :  { %vm1316_vm7 = vmor %vm1314_vm6, %vm1315_vm5  ;;  %v1015_v37 = vadd.f32 1.0, %v3929_v35 }
0x1d86   :  { %v1311_v33 = vsub.f32 1.0, %v1310_v6 }
0x1d87   :  { %3930 = vrcp.f32 %v1015_v37  ;;  %v1027_v7 = vand.u32 2147483648, %v1015_v37  ;;  %vm1021_vm6 = vweird.f32 %v1015_v37  ;;  %v1025_v52 = vand.u32 2147483647, %v1015_v37 }
0x1d88   :  { %v1312_v11 = vmul.f32 %v3927_v5, %v1311_v33 }
0x1d89   :  { %v1028_v56 = vor.u32 1.1754944e-38, %v1027_v7 }
0x1d8a   :  { %v1313_v15 = vadd.f32 %v3927_v5, %v1312_v11 }
0x1d8c   :  { %v1317_v3 = vsel %vm1316_vm7, %v3927_v5, %v1313_v15 }
0x1d8d   :  { %v1322_v4 = vsel %vm1319_vm0, %v1321_v42, %v1317_v3  ;;  %v3931_v38 = vpop.eup %3930  ;;  %vm1026_vm0 = vcmp.eq.f32.partialorder %v1025_v52, 8.507059e+37 }
0x1d8e   :  { %v1324_v17 = vmul.f32 2.0, %v1322_v4  ;;  %v1017_v40 = vmul.f32 %v3931_v38, %v1015_v37  ;;  %v1326_v43 = vmul.f32 0.0, %v1322_v4  ;;  %vm1022_vm5 = vweird.f32 %v3931_v38 }
0x1d8f   :  { %vm1023_vm7 = vmor %vm1021_vm6, %vm1022_vm5  ;;  %vm1414_vm5 = vcmask 3072  }
0x1d90   :  { %v3681_v18 = vadd.f32 -1.0, %v1324_v17  ;;  %v1018_v49 = vsub.f32 1.0, %v1017_v40 }
0x1d92   :  { %1328 = vrot.lane.b32.xlu0 %v3681_v18, %s4173_s26  ;;  %v1019_v50 = vmul.f32 %v3931_v38, %v1018_v49 }
0x1d94   :  { %v1020_v48 = vadd.f32 %v3931_v38, %v1019_v50 }
0x1d96   :  { %v1024_v55 = vsel %vm1023_vm7, %v3931_v38, %v1020_v48 }
0x1d97   :  { %v1029_v60 = vsel %vm1026_vm0, %v1028_v56, %v1024_v55 }
0x1d98   :  { %v1031_v61 = vmul.f32 2.0, %v1029_v60  ;;  %v1036_v11 = vmul.f32 %v1034_v9, %v1029_v60 }
0x1d9a   :  { %v3668_v8 = vadd.f32 -1.0, %v1031_v61 }
0x1e04   :  { %v1329_v19 = vpop.permute.xlu0 %1328 }
0x1e05   :  { %v1331_v20 = vmul.f32 %v1329_v19, %v1322_v4 }
0x1e07   :  { %1333 = vrot.lane.b32.xlu1 %v1331_v20, %s4174_s27 }
0x1e79   :  { %v1334_v46 = vpop.permute.xlu1 %1333 }
0x1e7a   :  { %v4519_v47 = vadd.f32 %v1334_v46, %v1326_v43 }
0x1e7c   :  { %3932 = vtanh.f32 %v4519_v47 }
0x1e82   :  { %v3933_v1 = vpop.eup %3932 }
0x1e83   :  { %1339 = vrot.lane.b32.xlu0 %v3933_v1, %s4175_s28 }
0x1e8b   :  { %680 = vrot.lane.b32.xlu0 %v4358_v0, %s4176_s6 }
0x1e93   :  { %1038 = vrot.lane.b32.xlu0 %v3668_v8, %s4173_s26 }
0x1ef5   :  { %v1340_v62 = vpop.permute.xlu0 %1339 }
0x1ef6   :  { %v4526_v63 = vmul.f32 %v1340_v62, %v1322_v4 }
0x1ef8   :  { %1344 = vrot.lane.b32.xlu1 %v4526_v63, %s4176_s6 }
0x1efd   :  { %v681_v10 = vpop.permute.xlu0 %680 }
0x1efe   :  { %683 = vst.msk [vmem:[#allocation2 + $0x8] sm:$0x30] %vm383_vm9, %v681_v10 }
0x1f00   :  { %756 = vrot.lane.b32.xlu1 %v4368_v41, %s4176_s6 }
0x1f05   :  { %v1039_v5 = vpop.permute.xlu0 %1038 }
0x1f06   :  { %v1041_v6 = vmul.f32 %v1039_v5, %v1029_v60 }
0x1f08   :  { %1043 = vrot.lane.b32.xlu1 %v1041_v6, %s4174_s27 }
0x1f6a   :  { %v1345_v0 = vpop.permute.xlu1 %1344 }
0x1f6b   :  { %3682 = vmatmul.msk.f32.vlgmr.msra.gmra.mxu0 %vm164_vm13, %v1345_v0 }
0x1f6c   :  { %1805 = vmatpush.msra.mxu0 %v4407_v21 }
0x1f6e   :  { %1806 = vmatpush.msra.mxu0 %v4409_v23 }
0x1f72   :  { %v757_v33 = vpop.permute.xlu1 %756 }
0x1f73   :  { %759 = vst.msk [vmem:[#allocation2 + $0x8] sm:$0xc0] %vm460_vm10, %v757_v33 }
0x1f7a   :  { %v1044_v13 = vpop.permute.xlu1 %1043  ;;  %v4539_v15 = vld [vmem:[#allocation2 + $0x8] sm:$0xff] }
0x1f7b   :  { %v1046_v41 = vadd.f32 %v1044_v13, %v1036_v11  ;;  %3670 = vmatmul.msk.f32.gmra.mxu2 %vm164_vm13, %v4539_v15  ;;  %3673 = vmatmul.msk.f32.gmra.mxu3 %vm164_vm13, %v4539_v15 }
0x1f7d   :  { %3934 = vtanh.f32 %v1046_v41 }
0x1f83   :  { %v3935_v21 = vpop.eup %3934 }
0x1f84   :  { %1049 = vrot.lane.b32.xlu2 %v3935_v21, %s4175_s28 }
0x1f8c   :  { %902 = vrot.lane.b32.xlu2 %v4393_v54, %s4176_s6 }
0x1f94   :  { %978 = vrot.lane.b32.xlu2 %v4421_v36, %s4176_s6 }
0x1fde   :  { %v1050_v23 = vpop.permute.xlu2 %1049 }
0x1fdf   :  { %v4550_v28 = vmul.f32 %v1050_v23, %v1029_v60 }
0x1fe1   :  { %1054 = vrot.lane.b32.xlu2 %v4550_v28, %s4176_s6 }
0x1fe6   :  { %v903_v42 = vpop.permute.xlu2 %902 }
0x1fe7   :  { %905 = vst.msk [vmem:[#allocation2 + $0x10] sm:$0xc] %vm306_vm8, %v903_v42  ;;  %vm1400_vm8 = vcmask 64518  }
0x1fe8   :  { %v1365_v3 = vpop.f32.mrf.mxu0 }
0x1fe9   :  { %v1366_v4 = vadd.f32 %v4432_v39, %v1365_v3 }
0x1feb   :  { %3683 = vmatpush.msk.msrb.mxu1 %vm1140_vm11, %v1366_v4 }
0x1fec   :  { %3684 = vmatmul.msk.f32.vlgmr.msrb.gmra.mxu1 %vm1133_vm14, %v4448_v51 }
0x1fee   :  { %v979_v54 = vpop.permute.xlu2 %978 }
0x1fef   :  { %981 = vst.msk [vmem:[#allocation2 + $0x10] sm:$0x30] %vm383_vm9, %v979_v54  ;;  %vm1404_vm9 = vcmask 60416  }
0x1ffe   :  { %v4567_v20 = vpop.f32.mrf.mxu2 }
0x203b   :  { %v1055_v36 = vpop.permute.xlu2 %1054 }
0x203c   :  { %1057 = vst.msk [vmem:[#allocation2 + $0x10] sm:$0xc0] %vm460_vm10, %v1055_v36  ;;  %vm1412_vm10 = vcmask 7174  }
0x2043   :  { %v4561_v17 = vld [vmem:[#allocation2 + $0x10] sm:$0xff] }
0x2044   :  { %3671 = vmatmul.msk.f32.gmra.mxu2 %vm164_vm13, %v4561_v17  ;;  %3674 = vmatmul.msk.f32.gmra.mxu3 %vm164_vm13, %v4561_v17 }
0x2069   :  { %v1388_v18 = vpop.f32.mrf.mxu1 }
0x206a   :  { %v1392_v19 = vrot.slane %v1388_v18, 2 }
0x206c   :  { %v1394_v14 = vadd.f32 %v1392_v19, %v4454_v2  ;;  %v1395_v24 = vadd.f32 %v1392_v19, %v4567_v20 }
0x206e   :  { %3936 = vtanh.f32 %v1394_v14 }
0x206f   :  { %3938 = vtanh.f32 %v1395_v24 }
0x2074   :  { %v3937_v29 = vpop.eup %3936 }
0x2075   :  { %v3939_v34 = vpop.eup %3938  ;;  %v1398_v35 = vmul.f32 %v3937_v29, %v4457_v53 }
0x2076   :  { %v1399_v37 = vmul.f32 %v3939_v34, %v4457_v53 }
0x2077   :  { %v1401_v38 = vsel %vm1400_vm8, %v1398_v35, 0.0 }
0x2078   :  { %1402 = vadd.xlane.f32.xlu0 %v1401_v38  ;;  %v1405_v40 = vsel %vm1404_vm9, %v1399_v37, 0.0 }
0x2079   :  { %1406 = vadd.xlane.f32.xlu1 %v1405_v40 }
0x20c7   :  { %v4586_v19 = vpop.f32.mrf.mxu2 }
0x20eb   :  { %v1403_v43 = vpop.xlane.xlu0 %1402 }
0x20ec   :  { %v1408_v46 = vadd.f32 %v4465_v59, %v1403_v43  ;;  %v1407_v2 = vpop.xlane.xlu1 %1406 }
0x20ed   :  { %v1409_v49 = vadd.f32 %v4465_v59, %v1407_v2 }
0x20ee   :  { %v1410_v50 = vmax.f32 %v1408_v46, 0.0 }
0x20ef   :  { %v1411_v1 = vmax.f32 %v1409_v49, 0.0 }
0x20f0   :  { %v1413_v48 = vsel %vm1412_vm10, %v1410_v50, -inf }
0x20f1   :  { %v1415_v7 = vsel %vm1414_vm5, %v1411_v1, -inf }
0x20f2   :  { %v1416_v52 = vmax.f32 %v1413_v48, %v1415_v7 }
0x20f4   :  { %v1417_v55 = vrot.slane %v1416_v52, 4 }
0x20f6   :  { %v1418_v56 = vmax.f32 %v1416_v52, %v1417_v55  ;;  %v1501_v52 = vrot.slane %v4510_v57, 2 }
0x20f8   :  { %v1419_v60 = vrot.slane %v1418_v56, 2 }
0x20fa   :  { %v1420_v61 = vmax.f32 %v1418_v56, %v1419_v60 }
0x20fc   :  { %v1421_v8 = vrot.slane %v1420_v61, 1 }
0x20fe   :  { %v1422_v62 = vmax.f32 %v1420_v61, %v1421_v8 }
0x2100   :  { %v1423_v10 = vsub.f32 %v1410_v50, %v1422_v62  ;;  %v1424_v5 = vsub.f32 %v1411_v1, %v1422_v62  ;;  %v4596_v1 = vpop.f32.mrf.mxu3 }
0x2102   :  { %v1425_v6 = vmul.f32 1.442695, %v1423_v10  ;;  %v1427_v0 = vmul.f32 1.442695, %v1424_v5 }
0x2104   :  { %3940 = vpow2.f32 %v1425_v6 }
0x2105   :  { %3942 = vpow2.f32 %v1427_v0 }
0x2108   :  { %v4598_v48 = vpop.f32.mrf.mxu3 }
0x210a   :  { %v3941_v33 = vpop.eup %3940 }
0x210b   :  { %v3943_v9 = vpop.eup %3942  ;;  %1441 = vrot.lane.b32.xlu0 %v3941_v33, %s4174_s27  ;;  %1431 = vperm.xlu2 %3789, %v3941_v33  }
0x210c   :  { %1443 = vrot.lane.b32.xlu1 %v3943_v9, %s4174_s27 }
0x2110   :  { %v4600_v7 = vpop.f32.mrf.mxu3 }
0x2113   :  { %1436 = vperm.xlu2 %3789, %v3943_v9  }
0x211b   :  { %3790 = vset.pattern.permute.xlu2 %v4180_v16 }
0x2165   :  { %v1432_v11 = vpop.permute.xlu2 %1431 }
0x2166   :  { %v1439_v41 = vmul.f32 %v1432_v11, %v4426_v22 }
0x216d   :  { %v1437_v13 = vpop.permute.xlu2 %1436 }
0x216e   :  { %v1440_v21 = vmul.f32 %v1437_v13, %v4539_v15 }
0x217d   :  { %v1442_v23 = vpop.permute.xlu0 %1441 }
0x217e   :  { %v1444_v42 = vpop.permute.xlu1 %1443  ;;  %v1447_v3 = vsel %vm164_vm13, %v1439_v41, %v1442_v23 }
0x217f   :  { %v1448_v4 = vsel %vm164_vm13, %v1440_v21, %v1444_v42  ;;  %v1451_v54 = vrot.slane %v1447_v3, 6 }
0x2180   :  { %v1452_v36 = vrot.slane %v1448_v4, 6 }
0x2182   :  { %v1453_v18 = vsel %vm1140_vm11, %v1451_v54, %v1452_v36 }
0x2183   :  { %3685 = vmatpush.msk.msra.mxu2 %vm1235_vm3, %v1453_v18 }
0x2184   :  { %3686 = vmatmul.msk.f32.vlgmr.msra.gmra.mxu2 %vm1231_vm4, %v4480_v25 }
0x2207   :  { %v1473_v22 = vpop.f32.mrf.mxu2 }
0x2208   :  { %1478 = vperm.xlu2 %3790, %v1473_v22  }
0x2210   :  { %1496 = vrot.lane.b32.xlu2 %v4526_v63, %s4173_s26 }
0x2262   :  { %v1479_v14 = vpop.permute.xlu2 %1478 }
0x2263   :  { %3944 = vrcp.f32 %v1479_v14  ;;  %v1492_v35 = vand.u32 2147483648, %v1479_v14  ;;  %v1490_v38 = vand.u32 2147483647, %v1479_v14  ;;  %vm1486_vm7 = vweird.f32 %v1479_v14 }
0x2265   :  { %v1493_v43 = vor.u32 1.1754944e-38, %v1492_v35  ;;  %vm1491_vm8 = vcmp.eq.f32.partialorder %v1490_v38, 8.507059e+37 }
0x2269   :  { %v3945_v24 = vpop.eup %3944 }
0x226a   :  { %v1482_v29 = vmul.f32 %v3945_v24, %v1479_v14  ;;  %vm1487_vm6 = vweird.f32 %v3945_v24  ;;  %v1497_v50 = vpop.permute.xlu2 %1496 }
0x226b   :  { %vm1488_vm0 = vmor %vm1486_vm7, %vm1487_vm6  ;;  %vm1622_vm7 = vcmask 64516  }
0x226c   :  { %v1483_v34 = vsub.f32 1.0, %v1482_v29 }
0x226e   :  { %v1484_v37 = vmul.f32 %v3945_v24, %v1483_v34 }
0x2270   :  { %v1485_v40 = vadd.f32 %v3945_v24, %v1484_v37 }
0x2272   :  { %v1489_v46 = vsel %vm1488_vm0, %v3945_v24, %v1485_v40  ;;  %vm1626_vm0 = vcmask 58368  }
0x2273   :  { %v1494_v2 = vsel %vm1491_vm8, %v1493_v43, %v1489_v46  ;;  %vm1634_vm8 = vcmask 7172  }
0x2274   :  { %v1495_v49 = vmul.f32 %v1494_v2, %v1473_v22 }
0x2276   :  { %v1499_v63 = vsel %vm164_vm13, %v1495_v49, %v1497_v50 }
0x2277   :  { %3687 = vmatmul.msk.f32.vlgmr.msra.gmra.mxu3 %vm1280_vm15, %v1499_v63 }
0x2278   :  { %1932 = vmatpush.msra.mxu3 %v4487_v45 }
0x227a   :  { %1933 = vmatpush.msra.mxu3 %v4490_v30 }
0x227c   :  { %1934 = vmatpush.msra.mxu3 %v4493_v31 }
0x227e   :  { %1935 = vmatpush.msra.mxu3 %v4497_v32 }
0x22fa   :  { %v1523_v55 = vpop.f32.mrf.mxu3 }
0x22fb   :  { %v1524_v56 = vadd.f32 %v1523_v55, %v1501_v52 }
0x22fd   :  { %v1526_v60 = vmul.f32 %v1524_v56, %v4254_v12 }
0x22ff   :  { %v3688_v61 = vmul.f32 -1.442695, %v1526_v60 }
0x2301   :  { %3946 = vpow2.f32 %v3688_v61 }
0x2307   :  { %v3947_v45 = vpop.eup %3946 }
0x2308   :  { %v1530_v30 = vadd.f32 1.0, %v3947_v45 }
0x230a   :  { %3948 = vrcp.f32 %v1530_v30  ;;  %v1542_v62 = vand.u32 2147483648, %v1530_v30  ;;  %v1540_v5 = vand.u32 2147483647, %v1530_v30  ;;  %vm1536_vm10 = vweird.f32 %v1530_v30 }
0x230c   :  { %v1543_v0 = vor.u32 1.1754944e-38, %v1542_v62  ;;  %vm1541_vm6 = vcmp.eq.f32.partialorder %v1540_v5, 8.507059e+37 }
0x2310   :  { %v3949_v31 = vpop.eup %3948 }
0x2311   :  { %v1532_v8 = vmul.f32 %v3949_v31, %v1530_v30  ;;  %vm1537_vm9 = vweird.f32 %v3949_v31 }
0x2312   :  { %vm1538_vm5 = vmor %vm1536_vm10, %vm1537_vm9  ;;  %vm1636_vm9 = vcmask 1024  }
0x2313   :  { %v1533_v32 = vsub.f32 1.0, %v1532_v8 }
0x2315   :  { %v1534_v10 = vmul.f32 %v3949_v31, %v1533_v32 }
0x2317   :  { %v1535_v6 = vadd.f32 %v3949_v31, %v1534_v10 }
0x2319   :  { %v1539_v33 = vsel %vm1538_vm5, %v3949_v31, %v1535_v6 }
0x231a   :  { %v1544_v9 = vsel %vm1541_vm6, %v1543_v0, %v1539_v33 }
0x231b   :  { %v1546_v11 = vmul.f32 2.0, %v1544_v9  ;;  %v1548_v23 = vmul.f32 %v1544_v9, %v4519_v47 }
0x231d   :  { %v3689_v13 = vadd.f32 -1.0, %v1546_v11 }
0x231f   :  { %1550 = vrot.lane.b32.xlu0 %v3689_v13, %s4173_s26 }
0x2391   :  { %v1551_v41 = vpop.permute.xlu0 %1550 }
0x2392   :  { %v1553_v21 = vmul.f32 %v1551_v41, %v1544_v9 }
0x2394   :  { %1555 = vrot.lane.b32.xlu2 %v1553_v21, %s4174_s27 }
0x23ee   :  { %v1556_v42 = vpop.permute.xlu2 %1555 }
0x23ef   :  { %v4607_v3 = vadd.f32 %v1556_v42, %v1548_v23 }
0x23f1   :  { %3950 = vtanh.f32 %v4607_v3 }
0x23f7   :  { %v3951_v4 = vpop.eup %3950 }
0x23f8   :  { %1561 = vrot.lane.b32.xlu1 %v3951_v4, %s4175_s28 }
0x246a   :  { %v1562_v54 = vpop.permute.xlu1 %1561 }
0x246b   :  { %v1564_v36 = vmul.f32 %v1562_v54, %v1544_v9 }
0x246d   :  { %1566 = vrot.lane.b32.xlu0 %v1564_v36, %s4176_s6 }
0x24df   :  { %v1567_v18 = vpop.permute.xlu0 %1566 }
0x24e0   :  { %3690 = vmatmul.msk.f32.vlgmr.msrb.gmra.mxu0 %vm164_vm13, %v1567_v18 }
0x255d   :  { %v1587_v22 = vpop.f32.mrf.mxu0 }
0x255e   :  { %v1588_v14 = vadd.f32 %v4432_v39, %v1587_v22 }
0x2560   :  { %3691 = vmatpush.msk.msra.mxu1 %vm1140_vm11, %v1588_v14 }
0x2561   :  { %3692 = vmatmul.msk.f32.vlgmr.msra.gmra.mxu1 %vm1133_vm14, %v4448_v51 }
0x25de   :  { %v1610_v47 = vpop.f32.mrf.mxu1 }
0x25df   :  { %v1614_v24 = vrot.slane %v1610_v47, 4 }
0x25e1   :  { %v1616_v29 = vadd.f32 %v1614_v24, %v4567_v20  ;;  %v1617_v34 = vadd.f32 %v1614_v24, %v4586_v19 }
0x25e3   :  { %3952 = vtanh.f32 %v1616_v29 }
0x25e4   :  { %3954 = vtanh.f32 %v1617_v34 }
0x25e9   :  { %v3953_v35 = vpop.eup %3952 }
0x25ea   :  { %v3955_v37 = vpop.eup %3954  ;;  %v1620_v38 = vmul.f32 %v3953_v35, %v4457_v53 }
0x25eb   :  { %v1621_v40 = vmul.f32 %v3955_v37, %v4457_v53 }
0x25ec   :  { %v1623_v43 = vsel %vm1622_vm7, %v1620_v38, 0.0 }
0x25ed   :  { %v1627_v46 = vsel %vm1626_vm0, %v1621_v40, 0.0  ;;  %1624 = vadd.xlane.f32.xlu2 %v1623_v43 }
0x25ee   :  { %1628 = vadd.xlane.f32.xlu1 %v1627_v46 }
0x2605   :  { %1718 = vrot.lane.b32.xlu2 %v1564_v36, %s4173_s26 }
0x2660   :  { %v1625_v2 = vpop.xlane.xlu2 %1624 }
0x2661   :  { %v1629_v20 = vpop.xlane.xlu1 %1628  ;;  %v1630_v49 = vadd.f32 %v4465_v59, %v1625_v2 }
0x2662   :  { %v1631_v50 = vadd.f32 %v4465_v59, %v1629_v20 }
0x2663   :  { %v1632_v63 = vmax.f32 %v1630_v49, 0.0 }
0x2664   :  { %v1633_v52 = vmax.f32 %v1631_v50, 0.0  ;;  %v1722_v50 = vrot.slane %v4510_v57, 4 }
0x2665   :  { %v1635_v55 = vsel %vm1634_vm8, %v1632_v63, -inf }
0x2666   :  { %v1637_v56 = vsel %vm1636_vm9, %v1633_v52, -inf }
0x2667   :  { %v1638_v60 = vmax.f32 %v1635_v55, %v1637_v56 }
0x2668   :  { %v1719_v20 = vpop.permute.xlu2 %1718 }
0x2669   :  { %v1639_v61 = vrot.slane %v1638_v60, 4 }
0x266b   :  { %v1640_v45 = vmax.f32 %v1638_v60, %v1639_v61 }
0x266d   :  { %v1641_v30 = vrot.slane %v1640_v45, 2 }
0x266f   :  { %v1642_v31 = vmax.f32 %v1640_v45, %v1641_v30 }
0x2671   :  { %v1643_v8 = vrot.slane %v1642_v31, 1 }
0x2673   :  { %v1644_v32 = vmax.f32 %v1642_v31, %v1643_v8 }
0x2675   :  { %v1645_v62 = vsub.f32 %v1632_v63, %v1644_v32  ;;  %v1646_v5 = vsub.f32 %v1633_v52, %v1644_v32 }
0x2677   :  { %v1647_v10 = vmul.f32 1.442695, %v1645_v62  ;;  %v1649_v6 = vmul.f32 1.442695, %v1646_v5 }
0x2679   :  { %3956 = vpow2.f32 %v1647_v10 }
0x267a   :  { %3958 = vpow2.f32 %v1649_v6 }
0x267f   :  { %v3957_v0 = vpop.eup %3956 }
0x2680   :  { %1653 = vperm.xlu0 %3787, %v3957_v0   ;;  %v3959_v33 = vpop.eup %3958 }
0x2688   :  { %1658 = vperm.xlu0 %3787, %v3959_v33  }
0x2690   :  { %1663 = vrot.lane.b32.xlu0 %v3957_v0, %s4174_s27 }
0x2691   :  { %3791 = vset.pattern.permute.xlu0 %v4180_v16 }
0x2698   :  { %1665 = vrot.lane.b32.xlu0 %v3959_v33, %s4174_s27 }
0x26f2   :  { %v1654_v9 = vpop.permute.xlu0 %1653 }
0x26f3   :  { %v1661_v41 = vmul.f32 %v1654_v9, %v4539_v15 }
0x26fa   :  { %v1659_v11 = vpop.permute.xlu0 %1658 }
0x26fb   :  { %v1662_v21 = vmul.f32 %v1659_v11, %v4561_v17 }
0x2702   :  { %v1664_v13 = vpop.permute.xlu0 %1663 }
0x2703   :  { %v1669_v23 = vsel %vm164_vm13, %v1661_v41, %v1664_v13 }
0x2704   :  { %v1673_v54 = vrot.slane %v1669_v23, 4 }
0x270a   :  { %v1666_v42 = vpop.permute.xlu0 %1665 }
0x270b   :  { %v1670_v4 = vsel %vm164_vm13, %v1662_v21, %v1666_v42 }
0x270c   :  { %v1674_v36 = vrot.slane %v1670_v4, 4 }
0x270e   :  { %v1675_v18 = vsel %vm62_vm1, %v1673_v54, %v1674_v36 }
0x270f   :  { %3693 = vmatpush.msk.msrb.mxu2 %vm1235_vm3, %v1675_v18 }
0x2710   :  { %3694 = vmatmul.msk.f32.vlgmr.msrb.gmra.mxu2 %vm1231_vm4, %v4480_v25 }
0x2793   :  { %v1695_v22 = vpop.f32.mrf.mxu2 }
0x2794   :  { %1700 = vperm.xlu0 %3791, %v1695_v22  }
0x279c   :  { %3793 = vset.pattern.permute.xlu0 %v4178_v58 }
0x2806   :  { %v1701_v14 = vpop.permute.xlu0 %1700 }
0x2807   :  { %3960 = vrcp.f32 %v1701_v14  ;;  %v1714_v34 = vand.u32 2147483648, %v1701_v14  ;;  %v1712_v37 = vand.u32 2147483647, %v1701_v14  ;;  %vm1708_vm1 = vweird.f32 %v1701_v14 }
0x2809   :  { %v1715_v40 = vor.u32 1.1754944e-38, %v1714_v34  ;;  %vm1713_vm6 = vcmp.eq.f32.partialorder %v1712_v37, 8.507059e+37 }
0x280d   :  { %v3961_v47 = vpop.eup %3960 }
0x280e   :  { %v1704_v24 = vmul.f32 %v3961_v47, %v1701_v14  ;;  %vm1709_vm10 = vweird.f32 %v3961_v47 }
0x280f   :  { %vm1710_vm5 = vmor %vm1708_vm1, %vm1709_vm10  ;;  %vm1840_vm10 = vcmask 64514   ;;  %vm1846_vm1 = vcmask 7170  }
0x2810   :  { %v1705_v29 = vsub.f32 1.0, %v1704_v24 }
0x2812   :  { %v1706_v35 = vmul.f32 %v3961_v47, %v1705_v29 }
0x2814   :  { %v1707_v38 = vadd.f32 %v3961_v47, %v1706_v35 }
0x2816   :  { %v1711_v43 = vsel %vm1710_vm5, %v3961_v47, %v1707_v38 }
0x2817   :  { %v1716_v46 = vsel %vm1713_vm6, %v1715_v40, %v1711_v43 }
0x2818   :  { %v1717_v2 = vmul.f32 %v1716_v46, %v1695_v22 }
0x281a   :  { %v1721_v49 = vsel %vm164_vm13, %v1717_v2, %v1719_v20 }
0x281b   :  { %3695 = vmatmul.msk.f32.vlgmr.msrb.gmra.mxu3 %vm1280_vm15, %v1721_v49 }
0x289e   :  { %v1744_v63 = vpop.f32.mrf.mxu3 }
0x289f   :  { %v1745_v52 = vadd.f32 %v1744_v63, %v1722_v50 }
0x28a1   :  { %v1747_v55 = vmul.f32 %v1745_v52, %v4254_v12 }
0x28a3   :  { %v3696_v56 = vmul.f32 -1.442695, %v1747_v55 }
0x28a5   :  { %3962 = vpow2.f32 %v3696_v56 }
0x28ab   :  { %v3963_v60 = vpop.eup %3962 }
0x28ac   :  { %v1751_v61 = vadd.f32 1.0, %v3963_v60 }
0x28ae   :  { %3964 = vrcp.f32 %v1751_v61  ;;  %v1763_v8 = vand.u32 2147483648, %v1751_v61  ;;  %v1761_v62 = vand.u32 2147483647, %v1751_v61  ;;  %vm1757_vm0 = vweird.f32 %v1751_v61 }
0x28b0   :  { %v1764_v5 = vor.u32 1.1754944e-38, %v1763_v8  ;;  %vm1762_vm9 = vcmp.eq.f32.partialorder %v1761_v62, 8.507059e+37  ;;  %v4676_v8 = vld [vmem:[#allocation4 + $0x78] ss:$0 sm:$0xff] }
0x28b4   :  { %v3965_v45 = vpop.eup %3964 }
0x28b5   :  { %v1753_v30 = vmul.f32 %v3965_v45, %v1751_v61  ;;  %vm1758_vm7 = vweird.f32 %v3965_v45  ;;  %v4664_v61 = vld [vmem:[#allocation4 + $0x70] sm:$0xff] }
0x28b6   :  { %vm1759_vm8 = vmor %vm1757_vm0, %vm1758_vm7 }
0x28b7   :  { %v1754_v31 = vsub.f32 1.0, %v1753_v30 }
0x28b9   :  { %v1755_v32 = vmul.f32 %v3965_v45, %v1754_v31 }
0x28bb   :  { %v1756_v10 = vadd.f32 %v3965_v45, %v1755_v32 }
0x28bd   :  { %v1760_v6 = vsel %vm1759_vm8, %v3965_v45, %v1756_v10  ;;  %v4669_v45 = vld [vmem:[#allocation4 + $0x68] sm:$0xff] }
0x28be   :  { %v1765_v0 = vsel %vm1762_vm9, %v1764_v5, %v1760_v6 }
0x28bf   :  { %v1767_v33 = vmul.f32 2.0, %v1765_v0  ;;  %v1769_v41 = vmul.f32 %v1765_v0, %v4607_v3 }
0x28c1   :  { %v3697_v9 = vadd.f32 -1.0, %v1767_v33 }
0x28c3   :  { %1771 = vrot.lane.b32.xlu1 %v3697_v9, %s4173_s26 }
0x2935   :  { %v1772_v11 = vpop.permute.xlu1 %1771 }
0x2936   :  { %v1774_v13 = vmul.f32 %v1772_v11, %v1765_v0 }
0x2938   :  { %1776 = vrot.lane.b32.xlu0 %v1774_v13, %s4174_s27 }
0x29aa   :  { %v1777_v21 = vpop.permute.xlu0 %1776 }
0x29ab   :  { %v4643_v23 = vadd.f32 %v1777_v21, %v1769_v41 }
0x29ad   :  { %3966 = vtanh.f32 %v4643_v23 }
0x29b3   :  { %v3967_v42 = vpop.eup %3966 }
0x29b4   :  { %1782 = vrot.lane.b32.xlu0 %v3967_v42, %s4175_s28 }
0x2a26   :  { %v1783_v4 = vpop.permute.xlu0 %1782 }
0x2a27   :  { %v1785_v54 = vmul.f32 %v1783_v4, %v1765_v0 }
0x2a29   :  { %1787 = vrot.lane.b32.xlu2 %v1785_v54, %s4176_s6 }
0x2a83   :  { %v1788_v36 = vpop.permute.xlu2 %1787 }
0x2a84   :  { %3698 = vmatmul.msk.f32.vlgmr.msra.gmra.mxu0 %vm164_vm13, %v1788_v36 }
0x2b01   :  { %v1808_v18 = vpop.f32.mrf.mxu0 }
0x2b02   :  { %v1809_v22 = vadd.f32 %v4432_v39, %v1808_v18  ;;  %v2078_v18 = vrot.slane %v4440_v44, 2 }
0x2b04   :  { %3699 = vmatpush.msk.msrb.mxu1 %vm1140_vm11, %v1809_v22  ;;  %v4686_v22 = vsel %vm1235_vm3, %v4448_v51, %v2078_v18 }
0x2b05   :  { %3700 = vmatmul.msk.f32.vlgmr.msrb.gmra.mxu1 %vm1133_vm14, %v4448_v51 }
0x2b82   :  { %v1831_v3 = vpop.f32.mrf.mxu1 }
0x2b83   :  { %v1835_v14 = vrot.slane %v1831_v3, 6  ;;  %v1915_v3 = vrot.slane %v4510_v57, 6 }
0x2b85   :  { %v1837_v47 = vadd.f32 %v1835_v14, %v4586_v19 }
0x2b87   :  { %3968 = vtanh.f32 %v1837_v47 }
0x2b8d   :  { %v3969_v24 = vpop.eup %3968 }
0x2b8e   :  { %v1839_v29 = vmul.f32 %v3969_v24, %v4457_v53  ;;  %v2091_v53 = vrot.slane %v4550_v28, 6 }
0x2b90   :  { %v1841_v34 = vsel %vm1840_vm10, %v1839_v29, 0.0 }
0x2b91   :  { %1842 = vadd.xlane.f32.xlu0 %v1841_v34 }
0x2c04   :  { %v1843_v35 = vpop.xlane.xlu0 %1842 }
0x2c05   :  { %v1844_v37 = vadd.f32 %v4465_v59, %v1843_v35 }
0x2c07   :  { %v1845_v39 = vmax.f32 %v1844_v37, 0.0 }
0x2c09   :  { %v1847_v38 = vsel %vm1846_vm1, %v1845_v39, -inf  ;;  %vm2063_vm1 = vcmask 64512  }
0x2c0a   :  { %v1848_v40 = vrot.slane %v1847_v38, 4 }
0x2c0c   :  { %v1849_v43 = vmax.f32 %v1847_v38, %v1848_v40 }
0x2c0e   :  { %v1850_v46 = vrot.slane %v1849_v43, 2 }
0x2c10   :  { %v1851_v2 = vmax.f32 %v1849_v43, %v1850_v46 }
0x2c12   :  { %v1852_v20 = vrot.slane %v1851_v2, 1 }
0x2c14   :  { %v1853_v49 = vmax.f32 %v1851_v2, %v1852_v20 }
0x2c16   :  { %v1854_v19 = vsub.f32 %v1845_v39, %v1853_v49 }
0x2c18   :  { %v1855_v50 = vmul.f32 1.442695, %v1854_v19 }
0x2c1a   :  { %3970 = vpow2.f32 %v1855_v50 }
0x2c20   :  { %v3971_v63 = vpop.eup %3970 }
0x2c21   :  { %1863 = vrot.lane.b32.xlu2 %v3971_v63, %s4174_s27  ;;  %1859 = vperm.xlu1 %3792, %v3971_v63   ;;  %v4697_v63 = vld [vmem:[#allocation4 + $0x80] ss:$0 sm:$0xff] }
0x2c29   :  { %2092 = vrot.lane.b32.xlu1 %v2091_v53, %s4176_s6 }
0x2c31   :  { %1911 = vrot.lane.b32.xlu1 %v1785_v54, %s4173_s26 }
0x2c7b   :  { %v1864_v55 = vpop.permute.xlu2 %1863 }
0x2c93   :  { %v1860_v59 = vpop.permute.xlu1 %1859 }
0x2c94   :  { %v1862_v52 = vmul.f32 %v1860_v59, %v4561_v17 }
0x2c96   :  { %v1866_v56 = vsel %vm164_vm13, %v1862_v52, %v1864_v55 }
0x2c97   :  { %v1868_v60 = vrot.slane %v1866_v56, 2 }
0x2c99   :  { %3701 = vmatpush.msk.msra.mxu2 %vm1235_vm3, %v1868_v60 }
0x2c9a   :  { %3702 = vmatmul.msk.f32.vlgmr.msra.gmra.mxu2 %vm1231_vm4, %v4480_v25 }
0x2c9b   :  { %2110 = vmatpush.msrb.mxu2 %v4664_v61  ;;  %v2093_v30 = vpop.permute.xlu1 %2092 }
0x2c9d   :  { %2111 = vmatpush.msrb.mxu2 %v4669_v45 }
0x2c9f   :  { %2356 = vmatpush.msra.mxu2 %v4664_v61 }
0x2ca1   :  { %2357 = vmatpush.msra.mxu2 %v4669_v45 }
0x2ca2   :  { %3708 = vmatmul.msk.f32.vlgmr.msrb.gmra.mxu2 %vm164_vm13, %v2093_v30 }
0x2ca3   :  { %v1912_v54 = vpop.permute.xlu1 %1911 }
0x2d1d   :  { %v1888_v31 = vpop.f32.mrf.mxu2 }
0x2d1e   :  { %1893 = vperm.xlu2 %3790, %v1888_v31  }
0x2d25   :  { %v2113_v32 = vpop.f32.mrf.mxu2 }
0x2d26   :  { %v2114_v62 = vadd.f32 %v4676_v8, %v2113_v32  ;;  %3805 = vset.pattern.permute.xlu2 %v4178_v58 }
0x2d28   :  { %3709 = vmatpush.msk.msrb.mxu3 %vm1140_vm11, %v2114_v62 }
0x2d78   :  { %v1894_v10 = vpop.permute.xlu2 %1893 }
0x2d79   :  { %3972 = vrcp.f32 %v1894_v10  ;;  %v1907_v33 = vand.u32 2147483648, %v1894_v10  ;;  %v1905_v11 = vand.u32 2147483647, %v1894_v10  ;;  %vm1901_vm6 = vweird.f32 %v1894_v10 }
0x2d7b   :  { %v1908_v41 = vor.u32 1.1754944e-38, %v1907_v33  ;;  %vm1906_vm0 = vcmp.eq.f32.partialorder %v1905_v11, 8.507059e+37 }
0x2d7f   :  { %v3973_v5 = vpop.eup %3972 }
0x2d80   :  { %v1897_v6 = vmul.f32 %v3973_v5, %v1894_v10  ;;  %vm1902_vm5 = vweird.f32 %v3973_v5 }
0x2d81   :  { %vm1903_vm7 = vmor %vm1901_vm6, %vm1902_vm5  ;;  %vm2174_vm5 = vcmask 7168   ;;  %vm2065_vm6 = vcmask 80896  }
0x2d82   :  { %v1898_v0 = vsub.f32 1.0, %v1897_v6 }
0x2d84   :  { %v1899_v9 = vmul.f32 %v3973_v5, %v1898_v0 }
0x2d86   :  { %v1900_v13 = vadd.f32 %v3973_v5, %v1899_v9 }
0x2d88   :  { %v1904_v21 = vsel %vm1903_vm7, %v3973_v5, %v1900_v13  ;;  %vm2067_vm7 = vcmask 97280  }
0x2d89   :  { %v1909_v42 = vsel %vm1906_vm0, %v1908_v41, %v1904_v21  ;;  %vm2069_vm0 = vcmask 113664  }
0x2d8a   :  { %v1910_v4 = vmul.f32 %v1909_v42, %v1888_v31 }
0x2d8c   :  { %v1914_v36 = vsel %vm164_vm13, %v1910_v4, %v1912_v54  ;;  %v4720_v54 = vld [vmem:[#allocation4 + $0x88] ss:$0 sm:$0xff] }
0x2d8d   :  { %3703 = vmatmul.msk.f32.vlgmr.msra.gmra.mxu3 %vm1280_vm15, %v1914_v36 }
0x2d95   :  { %3710 = vmatmul.msk.f32.vlgmr.msrb.gmra.mxu3 %vm1133_vm14, %v4686_v22 }
0x2d9d   :  { %3711 = vmatmul.msk.f32.gmra.mxu3 %vm1133_vm14, %v4686_v22 }
0x2da5   :  { %3712 = vmatmul.msk.f32.gmra.mxu3 %vm1133_vm14, %v4686_v22 }
0x2e10   :  { %v1937_v14 = vpop.f32.mrf.mxu3 }
0x2e11   :  { %v1938_v47 = vadd.f32 %v1937_v14, %v1915_v3 }
0x2e13   :  { %v1940_v24 = vmul.f32 %v1938_v47, %v4254_v12 }
0x2e15   :  { %v3704_v29 = vmul.f32 -1.442695, %v1940_v24 }
0x2e17   :  { %3974 = vpow2.f32 %v3704_v29 }
0x2e18   :  { %v2139_v34 = vpop.f32.mrf.mxu3 }
0x2e19   :  { %v2148_v31 = vadd.f32 %v2139_v34, %v4596_v1 }
0x2e1d   :  { %v3975_v51 = vpop.eup %3974 }
0x2e1e   :  { %v1944_v35 = vadd.f32 1.0, %v3975_v51 }
0x2e20   :  { %3976 = vrcp.f32 %v1944_v35  ;;  %v2142_v37 = vpop.f32.mrf.mxu3  ;;  %v1956_v2 = vand.u32 2147483648, %v1944_v35  ;;  %v1954_v20 = vand.u32 2147483647, %v1944_v35  ;;  %vm1950_vm8 = vweird.f32 %v1944_v35 }
0x2e21   :  { %v2149_v0 = vadd.f32 %v2142_v37, %v4598_v48 }
0x2e22   :  { %v1957_v19 = vor.u32 1.1754944e-38, %v1956_v2  ;;  %vm1955_vm10 = vcmp.eq.f32.partialorder %v1954_v20, 8.507059e+37 }
0x2e26   :  { %v3977_v39 = vpop.eup %3976 }
0x2e27   :  { %v1946_v38 = vmul.f32 %v3977_v39, %v1944_v35  ;;  %vm1951_vm3 = vweird.f32 %v3977_v39 }
0x2e28   :  { %v2145_v40 = vpop.f32.mrf.mxu3  ;;  %vm1952_vm9 = vmor %vm1950_vm8, %vm1951_vm3  ;;  %vm2072_vm3 = vcmask 146432   ;;  %vm2074_vm8 = vcmask 162816  }
0x2e29   :  { %v1947_v43 = vsub.f32 1.0, %v1946_v38  ;;  %v2150_v46 = vadd.f32 %v2145_v40, %v4600_v7 }
0x2e2b   :  { %3978 = vtanh.f32 %v2150_v46  ;;  %v1948_v57 = vmul.f32 %v3977_v39, %v1947_v43 }
0x2e2c   :  { %3980 = vtanh.f32 %v2148_v31 }
0x2e2d   :  { %v1949_v49 = vadd.f32 %v3977_v39, %v1948_v57  ;;  %3982 = vtanh.f32 %v2149_v0 }
0x2e2f   :  { %v1953_v50 = vsel %vm1952_vm9, %v3977_v39, %v1949_v49  ;;  %vm2076_vm9 = vcmask 179200  }
0x2e30   :  { %v4699_v59 = vsel %vm1955_vm10, %v1957_v19, %v1953_v50  ;;  %vm3601_vm10 = vcmask 17408  }
0x2e31   :  { %v3979_v52 = vpop.eup %3978  ;;  %v1960_v55 = vmul.f32 2.0, %v4699_v59  ;;  %v1962_v13 = vmul.f32 %v4699_v59, %v4643_v23 }
0x2e32   :  { %v2157_v56 = vmul.f32 %v3979_v52, %v4697_v63  ;;  %v3981_v32 = vpop.eup %3980 }
0x2e33   :  { %v3705_v60 = vadd.f32 -1.0, %v1960_v55  ;;  %v2155_v62 = vmul.f32 %v3981_v32, %v4697_v63  ;;  %v3983_v33 = vpop.eup %3982 }
0x2e34   :  { %v2164_v30 = vsel %vm2063_vm1, %v2157_v56, 0.0  ;;  %v2156_v9 = vmul.f32 %v3983_v33, %v4697_v63 }
0x2e35   :  { %2165 = vadd.xlane.f32.xlu0 %v2164_v30  ;;  %1964 = vrot.lane.b32.xlu2 %v3705_v60, %s4173_s26  ;;  %v2158_v10 = vsel %vm2063_vm1, %v2155_v62, 0.0 }
0x2e36   :  { %v2161_v11 = vsel %vm2063_vm1, %v2156_v9, 0.0 }
0x2e5e   :  { %2159 = vadd.xlane.f32.xlu2 %v2158_v10 }
0x2e76   :  { %2035 = vrot.lane.b32.xlu2 %v4440_v44, %s4181_s14 }
0x2e7e   :  { %2041 = vrot.lane.b32.xlu2 %v4440_v44, %s4182_s15 }
0x2e8f   :  { %v1965_v5 = vpop.permute.xlu2 %1964 }
0x2e90   :  { %v1967_v6 = vmul.f32 %v1965_v5, %v4699_v59  ;;  %v1980_v5 = vld [vmem:[#allocation4 + $0xf8] sm:$0xff] }
0x2e91   :  { %2002 = vmatpush.msrb.mxu0 %v1980_v5 }
0x2e92   :  { %1969 = vrot.lane.b32.xlu1 %v1967_v6, %s4174_s27  ;;  %v1979_v6 = vld [vmem:[#allocation4 + $0xf0] sm:$0xff] }
0x2e93   :  { %2003 = vmatpush.msrb.mxu0 %v1979_v6 }
0x2ea8   :  { %v2166_v36 = vpop.xlane.xlu0 %2165 }
0x2ea9   :  { %v2170_v3 = vadd.f32 %v4720_v54, %v2166_v36 }
0x2eab   :  { %v2173_v29 = vmax.f32 %v2170_v3, 0.0  ;;  %v4746_v3 = vld [vmem:[#allocation2] sm:$0xff] }
0x2ead   :  { %v2177_v37 = vsel %vm2174_vm5, %v2173_v29, -inf }
0x2ebc   :  { %2162 = vadd.xlane.f32.xlu1 %v2161_v11 }
0x2ed1   :  { %v2160_v4 = vpop.xlane.xlu2 %2159 }
0x2ed2   :  { %v2168_v18 = vadd.f32 %v4720_v54, %v2160_v4 }
0x2ed4   :  { %v2171_v47 = vmax.f32 %v2168_v18, 0.0 }
0x2ed5   :  { %2038 = vrot.lane.b32.xlu1 %v4440_v44, %s4170_s24  ;;  %s3610_s24 = sshll.u32 %s4188_s23, 4  ;;  %s3611_s24 = int_to_ptr.vmem [resolvable:$true] %s3610_s24 }
0x2ed6   :  { %v2175_v34 = vsel %vm2174_vm5, %v2171_v47, -inf }
0x2ed9   :  { %v2036_v0 = vpop.permute.xlu2 %2035 }
0x2ee1   :  { %v2042_v33 = vpop.permute.xlu2 %2041 }
0x2f04   :  { %v1970_v41 = vpop.permute.xlu1 %1969 }
0x2f05   :  { %v1972_v21 = vadd.f32 %v1970_v41, %v1962_v13 }
0x2f07   :  { %3984 = vtanh.f32 %v1972_v21 }
0x2f0d   :  { %v3985_v42 = vpop.eup %3984 }
0x2f0e   :  { %1975 = vrot.lane.b32.xlu0 %v3985_v42, %s4175_s28 }
0x2f2f   :  { %v2163_v14 = vpop.xlane.xlu1 %2162 }
0x2f30   :  { %v2169_v24 = vadd.f32 %v4720_v54, %v2163_v14 }
0x2f32   :  { %v2172_v23 = vmax.f32 %v2169_v24, 0.0 }
0x2f34   :  { %v2176_v51 = vsel %vm2174_vm5, %v2172_v23, -inf }
0x2f35   :  { %v2178_v35 = vmax.f32 %v2175_v34, %v2176_v51 }
0x2f37   :  { %v2179_v39 = vmax.f32 %v2178_v35, %v2177_v37 }
0x2f39   :  { %v2180_v38 = vrot.slane %v2179_v39, 4 }
0x2f3b   :  { %v2181_v40 = vmax.f32 %v2179_v39, %v2180_v38 }
0x2f3d   :  { %v2182_v43 = vrot.slane %v2181_v40, 2 }
0x2f3f   :  { %v2183_v46 = vmax.f32 %v2181_v40, %v2182_v43 }
0x2f41   :  { %v2184_v2 = vrot.slane %v2183_v46, 1 }
0x2f43   :  { %v2185_v57 = vmax.f32 %v2183_v46, %v2184_v2 }
0x2f45   :  { %v2187_v20 = vsub.f32 %v2172_v23, %v2185_v57  ;;  %v2188_v49 = vsub.f32 %v2173_v29, %v2185_v57  ;;  %v2186_v52 = vsub.f32 %v2171_v47, %v2185_v57  ;;  %v2009_v57 = vld [vmem:[#allocation4 + $0x110] sm:$0xff] }
0x2f46   :  { %2029 = vmatpush.msra.mxu1 %v2009_v57 }
0x2f47   :  { %v2191_v19 = vmul.f32 1.442695, %v2187_v20  ;;  %v2193_v50 = vmul.f32 1.442695, %v2188_v49  ;;  %v2189_v55 = vmul.f32 1.442695, %v2186_v52  ;;  %v2039_v11 = vpop.permute.xlu1 %2038 }
0x2f48   :  { %v2008_v20 = vld [vmem:[#allocation4 + $0x108] sm:$0xff]  ;;  %v3848_v49 = vld [vmem:[#allocation4 + $0x100] ss:$0 sm:$0xff] }
0x2f49   :  { %3986 = vpow2.f32 %v2191_v19  ;;  %2030 = vmatpush.msra.mxu1 %v2008_v20 }
0x2f4a   :  { %3988 = vpow2.f32 %v2193_v50 }
0x2f4b   :  { %3990 = vpow2.f32 %v2189_v55  ;;  %v4761_v55 = vld [vmem:[#allocation4 + $0xd8] sm:$0xff] }
0x2f4c   :  { %2288 = vmatpush.msrb.mxu1 %v4761_v55  ;;  %2527 = vmatpush.msrb.mxu2 %v4761_v55 }
0x2f4f   :  { %v3987_v56 = vpop.eup %3986 }
0x2f50   :  { %v3989_v60 = vpop.eup %3988  ;;  %2202 = vperm.xlu1 %3792, %v3987_v56  }
0x2f51   :  { %2207 = vperm.xlu0 %3793, %v3989_v60   ;;  %v3794_v30 = vpack.i.bf16 %v4440_v44, %v3989_v60  ;;  %v3991_v31 = vpop.eup %3990  ;;  %v4767_v60 = vld [vmem:[#allocation4 + $0xc8] sm:$0xff] }
0x2f52   :  { %v3799_v32 = vpack.i.bf16 %v3991_v31, %v3987_v56  ;;  %v4764_v56 = vld [vmem:[#allocation4 + $0xd0] sm:$0xff] }
0x2f53   :  { %3795 = vrot.lane.b32.xlu2 %v3794_v30, %s4174_s27  ;;  %2289 = vmatpush.msrb.mxu1 %v4764_v56  ;;  %v4771_v30 = vld [vmem:[#allocation4 + $0xc0] sm:$0xff] }
0x2f54   :  { %2528 = vmatpush.msrb.mxu2 %v4764_v56 }
0x2f55   :  { %2290 = vmatpush.msrb.mxu1 %v4767_v60 }
0x2f56   :  { %2529 = vmatpush.msrb.mxu2 %v4767_v60 }
0x2f57   :  { %2291 = vmatpush.msrb.mxu1 %v4771_v30 }
0x2f58   :  { %2197 = vperm.xlu1 %3792, %v3991_v31   ;;  %2530 = vmatpush.msrb.mxu2 %v4771_v30  ;;  %v3849_v31 = vld [vmem:[#allocation4 + $0x118] ss:$0 sm:$0xff] }
0x2f59   :  { %2044 = vrot.lane.b32.xlu0 %v4440_v44, %s4183_s16 }
0x2f5a   :  { %3804 = vset.pattern.permute.xlu0 %v4180_v16 }
0x2f5b   :  { %3800 = vrot.lane.b32.xlu2 %v3799_v32, %s4174_s27 }
0x2f60   :  { %2056 = vrot.lane.b32.xlu1 %v4440_v44, %s4184_s17 }
0x2f61   :  { %2047 = vrot.lane.b32.xlu0 %v4440_v44, %s4185_s18 }
0x2f63   :  { %2059 = vrot.lane.b32.xlu2 %v4440_v44, %s4186_s19 }
0x2f68   :  { %2269 = vrot.lane.b32.xlu1 %v2091_v53, %s4173_s26 }
0x2f80   :  { %v1976_v62 = vpop.permute.xlu0 %1975 }
0x2f81   :  { %v1978_v10 = vmul.f32 %v1976_v62, %v4699_v59 }
0x2f83   :  { %1984 = vrot.lane.b32.xlu0 %v1978_v10, %s4176_s6 }
0x2f8b   :  { %2053 = vrot.lane.b32.xlu0 %v4440_v44, %s4187_s20 }
0x2fad   :  { %v3796_v9 = vpop.permute.xlu2 %3795 }
0x2fae   :  { %v3797_v53 = vunpack.i.l.bf16 %v3796_v9  ;;  %v3798_v37 = vunpack.i.h.bf16 %v3796_v9 }
0x2fb5   :  { %v3801_v41 = vpop.permute.xlu2 %3800 }
0x2fb6   :  { %v3802_v42 = vunpack.i.l.bf16 %v3801_v41  ;;  %v3803_v18 = vunpack.i.h.bf16 %v3801_v41 }
0x2fbd   :  { %v2060_v40 = vpop.permute.xlu2 %2059 }
0x2fc2   :  { %v2203_v13 = vpop.permute.xlu1 %2202 }
0x2fc3   :  { %v2208_v28 = vpop.permute.xlu0 %2207  ;;  %v2211_v59 = vmul.f32 %v2203_v13, %v4539_v15  ;;  %v2062_v15 = vsel %vm1231_vm4, %v4480_v25, %v2036_v0  ;;  %vm2225_vm4 = vcmask 195584  }
0x2fc4   :  { %v2212_v21 = vmul.f32 %v2208_v28, %v4561_v17  ;;  %v2064_v29 = vsel %vm2063_vm1, %v2062_v15, %v2039_v11 }
0x2fc5   :  { %v2223_v44 = vsel %vm164_vm13, %v2211_v59, %v3802_v42  ;;  %v2066_v34 = vsel %vm2065_vm6, %v2064_v29, %v2042_v33 }
0x2fc6   :  { %v2224_v4 = vsel %vm164_vm13, %v2212_v21, %v3797_v53 }
0x2fc7   :  { %2242 = vmatpush.msra.mxu0 %v2224_v4  ;;  %v3841_v4 = vld [vmem:[#allocation4 + $0xe8] ss:$0 sm:$0xff] }
0x2fc9   :  { %2243 = vmatpush.msra.mxu0 %v2223_v44  ;;  %v4780_v44 = vadd.f32 %v3841_v4, %v4326_v26 }
0x2fca   :  { %v2198_v36 = vpop.permute.xlu1 %2197 }
0x2fcb   :  { %v2210_v14 = vmul.f32 %v4746_v3, %v2198_v36  ;;  %v2045_v24 = vpop.permute.xlu0 %2044 }
0x2fcc   :  { %v2068_v51 = vsel %vm2067_vm7, %v2066_v34, %v2045_v24 }
0x2fcd   :  { %v2222_v47 = vsel %vm164_vm13, %v2210_v14, %v3803_v18 }
0x2fce   :  { %2244 = vmatpush.msra.mxu0 %v2222_v47 }
0x2fd2   :  { %v2057_v25 = vpop.permute.xlu1 %2056 }
0x2fd3   :  { %v2048_v17 = vpop.permute.xlu0 %2047 }
0x2fd4   :  { %v2070_v35 = vsel %vm2069_vm0, %v2068_v51, %v2048_v17 }
0x2fd5   :  { %v2071_v38 = vsel %vm164_vm13, %v2070_v35, %v3798_v37 }
0x2fda   :  { %v2270_v59 = vpop.permute.xlu1 %2269 }
0x2ff5   :  { %v1985_v23 = vpop.permute.xlu0 %1984 }
0x2ff6   :  { %3706 = vmatmul.msk.f32.vlgmr.msrb.gmra.mxu0 %vm164_vm13, %v1985_v23 }
0x2ffd   :  { %v2054_v39 = vpop.permute.xlu0 %2053 }
0x2ffe   :  { %v2073_v43 = vsel %vm2072_vm3, %v2071_v38, %v2054_v39 }
0x2fff   :  { %v2075_v46 = vsel %vm2074_vm8, %v2073_v43, %v2057_v25 }
0x3000   :  { %v4755_v2 = vsel %vm2076_vm9, %v2075_v46, %v2060_v40 }
0x3001   :  { %3713 = vmatmul.msk.f32.vlgmr.msra.gmra.mxu0 %vm2225_vm4, %v4755_v2 }
0x3073   :  { %v2005_v19 = vpop.f32.mrf.mxu0 }
0x3074   :  { %v2006_v50 = vadd.f32 %v3848_v49, %v2005_v19 }
0x3076   :  { %3707 = vmatmul.msk.f32.vlgmr.msra.gmra.mxu1 %vm164_vm13, %v2006_v50 }
0x307e   :  { %v2246_v52 = vpop.f32.mrf.mxu0 }
0x307f   :  { %2251 = vperm.xlu0 %3804, %v2246_v52  }
0x3087   :  { %3811 = vset.pattern.permute.xlu0 %v4178_v58 }
0x30f1   :  { %v2252_v32 = vpop.permute.xlu0 %2251 }
0x30f2   :  { %3992 = vrcp.f32 %v2252_v32  ;;  %v2265_v33 = vand.u32 2147483648, %v2252_v32  ;;  %v2263_v11 = vand.u32 2147483647, %v2252_v32  ;;  %vm2259_vm7 = vweird.f32 %v2252_v32 }
0x30f3   :  { %v2032_v62 = vpop.f32.mrf.mxu1 }
0x30f4   :  { %v2033_v10 = vadd.f32 %v3849_v31, %v2032_v62  ;;  %v2266_v41 = vor.u32 1.1754944e-38, %v2265_v33  ;;  %vm2264_vm3 = vcmp.eq.f32.partialorder %v2263_v11, 8.507059e+37 }
0x30f6   :  { %3602 = vst.msk [vmem:[#allocation7] sm:$0x3] %vm3601_vm10, %v2033_v10 }
0x30f8   :  { %v3993_v5 = vpop.eup %3992 }
0x30f9   :  { %v2255_v6 = vmul.f32 %v3993_v5, %v2252_v32  ;;  %vm2260_vm6 = vweird.f32 %v3993_v5 }
0x30fa   :  { %vm2261_vm0 = vmor %vm2259_vm7, %vm2260_vm6 }
0x30fb   :  { %v2256_v0 = vsub.f32 1.0, %v2255_v6 }
0x30fd   :  { %v2257_v9 = vmul.f32 %v3993_v5, %v2256_v0 }
0x30ff   :  { %v2258_v13 = vadd.f32 %v3993_v5, %v2257_v9 }
0x3101   :  { %v2262_v28 = vsel %vm2261_vm0, %v3993_v5, %v2258_v13 }
0x3102   :  { %v2267_v53 = vsel %vm2264_vm3, %v2266_v41, %v2262_v28 }
0x3103   :  { %v2268_v21 = vmul.f32 %v2267_v53, %v2246_v52 }
0x3105   :  { %v2272_v42 = vsel %vm164_vm13, %v2268_v21, %v2270_v59 }
0x3106   :  { %3714 = vmatmul.msk.f32.vlgmr.msrb.gmra.mxu1 %vm1280_vm15, %v2272_v42 }
0x3183   :  { %v2293_v36 = vpop.f32.mrf.mxu1 }
0x3184   :  { %v2294_v18 = vadd.f32 %v2293_v36, %v4780_v44 }
0x3186   :  { %v2296_v14 = vmul.f32 %v2294_v18, %v4254_v12 }
0x3188   :  { %v3715_v47 = vmul.f32 -1.442695, %v2296_v14 }
0x318a   :  { %3994 = vpow2.f32 %v3715_v47 }
0x3190   :  { %v3995_v24 = vpop.eup %3994 }
0x3191   :  { %v2300_v17 = vadd.f32 1.0, %v3995_v24 }
0x3193   :  { %3996 = vrcp.f32 %v2300_v17  ;;  %v2312_v34 = vand.u32 2147483648, %v2300_v17  ;;  %v2310_v35 = vand.u32 2147483647, %v2300_v17  ;;  %vm2306_vm9 = vweird.f32 %v2300_v17 }
0x3195   :  { %v2313_v26 = vor.u32 1.1754944e-38, %v2312_v34  ;;  %vm2311_vm6 = vcmp.eq.f32.partialorder %v2310_v35, 8.507059e+37 }
0x3199   :  { %v3997_v15 = vpop.eup %3996 }
0x319a   :  { %v2302_v29 = vmul.f32 %v3997_v15, %v2300_v17  ;;  %vm2307_vm8 = vweird.f32 %v3997_v15 }
0x319b   :  { %vm2308_vm10 = vmor %vm2306_vm9, %vm2307_vm8 }
0x319c   :  { %v2303_v23 = vsub.f32 1.0, %v2302_v29 }
0x319e   :  { %v2304_v51 = vmul.f32 %v3997_v15, %v2303_v23 }
0x31a0   :  { %v2305_v37 = vadd.f32 %v3997_v15, %v2304_v51 }
0x31a2   :  { %v2309_v39 = vsel %vm2308_vm10, %v3997_v15, %v2305_v37 }
0x31a3   :  { %v2314_v38 = vsel %vm2311_vm6, %v2313_v26, %v2309_v39 }
0x31a4   :  { %v2316_v40 = vmul.f32 2.0, %v2314_v38  ;;  %v2318_v57 = vmul.f32 0.0, %v2314_v38 }
0x31a6   :  { %v3716_v25 = vadd.f32 -1.0, %v2316_v40 }
0x31a8   :  { %2320 = vrot.lane.b32.xlu2 %v3716_v25, %s4173_s26 }
0x3202   :  { %v2321_v43 = vpop.permute.xlu2 %2320 }
0x3203   :  { %v2323_v46 = vmul.f32 %v2321_v43, %v2314_v38 }
0x3205   :  { %2325 = vrot.lane.b32.xlu1 %v2323_v46, %s4174_s27 }
0x3277   :  { %v2326_v20 = vpop.permute.xlu1 %2325 }
0x3278   :  { %v4786_v49 = vadd.f32 %v2326_v20, %v2318_v57 }
0x327a   :  { %3998 = vtanh.f32 %v4786_v49 }
0x3280   :  { %v3999_v19 = vpop.eup %3998 }
0x3281   :  { %2331 = vrot.lane.b32.xlu2 %v3999_v19, %s4175_s28 }
0x32db   :  { %v2332_v50 = vpop.permute.xlu2 %2331 }
0x32dc   :  { %v4790_v52 = vmul.f32 %v2332_v50, %v2314_v38 }
0x32de   :  { %2336 = vrot.lane.b32.xlu0 %v4790_v52, %s4176_s6 }
0x3350   :  { %v2337_v31 = vpop.permute.xlu0 %2336 }
0x3351   :  { %2339 = vst.msk [vmem:[#allocation3] sm:$0x3] %vm232_vm12, %v2337_v31  ;;  %3717 = vmatmul.msk.f32.vlgmr.msra.gmra.mxu2 %vm164_vm13, %v2337_v31 }
0x33d4   :  { %v2359_v32 = vpop.f32.mrf.mxu2 }
0x33d5   :  { %v2360_v62 = vadd.f32 %v4676_v8, %v2359_v32 }
0x33d7   :  { %3718 = vmatpush.msk.msrb.mxu0 %vm1140_vm11, %v2360_v62 }
0x33d8   :  { %3719 = vmatmul.msk.f32.vlgmr.msrb.gmra.mxu0 %vm1133_vm14, %v4686_v22 }
0x33e0   :  { %3720 = vmatmul.msk.f32.gmra.mxu0 %vm1133_vm14, %v4686_v22 }
0x33e8   :  { %3721 = vmatmul.msk.f32.gmra.mxu0 %vm1133_vm14, %v4686_v22 }
0x3455   :  { %v2382_v10 = vpop.f32.mrf.mxu0 }
0x3456   :  { %v2391_v5 = vadd.f32 %v2382_v10, %v4596_v1 }
0x3458   :  { %4000 = vtanh.f32 %v2391_v5 }
0x345d   :  { %v2385_v6 = vpop.f32.mrf.mxu0 }
0x345e   :  { %v4001_v0 = vpop.eup %4000  ;;  %v2392_v33 = vadd.f32 %v2385_v6, %v4598_v48 }
0x345f   :  { %v2397_v9 = vmul.f32 %v4001_v0, %v4697_v63 }
0x3460   :  { %4002 = vtanh.f32 %v2392_v33 }
0x3461   :  { %v2400_v11 = vsel %vm2063_vm1, %v2397_v9, 0.0 }
0x3462   :  { %2401 = vadd.xlane.f32.xlu1 %v2400_v11  ;;  %v4825_v11 = vld [vmem:[#allocation2 + $0x10] sm:$0xff] }
0x3465   :  { %v2388_v13 = vpop.f32.mrf.mxu0 }
0x3466   :  { %v4003_v41 = vpop.eup %4002  ;;  %v2393_v28 = vadd.f32 %v2388_v13, %v4600_v7 }
0x3467   :  { %v2398_v53 = vmul.f32 %v4003_v41, %v4697_v63 }
0x3468   :  { %4004 = vtanh.f32 %v2393_v28 }
0x3469   :  { %v2403_v21 = vsel %vm2063_vm1, %v2398_v53, 0.0  ;;  %v4828_v53 = vld [vmem:[#allocation2 + $0x8] sm:$0xff] }
0x346a   :  { %2404 = vadd.xlane.f32.xlu2 %v2403_v21 }
0x346e   :  { %v4005_v59 = vpop.eup %4004 }
0x346f   :  { %v2399_v42 = vmul.f32 %v4005_v59, %v4697_v63 }
0x3471   :  { %v2406_v4 = vsel %vm2063_vm1, %v2399_v42, 0.0 }
0x3472   :  { %2407 = vadd.xlane.f32.xlu0 %v2406_v4 }
0x34d5   :  { %v2402_v36 = vpop.xlane.xlu1 %2401 }
0x34d6   :  { %v2409_v47 = vadd.f32 %v4720_v54, %v2402_v36 }
0x34d8   :  { %v2412_v17 = vmax.f32 %v2409_v47, 0.0 }
0x34da   :  { %v2415_v34 = vsel %vm2174_vm5, %v2412_v17, -inf }
0x34dd   :  { %v2405_v18 = vpop.xlane.xlu2 %2404 }
0x34de   :  { %v2410_v14 = vadd.f32 %v4720_v54, %v2405_v18 }
0x34e0   :  { %v2413_v24 = vmax.f32 %v2410_v14, 0.0 }
0x34e2   :  { %v2416_v29 = vsel %vm2174_vm5, %v2413_v24, -inf }
0x34e3   :  { %v2418_v35 = vmax.f32 %v2415_v34, %v2416_v29 }
0x34e5   :  { %v2408_v15 = vpop.xlane.xlu0 %2407 }
0x34e6   :  { %v2411_v23 = vadd.f32 %v4720_v54, %v2408_v15 }
0x34e8   :  { %v2414_v51 = vmax.f32 %v2411_v23, 0.0 }
0x34ea   :  { %v2417_v37 = vsel %vm2174_vm5, %v2414_v51, -inf }
0x34eb   :  { %v2419_v26 = vmax.f32 %v2418_v35, %v2417_v37 }
0x34ed   :  { %v2420_v39 = vrot.slane %v2419_v26, 4 }
0x34ef   :  { %v2421_v38 = vmax.f32 %v2419_v26, %v2420_v39 }
0x34f1   :  { %v2422_v40 = vrot.slane %v2421_v38, 2 }
0x34f3   :  { %v2423_v25 = vmax.f32 %v2421_v38, %v2422_v40  ;;  %v2510_v38 = vrot.slane %v4780_v44, 2 }
0x34f5   :  { %v2424_v43 = vrot.slane %v2423_v25, 1 }
0x34f7   :  { %v2425_v46 = vmax.f32 %v2423_v25, %v2424_v43 }
0x34f9   :  { %v2427_v57 = vsub.f32 %v2413_v24, %v2425_v46  ;;  %v2428_v20 = vsub.f32 %v2414_v51, %v2425_v46  ;;  %v2426_v31 = vsub.f32 %v2412_v17, %v2425_v46 }
0x34fb   :  { %v2431_v19 = vmul.f32 1.442695, %v2427_v57  ;;  %v2433_v50 = vmul.f32 1.442695, %v2428_v20  ;;  %v2429_v32 = vmul.f32 1.442695, %v2426_v31 }
0x34fd   :  { %4006 = vpow2.f32 %v2431_v19 }
0x34fe   :  { %4008 = vpow2.f32 %v2433_v50 }
0x34ff   :  { %4010 = vpow2.f32 %v2429_v32 }
0x3503   :  { %v4007_v62 = vpop.eup %4006 }
0x3504   :  { %v4009_v10 = vpop.eup %4008  ;;  %2442 = vperm.xlu2 %3805, %v4007_v62  }
0x3505   :  { %2447 = vperm.xlu1 %3792, %v4009_v10   ;;  %v3806_v5 = vpack.i.bf16 %v4007_v62, %v4009_v10  ;;  %v4011_v6 = vpop.eup %4010 }
0x3507   :  { %3807 = vrot.lane.b32.xlu0 %v3806_v5, %s4174_s27 }
0x350c   :  { %3812 = vset.pattern.permute.xlu2 %v4180_v16 }
0x350d   :  { %2453 = vrot.lane.b32.xlu1 %v4011_v6, %s4174_s27 }
0x350e   :  { %3819 = vset.pattern.permute.xlu1 %v4180_v16 }
0x350f   :  { %2437 = vperm.xlu0 %3811, %v4011_v6  }
0x3515   :  { %2505 = vrot.lane.b32.xlu1 %v4790_v52, %s4173_s26 }
0x355e   :  { %v2443_v33 = vpop.permute.xlu2 %2442 }
0x355f   :  { %v2451_v21 = vmul.f32 %v4828_v53, %v2443_v33 }
0x3577   :  { %v2448_v0 = vpop.permute.xlu1 %2447 }
0x3578   :  { %v2452_v13 = vmul.f32 %v4825_v11, %v2448_v0 }
0x3579   :  { %v3808_v9 = vpop.permute.xlu0 %3807 }
0x357a   :  { %v3810_v41 = vunpack.i.h.bf16 %v3808_v9  ;;  %v3809_v28 = vunpack.i.l.bf16 %v3808_v9 }
0x357c   :  { %v2464_v59 = vsel %vm164_vm13, %v2452_v13, %v3809_v28  ;;  %v2463_v42 = vsel %vm164_vm13, %v2451_v21, %v3810_v41 }
0x357d   :  { %2478 = vmatpush.msra.mxu1 %v2464_v59 }
0x357f   :  { %2479 = vmatpush.msra.mxu1 %v2463_v42  ;;  %v2454_v36 = vpop.permute.xlu1 %2453 }
0x3581   :  { %v2438_v52 = vpop.permute.xlu0 %2437 }
0x3582   :  { %v2450_v4 = vmul.f32 %v4746_v3, %v2438_v52 }
0x3584   :  { %v2462_v18 = vsel %vm164_vm13, %v2450_v4, %v2454_v36 }
0x3585   :  { %2480 = vmatpush.msra.mxu1 %v2462_v18 }
0x3586   :  { %3722 = vmatmul.msk.f32.vlgmr.msra.gmra.mxu1 %vm2225_vm4, %v4755_v2 }
0x3587   :  { %2595 = vmatpush.msrb.mxu1 %v4664_v61  ;;  %v2506_v26 = vpop.permute.xlu1 %2505 }
0x3589   :  { %2596 = vmatpush.msrb.mxu1 %v4669_v45 }
0x358b   :  { %2765 = vmatpush.msra.mxu1 %v4761_v55 }
0x358d   :  { %2766 = vmatpush.msra.mxu1 %v4764_v56 }
0x358f   :  { %2767 = vmatpush.msra.mxu1 %v4767_v60 }
0x3591   :  { %2768 = vmatpush.msra.mxu1 %v4771_v30 }
0x3603   :  { %v2482_v14 = vpop.f32.mrf.mxu1 }
0x3604   :  { %2487 = vperm.xlu2 %3812, %v2482_v14  }
0x360c   :  { %3813 = vset.pattern.permute.xlu2 %v4178_v58 }
0x365e   :  { %v2488_v47 = vpop.permute.xlu2 %2487 }
0x365f   :  { %4012 = vrcp.f32 %v2488_v47  ;;  %v2501_v61 = vand.u32 2147483648, %v2488_v47  ;;  %v2499_v45 = vand.u32 2147483647, %v2488_v47  ;;  %vm2495_vm0 = vweird.f32 %v2488_v47 }
0x3661   :  { %v2502_v34 = vor.u32 1.1754944e-38, %v2501_v61  ;;  %vm2500_vm8 = vcmp.eq.f32.partialorder %v2499_v45, 8.507059e+37 }
0x3665   :  { %v4013_v24 = vpop.eup %4012 }
0x3666   :  { %v2491_v17 = vmul.f32 %v4013_v24, %v2488_v47  ;;  %vm2496_vm7 = vweird.f32 %v4013_v24 }
0x3667   :  { %vm2497_vm3 = vmor %vm2495_vm0, %vm2496_vm7 }
0x3668   :  { %v2492_v15 = vsub.f32 1.0, %v2491_v17 }
0x366a   :  { %v2493_v29 = vmul.f32 %v4013_v24, %v2492_v15 }
0x366c   :  { %v2494_v23 = vadd.f32 %v4013_v24, %v2493_v29 }
0x366e   :  { %v2498_v51 = vsel %vm2497_vm3, %v4013_v24, %v2494_v23 }
0x366f   :  { %v2503_v35 = vsel %vm2500_vm8, %v2502_v34, %v2498_v51 }
0x3670   :  { %v2504_v37 = vmul.f32 %v2503_v35, %v2482_v14 }
0x3672   :  { %v2508_v39 = vsel %vm164_vm13, %v2504_v37, %v2506_v26 }
0x3673   :  { %3723 = vmatmul.msk.f32.vlgmr.msrb.gmra.mxu2 %vm1280_vm15, %v2508_v39 }
0x36f6   :  { %v2532_v40 = vpop.f32.mrf.mxu2 }
0x36f7   :  { %v2533_v25 = vadd.f32 %v2532_v40, %v2510_v38 }
0x36f9   :  { %v2535_v43 = vmul.f32 %v2533_v25, %v4254_v12 }
0x36fb   :  { %v3724_v46 = vmul.f32 -1.442695, %v2535_v43 }
0x36fd   :  { %4014 = vpow2.f32 %v3724_v46 }
0x3703   :  { %v4015_v57 = vpop.eup %4014 }
0x3704   :  { %v2539_v20 = vadd.f32 1.0, %v4015_v57 }
0x3706   :  { %4016 = vrcp.f32 %v2539_v20  ;;  %v2551_v32 = vand.u32 2147483648, %v2539_v20  ;;  %v2549_v10 = vand.u32 2147483647, %v2539_v20  ;;  %vm2545_vm10 = vweird.f32 %v2539_v20 }
0x3708   :  { %v2552_v6 = vor.u32 1.1754944e-38, %v2551_v32  ;;  %vm2550_vm7 = vcmp.eq.f32.partialorder %v2549_v10, 8.507059e+37 }
0x370c   :  { %v4017_v19 = vpop.eup %4016 }
0x370d   :  { %v2541_v50 = vmul.f32 %v4017_v19, %v2539_v20  ;;  %vm2546_vm9 = vweird.f32 %v4017_v19 }
0x370e   :  { %vm2547_vm6 = vmor %vm2545_vm10, %vm2546_vm9 }
0x370f   :  { %v2542_v31 = vsub.f32 1.0, %v2541_v50 }
0x3711   :  { %v2543_v62 = vmul.f32 %v4017_v19, %v2542_v31 }
0x3713   :  { %v2544_v5 = vadd.f32 %v4017_v19, %v2543_v62 }
0x3715   :  { %v2548_v0 = vsel %vm2547_vm6, %v4017_v19, %v2544_v5 }
0x3716   :  { %v2553_v33 = vsel %vm2550_vm7, %v2552_v6, %v2548_v0 }
0x3717   :  { %v2555_v9 = vmul.f32 2.0, %v2553_v33  ;;  %v2557_v21 = vmul.f32 %v2553_v33, %v4786_v49 }
0x3719   :  { %v3725_v13 = vadd.f32 -1.0, %v2555_v9 }
0x371b   :  { %2559 = vrot.lane.b32.xlu2 %v3725_v13, %s4173_s26 }
0x3775   :  { %v2560_v41 = vpop.permute.xlu2 %2559 }
0x3776   :  { %v2562_v28 = vmul.f32 %v2560_v41, %v2553_v33 }
0x3778   :  { %2564 = vrot.lane.b32.xlu0 %v2562_v28, %s4174_s27 }
0x37ea   :  { %v2565_v59 = vpop.permute.xlu0 %2564 }
0x37eb   :  { %v4851_v42 = vadd.f32 %v2565_v59, %v2557_v21 }
0x37ed   :  { %4018 = vtanh.f32 %v4851_v42 }
0x37f3   :  { %v4019_v52 = vpop.eup %4018 }
0x37f4   :  { %2570 = vrot.lane.b32.xlu1 %v4019_v52, %s4175_s28 }
0x3866   :  { %v2571_v4 = vpop.permute.xlu1 %2570 }
0x3867   :  { %v4855_v36 = vmul.f32 %v2571_v4, %v2553_v33 }
0x3869   :  { %2575 = vrot.lane.b32.xlu2 %v4855_v36, %s4176_s6 }
0x38c3   :  { %v2576_v18 = vpop.permute.xlu2 %2575 }
0x38c4   :  { %2578 = vst.msk [vmem:[#allocation3 + $0x2] sm:$0x3] %vm232_vm12, %v2576_v18  ;;  %3726 = vmatmul.msk.f32.vlgmr.msrb.gmra.mxu1 %vm164_vm13, %v2576_v18 }
0x3941   :  { %v2598_v49 = vpop.f32.mrf.mxu1 }
0x3942   :  { %v2599_v14 = vadd.f32 %v4676_v8, %v2598_v49 }
0x3944   :  { %3727 = vmatpush.msk.msra.mxu2 %vm1140_vm11, %v2599_v14 }
0x3945   :  { %3728 = vmatmul.msk.f32.vlgmr.msra.gmra.mxu2 %vm1133_vm14, %v4686_v22 }
0x394d   :  { %3729 = vmatmul.msk.f32.gmra.mxu2 %vm1133_vm14, %v4686_v22 }
0x3955   :  { %3730 = vmatmul.msk.f32.gmra.mxu2 %vm1133_vm14, %v4686_v22 }
0x39c8   :  { %v2621_v47 = vpop.f32.mrf.mxu2 }
0x39c9   :  { %v2630_v24 = vadd.f32 %v2621_v47, %v4596_v1 }
0x39cb   :  { %4020 = vtanh.f32 %v2630_v24 }
0x39d0   :  { %v2624_v17 = vpop.f32.mrf.mxu2 }
0x39d1   :  { %v4021_v15 = vpop.eup %4020  ;;  %v2631_v61 = vadd.f32 %v2624_v17, %v4598_v48 }
0x39d2   :  { %v2636_v8 = vmul.f32 %v4021_v15, %v4697_v63 }
0x39d3   :  { %4022 = vtanh.f32 %v2631_v61 }
0x39d4   :  { %v2639_v29 = vsel %vm2063_vm1, %v2636_v8, 0.0 }
0x39d5   :  { %2640 = vadd.xlane.f32.xlu0 %v2639_v29 }
0x39d8   :  { %v2627_v45 = vpop.f32.mrf.mxu2 }
0x39d9   :  { %v4023_v23 = vpop.eup %4022  ;;  %v2632_v34 = vadd.f32 %v2627_v45, %v4600_v7 }
0x39da   :  { %v2637_v51 = vmul.f32 %v4023_v23, %v4697_v63 }
0x39db   :  { %4024 = vtanh.f32 %v2632_v34 }
0x39dc   :  { %v2642_v35 = vsel %vm2063_vm1, %v2637_v51, 0.0 }
0x39dd   :  { %2643 = vadd.xlane.f32.xlu1 %v2642_v35 }
0x39e1   :  { %v4025_v37 = vpop.eup %4024 }
0x39e2   :  { %v2638_v26 = vmul.f32 %v4025_v37, %v4697_v63  ;;  %v4896_v37 = vld [vmem:[#allocation4 + $0x70] sm:$0xff] }
0x39e4   :  { %v2645_v39 = vsel %vm2063_vm1, %v2638_v26, 0.0  ;;  %v4899_v26 = vld [vmem:[#allocation4 + $0x68] sm:$0xff] }
0x39e5   :  { %2646 = vadd.xlane.f32.xlu2 %v2645_v39 }
0x3a48   :  { %v2641_v38 = vpop.xlane.xlu0 %2640 }
0x3a49   :  { %v2648_v43 = vadd.f32 %v4720_v54, %v2641_v38 }
0x3a4b   :  { %v2651_v57 = vmax.f32 %v2648_v43, 0.0 }
0x3a4d   :  { %v2654_v31 = vsel %vm2174_vm5, %v2651_v57, -inf }
0x3a50   :  { %v2644_v40 = vpop.xlane.xlu1 %2643 }
0x3a51   :  { %v2649_v25 = vadd.f32 %v4720_v54, %v2644_v40 }
0x3a53   :  { %v2652_v46 = vmax.f32 %v2649_v25, 0.0 }
0x3a55   :  { %v2655_v19 = vsel %vm2174_vm5, %v2652_v46, -inf }
0x3a56   :  { %v2657_v63 = vmax.f32 %v2654_v31, %v2655_v19 }
0x3a58   :  { %v2647_v20 = vpop.xlane.xlu2 %2646 }
0x3a59   :  { %v2650_v50 = vadd.f32 %v4720_v54, %v2647_v20 }
0x3a5b   :  { %v2653_v32 = vmax.f32 %v2650_v50, 0.0 }
0x3a5d   :  { %v2656_v62 = vsel %vm2174_vm5, %v2653_v32, -inf }
0x3a5e   :  { %v2658_v10 = vmax.f32 %v2657_v63, %v2656_v62 }
0x3a60   :  { %v2659_v5 = vrot.slane %v2658_v10, 4 }
0x3a62   :  { %v2660_v6 = vmax.f32 %v2658_v10, %v2659_v5  ;;  %v2748_v5 = vrot.slane %v4780_v44, 4 }
0x3a64   :  { %v2661_v0 = vrot.slane %v2660_v6, 2 }
0x3a66   :  { %v2662_v33 = vmax.f32 %v2660_v6, %v2661_v0 }
0x3a68   :  { %v2663_v9 = vrot.slane %v2662_v33, 1 }
0x3a6a   :  { %v2664_v13 = vmax.f32 %v2662_v33, %v2663_v9 }
0x3a6c   :  { %v2666_v41 = vsub.f32 %v2652_v46, %v2664_v13  ;;  %v2667_v28 = vsub.f32 %v2653_v32, %v2664_v13  ;;  %v2665_v52 = vsub.f32 %v2651_v57, %v2664_v13 }
0x3a6e   :  { %v2670_v21 = vmul.f32 1.442695, %v2666_v41  ;;  %v2672_v59 = vmul.f32 1.442695, %v2667_v28  ;;  %v2668_v54 = vmul.f32 1.442695, %v2665_v52 }
0x3a70   :  { %4026 = vpow2.f32 %v2670_v21 }
0x3a71   :  { %4028 = vpow2.f32 %v2672_v59 }
0x3a72   :  { %4030 = vpow2.f32 %v2668_v54 }
0x3a76   :  { %v4027_v4 = vpop.eup %4026 }
0x3a77   :  { %v4029_v18 = vpop.eup %4028  ;;  %2681 = vperm.xlu2 %3813, %v4027_v4  }
0x3a78   :  { %2686 = vperm.xlu0 %3811, %v4029_v18   ;;  %v3814_v49 = vpack.i.bf16 %v4027_v4, %v4029_v18  ;;  %v4031_v14 = vpop.eup %4030 }
0x3a7a   :  { %3815 = vrot.lane.b32.xlu1 %v3814_v49, %s4174_s27 }
0x3a7f   :  { %2692 = vrot.lane.b32.xlu2 %v4031_v14, %s4174_s27 }
0x3a80   :  { %2676 = vperm.xlu0 %3811, %v4031_v14  }
0x3a88   :  { %2744 = vrot.lane.b32.xlu0 %v4855_v36, %s4173_s26 }
0x3ad1   :  { %v2682_v47 = vpop.permute.xlu2 %2681 }
0x3ad2   :  { %v2690_v29 = vmul.f32 %v4828_v53, %v2682_v47 }
0x3ad9   :  { %v2693_v35 = vpop.permute.xlu2 %2692 }
0x3aea   :  { %v2687_v24 = vpop.permute.xlu0 %2686 }
0x3aeb   :  { %v2691_v15 = vmul.f32 %v4825_v11, %v2687_v24 }
0x3aec   :  { %v3816_v17 = vpop.permute.xlu1 %3815 }
0x3aed   :  { %v3818_v61 = vunpack.i.h.bf16 %v3816_v17  ;;  %v3817_v8 = vunpack.i.l.bf16 %v3816_v17 }
0x3aef   :  { %v2703_v45 = vsel %vm164_vm13, %v2691_v15, %v3817_v8  ;;  %v2702_v23 = vsel %vm164_vm13, %v2690_v29, %v3818_v61 }
0x3af0   :  { %2717 = vmatpush.msra.mxu3 %v2703_v45 }
0x3af2   :  { %2718 = vmatpush.msra.mxu3 %v2702_v23  ;;  %v2677_v34 = vpop.permute.xlu0 %2676 }
0x3af3   :  { %v2689_v51 = vmul.f32 %v4746_v3, %v2677_v34 }
0x3af5   :  { %v2701_v36 = vsel %vm164_vm13, %v2689_v51, %v2693_v35 }
0x3af6   :  { %2719 = vmatpush.msra.mxu3 %v2701_v36  ;;  %v4924_v36 = vld [vmem:[#allocation4 + $0x78] ss:$0 sm:$0xff] }
0x3af7   :  { %3731 = vmatmul.msk.f32.vlgmr.msra.gmra.mxu3 %vm2225_vm4, %v4755_v2 }
0x3af8   :  { %2833 = vmatpush.msrb.mxu3 %v4896_v37 }
0x3afa   :  { %2834 = vmatpush.msrb.mxu3 %v4899_v26  ;;  %v2745_v62 = vpop.permute.xlu0 %2744 }
0x3afc   :  { %3003 = vmatpush.msra.mxu3 %v4761_v55 }
0x3afe   :  { %3004 = vmatpush.msra.mxu3 %v4764_v56 }
0x3b00   :  { %3005 = vmatpush.msra.mxu3 %v4767_v60 }
0x3b02   :  { %3006 = vmatpush.msra.mxu3 %v4771_v30 }
0x3b7a   :  { %v2721_v39 = vpop.f32.mrf.mxu3 }
0x3b7b   :  { %2726 = vperm.xlu1 %3819, %v2721_v39  }
0x3b83   :  { %3820 = vset.pattern.permute.xlu1 %v4178_v58 }
0x3bed   :  { %v2727_v38 = vpop.permute.xlu1 %2726 }
0x3bee   :  { %4032 = vrcp.f32 %v2727_v38  ;;  %v2740_v46 = vand.u32 2147483648, %v2727_v38  ;;  %v2738_v20 = vand.u32 2147483647, %v2727_v38  ;;  %vm2734_vm3 = vweird.f32 %v2727_v38 }
0x3bf0   :  { %v2741_v50 = vor.u32 1.1754944e-38, %v2740_v46  ;;  %vm2739_vm9 = vcmp.eq.f32.partialorder %v2738_v20, 8.507059e+37 }
0x3bf4   :  { %v4033_v40 = vpop.eup %4032 }
0x3bf5   :  { %v2730_v25 = vmul.f32 %v4033_v40, %v2727_v38  ;;  %vm2735_vm0 = vweird.f32 %v4033_v40 }
0x3bf6   :  { %vm2736_vm8 = vmor %vm2734_vm3, %vm2735_vm0 }
0x3bf7   :  { %v2731_v43 = vsub.f32 1.0, %v2730_v25 }
0x3bf9   :  { %v2732_v57 = vmul.f32 %v4033_v40, %v2731_v43 }
0x3bfb   :  { %v2733_v19 = vadd.f32 %v4033_v40, %v2732_v57  ;;  %v4936_v57 = vld [vmem:[#allocation4 + $0x80] ss:$0 sm:$0xff] }
0x3bfd   :  { %v2737_v31 = vsel %vm2736_vm8, %v4033_v40, %v2733_v19 }
0x3bfe   :  { %v2742_v32 = vsel %vm2739_vm9, %v2741_v50, %v2737_v31 }
0x3bff   :  { %v2743_v63 = vmul.f32 %v2742_v32, %v2721_v39 }
0x3c01   :  { %v2747_v10 = vsel %vm164_vm13, %v2743_v63, %v2745_v62 }
0x3c02   :  { %3732 = vmatmul.msk.f32.vlgmr.msra.gmra.mxu1 %vm1280_vm15, %v2747_v10 }
0x3c7f   :  { %v2770_v6 = vpop.f32.mrf.mxu1 }
0x3c80   :  { %v2771_v0 = vadd.f32 %v2770_v6, %v2748_v5 }
0x3c82   :  { %v2773_v33 = vmul.f32 %v2771_v0, %v4254_v12 }
0x3c84   :  { %v3733_v9 = vmul.f32 -1.442695, %v2773_v33 }
0x3c86   :  { %4034 = vpow2.f32 %v3733_v9  ;;  %v4945_v9 = vld [vmem:[#allocation4 + $0x88] ss:$0 sm:$0xff] }
0x3c8c   :  { %v4035_v13 = vpop.eup %4034 }
0x3c8d   :  { %v2777_v41 = vadd.f32 1.0, %v4035_v13 }
0x3c8f   :  { %4036 = vrcp.f32 %v2777_v41  ;;  %v2789_v52 = vand.u32 2147483648, %v2777_v41  ;;  %v2787_v4 = vand.u32 2147483647, %v2777_v41  ;;  %vm2783_vm6 = vweird.f32 %v2777_v41 }
0x3c91   :  { %v2790_v49 = vor.u32 1.1754944e-38, %v2789_v52  ;;  %vm2788_vm0 = vcmp.eq.f32.partialorder %v2787_v4, 8.507059e+37 }
0x3c95   :  { %v4037_v28 = vpop.eup %4036 }
0x3c96   :  { %v2779_v21 = vmul.f32 %v4037_v28, %v2777_v41  ;;  %vm2784_vm10 = vweird.f32 %v4037_v28 }
0x3c97   :  { %vm2785_vm7 = vmor %vm2783_vm6, %vm2784_vm10 }
0x3c98   :  { %v2780_v59 = vsub.f32 1.0, %v2779_v21 }
0x3c9a   :  { %v2781_v54 = vmul.f32 %v4037_v28, %v2780_v59 }
0x3c9c   :  { %v2782_v18 = vadd.f32 %v4037_v28, %v2781_v54 }
0x3c9e   :  { %v2786_v14 = vsel %vm2785_vm7, %v4037_v28, %v2782_v18 }
0x3c9f   :  { %v2791_v47 = vsel %vm2788_vm0, %v2790_v49, %v2786_v14 }
0x3ca0   :  { %v2793_v24 = vmul.f32 2.0, %v2791_v47  ;;  %v2795_v8 = vmul.f32 %v2791_v47, %v4851_v42 }
0x3ca2   :  { %v3734_v17 = vadd.f32 -1.0, %v2793_v24 }
0x3ca4   :  { %2797 = vrot.lane.b32.xlu2 %v3734_v17, %s4173_s26 }
0x3cfe   :  { %v2798_v15 = vpop.permute.xlu2 %2797 }
0x3cff   :  { %v2800_v61 = vmul.f32 %v2798_v15, %v2791_v47 }
0x3d01   :  { %2802 = vrot.lane.b32.xlu1 %v2800_v61, %s4174_s27 }
0x3d73   :  { %v2803_v29 = vpop.permute.xlu1 %2802 }
0x3d74   :  { %v4914_v45 = vadd.f32 %v2803_v29, %v2795_v8 }
0x3d76   :  { %4038 = vtanh.f32 %v4914_v45 }
0x3d7c   :  { %v4039_v23 = vpop.eup %4038 }
0x3d7d   :  { %2808 = vrot.lane.b32.xlu0 %v4039_v23, %s4175_s28 }
0x3def   :  { %v2809_v34 = vpop.permute.xlu0 %2808 }
0x3df0   :  { %v4918_v51 = vmul.f32 %v2809_v34, %v2791_v47 }
0x3df2   :  { %2813 = vrot.lane.b32.xlu2 %v4918_v51, %s4176_s6 }
0x3e4c   :  { %v2814_v35 = vpop.permute.xlu2 %2813 }
0x3e4d   :  { %2816 = vst.msk [vmem:[#allocation3 + $0x4] sm:$0x3] %vm232_vm12, %v2814_v35  ;;  %3735 = vmatmul.msk.f32.vlgmr.msrb.gmra.mxu3 %vm164_vm13, %v2814_v35 }
0x3ed0   :  { %v2836_v42 = vpop.f32.mrf.mxu3 }
0x3ed1   :  { %v2837_v39 = vadd.f32 %v4924_v36, %v2836_v42 }
0x3ed3   :  { %3736 = vmatpush.msk.msra.mxu0 %vm1140_vm11, %v2837_v39 }
0x3ed4   :  { %3737 = vmatmul.msk.f32.vlgmr.msra.gmra.mxu0 %vm1133_vm14, %v4686_v22 }
0x3edc   :  { %3738 = vmatmul.msk.f32.gmra.mxu0 %vm1133_vm14, %v4686_v22 }
0x3ee4   :  { %3739 = vmatmul.msk.f32.gmra.mxu0 %vm1133_vm14, %v4686_v22 }
0x3f51   :  { %v2859_v38 = vpop.f32.mrf.mxu0 }
0x3f52   :  { %v2868_v40 = vadd.f32 %v2859_v38, %v4596_v1 }
0x3f54   :  { %4040 = vtanh.f32 %v2868_v40 }
0x3f59   :  { %v2862_v25 = vpop.f32.mrf.mxu0 }
0x3f5a   :  { %v4041_v43 = vpop.eup %4040  ;;  %v2869_v46 = vadd.f32 %v2862_v25, %v4598_v48 }
0x3f5b   :  { %v2874_v20 = vmul.f32 %v4936_v57, %v4041_v43 }
0x3f5c   :  { %4042 = vtanh.f32 %v2869_v46 }
0x3f5d   :  { %v2877_v19 = vsel %vm2063_vm1, %v2874_v20, 0.0 }
0x3f5e   :  { %2878 = vadd.xlane.f32.xlu1 %v2877_v19 }
0x3f61   :  { %v2865_v50 = vpop.f32.mrf.mxu0 }
0x3f62   :  { %v4043_v31 = vpop.eup %4042  ;;  %v2870_v32 = vadd.f32 %v2865_v50, %v4600_v7 }
0x3f63   :  { %v2875_v63 = vmul.f32 %v4936_v57, %v4043_v31 }
0x3f64   :  { %4044 = vtanh.f32 %v2870_v32 }
0x3f65   :  { %v2880_v62 = vsel %vm2063_vm1, %v2875_v63, 0.0 }
0x3f66   :  { %2881 = vadd.xlane.f32.xlu0 %v2880_v62 }
0x3f6a   :  { %v4045_v10 = vpop.eup %4044 }
0x3f6b   :  { %v2876_v5 = vmul.f32 %v4936_v57, %v4045_v10 }
0x3f6d   :  { %v2883_v6 = vsel %vm2063_vm1, %v2876_v5, 0.0 }
0x3f6e   :  { %2884 = vadd.xlane.f32.xlu2 %v2883_v6 }
0x3fd1   :  { %v2879_v0 = vpop.xlane.xlu1 %2878 }
0x3fd2   :  { %v2886_v41 = vadd.f32 %v4945_v9, %v2879_v0 }
0x3fd4   :  { %v2889_v21 = vmax.f32 %v2886_v41, 0.0 }
0x3fd6   :  { %v2892_v4 = vsel %vm2174_vm5, %v2889_v21, -inf }
0x3fd9   :  { %v2882_v33 = vpop.xlane.xlu0 %2881 }
0x3fda   :  { %v2887_v13 = vadd.f32 %v4945_v9, %v2882_v33 }
0x3fdc   :  { %v2890_v28 = vmax.f32 %v2887_v13, 0.0 }
0x3fde   :  { %v2893_v52 = vsel %vm2174_vm5, %v2890_v28, -inf }
0x3fdf   :  { %v2895_v49 = vmax.f32 %v2892_v4, %v2893_v52 }
0x3fe1   :  { %v2885_v59 = vpop.xlane.xlu2 %2884 }
0x3fe2   :  { %v2888_v54 = vadd.f32 %v4945_v9, %v2885_v59 }
0x3fe4   :  { %v2891_v18 = vmax.f32 %v2888_v54, 0.0 }
0x3fe6   :  { %v2894_v14 = vsel %vm2174_vm5, %v2891_v18, -inf }
0x3fe7   :  { %v2896_v47 = vmax.f32 %v2895_v49, %v2894_v14  ;;  %v2986_v14 = vrot.slane %v4780_v44, 6 }
0x3fe9   :  { %v2897_v24 = vrot.slane %v2896_v47, 4 }
0x3feb   :  { %v2898_v17 = vmax.f32 %v2896_v47, %v2897_v24 }
0x3fed   :  { %v2899_v15 = vrot.slane %v2898_v17, 2 }
0x3fef   :  { %v2900_v61 = vmax.f32 %v2898_v17, %v2899_v15 }
0x3ff1   :  { %v2901_v8 = vrot.slane %v2900_v61, 1 }
0x3ff3   :  { %v2902_v29 = vmax.f32 %v2900_v61, %v2901_v8 }
0x3ff5   :  { %v2904_v23 = vsub.f32 %v2890_v28, %v2902_v29  ;;  %v2905_v34 = vsub.f32 %v2891_v18, %v2902_v29  ;;  %v2903_v39 = vsub.f32 %v2889_v21, %v2902_v29 }
0x3ff7   :  { %v2908_v35 = vmul.f32 1.442695, %v2904_v23  ;;  %v2910_v42 = vmul.f32 1.442695, %v2905_v34  ;;  %v2906_v38 = vmul.f32 1.442695, %v2903_v39 }
0x3ff9   :  { %4046 = vpow2.f32 %v2908_v35 }
0x3ffa   :  { %4048 = vpow2.f32 %v2910_v42 }
0x3ffb   :  { %4050 = vpow2.f32 %v2906_v38 }
0x3fff   :  { %v4047_v40 = vpop.eup %4046 }
0x4000   :  { %v4049_v25 = vpop.eup %4048  ;;  %2919 = vperm.xlu0 %3811, %v4047_v40  }
0x4001   :  { %2924 = vperm.xlu1 %3820, %v4049_v25   ;;  %v3821_v43 = vpack.i.bf16 %v4047_v40, %v4049_v25  ;;  %v4051_v46 = vpop.eup %4050 }
0x4003   :  { %3822 = vrot.lane.b32.xlu2 %v3821_v43, %s4174_s27 }
0x4008   :  { %2914 = vperm.xlu0 %3811, %v4051_v46  }
0x4009   :  { %2930 = vrot.lane.b32.xlu1 %v4051_v46, %s4174_s27 }
0x400b   :  { %2982 = vrot.lane.b32.xlu2 %v4918_v51, %s4173_s26 }
0x4010   :  { %3826 = vset.pattern.permute.xlu0 %v4180_v16 }
0x405d   :  { %v3823_v20 = vpop.permute.xlu2 %3822 }
0x405e   :  { %v3824_v31 = vunpack.i.l.bf16 %v3823_v20  ;;  %v3825_v62 = vunpack.i.h.bf16 %v3823_v20 }
0x4072   :  { %v2920_v19 = vpop.permute.xlu0 %2919 }
0x4073   :  { %v2925_v50 = vpop.permute.xlu1 %2924  ;;  %v2928_v63 = vmul.f32 %v4828_v53, %v2920_v19 }
0x4074   :  { %v2929_v32 = vmul.f32 %v4825_v11, %v2925_v50 }
0x4075   :  { %v2940_v5 = vsel %vm164_vm13, %v2928_v63, %v3825_v62 }
0x4076   :  { %v2941_v10 = vsel %vm164_vm13, %v2929_v32, %v3824_v31 }
0x4077   :  { %2955 = vmatpush.msrb.mxu1 %v2941_v10 }
0x4079   :  { %2956 = vmatpush.msrb.mxu1 %v2940_v5 }
0x407a   :  { %v2915_v6 = vpop.permute.xlu0 %2914 }
0x407b   :  { %v2927_v51 = vmul.f32 %v4746_v3, %v2915_v6  ;;  %v2931_v0 = vpop.permute.xlu1 %2930 }
0x407d   :  { %v2939_v33 = vsel %vm164_vm13, %v2927_v51, %v2931_v0 }
0x407e   :  { %2957 = vmatpush.msrb.mxu1 %v2939_v33 }
0x407f   :  { %3740 = vmatmul.msk.f32.vlgmr.msrb.gmra.mxu1 %vm2225_vm4, %v4755_v2 }
0x4080   :  { %3071 = vmatpush.msra.mxu1 %v4896_v37 }
0x4082   :  { %3072 = vmatpush.msra.mxu1 %v4899_v26 }
0x4084   :  { %3239 = vmatpush.msrb.mxu1 %v4761_v55 }
0x4086   :  { %3240 = vmatpush.msrb.mxu1 %v4764_v56 }
0x4088   :  { %3241 = vmatpush.msrb.mxu1 %v4767_v60 }
0x408a   :  { %3242 = vmatpush.msrb.mxu1 %v4771_v30  ;;  %v2983_v30 = vpop.permute.xlu2 %2982 }
0x40fc   :  { %v2959_v3 = vpop.f32.mrf.mxu1 }
0x40fd   :  { %2964 = vperm.xlu0 %3826, %v2959_v3  }
0x416f   :  { %v2965_v13 = vpop.permute.xlu0 %2964 }
0x4170   :  { %4052 = vrcp.f32 %v2965_v13  ;;  %v2978_v59 = vand.u32 2147483648, %v2965_v13  ;;  %v2976_v54 = vand.u32 2147483647, %v2965_v13  ;;  %vm2972_vm8 = vweird.f32 %v2965_v13 }
0x4172   :  { %v2979_v55 = vor.u32 1.1754944e-38, %v2978_v59  ;;  %vm2977_vm10 = vcmp.eq.f32.partialorder %v2976_v54, 8.507059e+37 }
0x4176   :  { %v4053_v41 = vpop.eup %4052 }
0x4177   :  { %v2968_v28 = vmul.f32 %v4053_v41, %v2965_v13  ;;  %vm2973_vm3 = vweird.f32 %v4053_v41 }
0x4178   :  { %vm2974_vm9 = vmor %vm2972_vm8, %vm2973_vm3 }
0x4179   :  { %v2969_v21 = vsub.f32 1.0, %v2968_v28 }
0x417b   :  { %v2970_v52 = vmul.f32 %v4053_v41, %v2969_v21 }
0x417d   :  { %v2971_v4 = vadd.f32 %v4053_v41, %v2970_v52 }
0x417f   :  { %v2975_v56 = vsel %vm2974_vm9, %v4053_v41, %v2971_v4 }
0x4180   :  { %v2980_v60 = vsel %vm2977_vm10, %v2979_v55, %v2975_v56 }
0x4181   :  { %v2981_v18 = vmul.f32 %v2980_v60, %v2959_v3 }
0x4183   :  { %v2985_v49 = vsel %vm164_vm13, %v2981_v18, %v2983_v30 }
0x4184   :  { %3741 = vmatmul.msk.f32.vlgmr.msra.gmra.mxu3 %vm1280_vm15, %v2985_v49 }
0x4207   :  { %v3008_v47 = vpop.f32.mrf.mxu3 }
0x4208   :  { %v3009_v24 = vadd.f32 %v3008_v47, %v2986_v14 }
0x420a   :  { %v3011_v17 = vmul.f32 %v3009_v24, %v4254_v12 }
0x420c   :  { %v3742_v15 = vmul.f32 -1.442695, %v3011_v17 }
0x420e   :  { %4054 = vpow2.f32 %v3742_v15 }
0x4214   :  { %v4055_v61 = vpop.eup %4054 }
0x4215   :  { %v3015_v8 = vadd.f32 1.0, %v4055_v61 }
0x4217   :  { %4056 = vrcp.f32 %v3015_v8  ;;  %v3027_v35 = vand.u32 2147483648, %v3015_v8  ;;  %v3025_v39 = vand.u32 2147483647, %v3015_v8  ;;  %vm3021_vm7 = vweird.f32 %v3015_v8 }
0x4219   :  { %v3028_v44 = vor.u32 1.1754944e-38, %v3027_v35  ;;  %vm3026_vm3 = vcmp.eq.f32.partialorder %v3025_v39, 8.507059e+37 }
0x421d   :  { %v4057_v29 = vpop.eup %4056 }
0x421e   :  { %v3017_v23 = vmul.f32 %v4057_v29, %v3015_v8  ;;  %vm3022_vm6 = vweird.f32 %v4057_v29 }
0x421f   :  { %vm3023_vm0 = vmor %vm3021_vm7, %vm3022_vm6 }
0x4220   :  { %v3018_v34 = vsub.f32 1.0, %v3017_v23 }
0x4222   :  { %v3019_v42 = vmul.f32 %v4057_v29, %v3018_v34 }
0x4224   :  { %v3020_v38 = vadd.f32 %v4057_v29, %v3019_v42 }
0x4226   :  { %v3024_v40 = vsel %vm3023_vm0, %v4057_v29, %v3020_v38 }
0x4227   :  { %v3029_v25 = vsel %vm3026_vm3, %v3028_v44, %v3024_v40 }
0x4228   :  { %v3031_v43 = vmul.f32 2.0, %v3029_v25  ;;  %v3033_v50 = vmul.f32 %v3029_v25, %v4914_v45 }
0x422a   :  { %v3743_v46 = vadd.f32 -1.0, %v3031_v43 }
0x422c   :  { %3035 = vrot.lane.b32.xlu1 %v3743_v46, %s4173_s26 }
0x429e   :  { %v3036_v20 = vpop.permute.xlu1 %3035 }
0x429f   :  { %v3038_v19 = vmul.f32 %v3036_v20, %v3029_v25 }
0x42a1   :  { %3040 = vrot.lane.b32.xlu2 %v3038_v19, %s4174_s27 }
0x42fb   :  { %v3041_v31 = vpop.permute.xlu2 %3040 }
0x42fc   :  { %v4979_v32 = vadd.f32 %v3041_v31, %v3033_v50 }
0x42fe   :  { %4058 = vtanh.f32 %v4979_v32 }
0x4304   :  { %v4059_v63 = vpop.eup %4058 }
0x4305   :  { %3046 = vrot.lane.b32.xlu1 %v4059_v63, %s4175_s28 }
0x4377   :  { %v3047_v62 = vpop.permute.xlu1 %3046 }
0x4378   :  { %v4983_v10 = vmul.f32 %v3047_v62, %v3029_v25 }
0x437a   :  { %3051 = vrot.lane.b32.xlu0 %v4983_v10, %s4176_s6 }
0x43ec   :  { %v3052_v5 = vpop.permute.xlu0 %3051 }
0x43ed   :  { %3054 = vst.msk [vmem:[#allocation3 + $0x6] sm:$0x3] %vm232_vm12, %v3052_v5  ;;  %3744 = vmatmul.msk.f32.vlgmr.msra.gmra.mxu1 %vm164_vm13, %v3052_v5 }
0x446a   :  { %v3074_v45 = vpop.f32.mrf.mxu1 }
0x446b   :  { %v3075_v6 = vadd.f32 %v4924_v36, %v3074_v45 }
0x446d   :  { %3745 = vmatpush.msk.msrb.mxu2 %vm1140_vm11, %v3075_v6 }
0x446e   :  { %3746 = vmatmul.msk.f32.vlgmr.msrb.gmra.mxu2 %vm1133_vm14, %v4686_v22 }
0x4476   :  { %3747 = vmatmul.msk.f32.gmra.mxu2 %vm1133_vm14, %v4686_v22 }
0x447e   :  { %3748 = vmatmul.msk.f32.gmra.mxu2 %vm1133_vm14, %v4686_v22 }
0x44f1   :  { %v3097_v51 = vpop.f32.mrf.mxu2 }
0x44f2   :  { %v3106_v0 = vadd.f32 %v3097_v51, %v4596_v1 }
0x44f4   :  { %4060 = vtanh.f32 %v3106_v0 }
0x44f9   :  { %v3100_v33 = vpop.f32.mrf.mxu2 }
0x44fa   :  { %v4061_v3 = vpop.eup %4060  ;;  %v3107_v13 = vadd.f32 %v3100_v33, %v4598_v48 }
0x44fb   :  { %v3112_v41 = vmul.f32 %v4936_v57, %v4061_v3 }
0x44fc   :  { %4062 = vtanh.f32 %v3107_v13 }
0x44fd   :  { %v3115_v28 = vsel %vm2063_vm1, %v3112_v41, 0.0 }
0x44fe   :  { %3116 = vadd.xlane.f32.xlu2 %v3115_v28 }
0x4501   :  { %v3103_v21 = vpop.f32.mrf.mxu2 }
0x4502   :  { %v4063_v59 = vpop.eup %4062  ;;  %v3108_v52 = vadd.f32 %v3103_v21, %v4600_v7 }
0x4503   :  { %v3113_v54 = vmul.f32 %v4936_v57, %v4063_v59  ;;  %v5021_v59 = vld [vmem:[#allocation2] sm:$0xff] }
0x4504   :  { %4064 = vtanh.f32 %v3108_v52 }
0x4505   :  { %v3118_v4 = vsel %vm2063_vm1, %v3113_v54, 0.0 }
0x4506   :  { %3119 = vadd.xlane.f32.xlu1 %v3118_v4  ;;  %v4111_v4 = vld [vmem:[#allocation4 + $0xc8] sm:$0xff] }
0x450a   :  { %v4065_v55 = vpop.eup %4064 }
0x450b   :  { %v3114_v56 = vmul.f32 %v4936_v57, %v4065_v55  ;;  %v4112_v55 = vld [vmem:[#allocation4 + $0xc0] sm:$0xff] }
0x450d   :  { %v3121_v60 = vsel %vm2063_vm1, %v3114_v56, 0.0 }
0x450e   :  { %3122 = vadd.xlane.f32.xlu0 %v3121_v60 }
0x4571   :  { %v3117_v18 = vpop.xlane.xlu2 %3116 }
0x4572   :  { %v3124_v14 = vadd.f32 %v4945_v9, %v3117_v18 }
0x4574   :  { %v3127_v24 = vmax.f32 %v3124_v14, 0.0 }
0x4576   :  { %v3130_v8 = vsel %vm2174_vm5, %v3127_v24, -inf }
0x4579   :  { %v3120_v30 = vpop.xlane.xlu1 %3119 }
0x457a   :  { %v3125_v49 = vadd.f32 %v4945_v9, %v3120_v30 }
0x457c   :  { %v3128_v47 = vmax.f32 %v3125_v49, 0.0 }
0x457e   :  { %v3131_v15 = vsel %vm2174_vm5, %v3128_v47, -inf }
0x457f   :  { %v3133_v23 = vmax.f32 %v3130_v8, %v3131_v15 }
0x4581   :  { %v3123_v17 = vpop.xlane.xlu0 %3122 }
0x4582   :  { %v3126_v61 = vadd.f32 %v4945_v9, %v3123_v17 }
0x4584   :  { %v3129_v29 = vmax.f32 %v3126_v61, 0.0 }
0x4586   :  { %v3132_v34 = vsel %vm2174_vm5, %v3129_v29, -inf }
0x4587   :  { %v3134_v35 = vmax.f32 %v3133_v23, %v3132_v34 }
0x4589   :  { %v3135_v42 = vrot.slane %v3134_v35, 4 }
0x458b   :  { %v3136_v39 = vmax.f32 %v3134_v35, %v3135_v42 }
0x458d   :  { %v3137_v38 = vrot.slane %v3136_v39, 2 }
0x458f   :  { %v3138_v44 = vmax.f32 %v3136_v39, %v3137_v38 }
0x4591   :  { %v3139_v40 = vrot.slane %v3138_v44, 1 }
0x4593   :  { %v3140_v25 = vmax.f32 %v3138_v44, %v3139_v40 }
0x4595   :  { %v3142_v43 = vsub.f32 %v3128_v47, %v3140_v25  ;;  %v3143_v46 = vsub.f32 %v3129_v29, %v3140_v25  ;;  %v3141_v50 = vsub.f32 %v3127_v24, %v3140_v25  ;;  %v4113_v29 = vld [vmem:[#allocation4 + $0xe8] ss:$0 sm:$0xff] }
0x4596   :  { %v5033_v23 = vadd.f32 %v4113_v29, %v4328_v27 }
0x4597   :  { %v3146_v20 = vmul.f32 1.442695, %v3142_v43  ;;  %v3148_v19 = vmul.f32 1.442695, %v3143_v46  ;;  %v3144_v31 = vmul.f32 1.442695, %v3141_v50 }
0x4599   :  { %4066 = vpow2.f32 %v3146_v20 }
0x459a   :  { %4068 = vpow2.f32 %v3148_v19 }
0x459b   :  { %4070 = vpow2.f32 %v3144_v31 }
0x459f   :  { %v4067_v63 = vpop.eup %4066 }
0x45a0   :  { %v4069_v62 = vpop.eup %4068  ;;  %3157 = vperm.xlu1 %3820, %v4067_v63  }
0x45a1   :  { %3162 = vperm.xlu2 %3813, %v4069_v62   ;;  %v3827_v5 = vpack.i.bf16 %v4067_v63, %v4069_v62  ;;  %v4071_v45 = vpop.eup %4070 }
0x45a3   :  { %3828 = vrot.lane.b32.xlu0 %v3827_v5, %s4174_s27 }
0x45a8   :  { %3832 = vset.pattern.permute.xlu1 %v4180_v16 }
0x45a9   :  { %3152 = vperm.xlu2 %3813, %v4071_v45  }
0x45ab   :  { %3168 = vrot.lane.b32.xlu0 %v4071_v45, %s4174_s27 }
0x45b1   :  { %3220 = vrot.lane.b32.xlu2 %v4983_v10, %s4173_s26 }
0x45fb   :  { %v3163_v6 = vpop.permute.xlu2 %3162 }
0x45fc   :  { %v3167_v33 = vmul.f32 %v4825_v11, %v3163_v6  ;;  %v4109_v11 = vld [vmem:[#allocation4 + $0xd8] sm:$0xff] }
0x4603   :  { %v3153_v21 = vpop.permute.xlu2 %3152 }
0x4604   :  { %v3165_v10 = vmul.f32 %v5021_v59, %v3153_v21 }
0x460b   :  { %v3221_v8 = vpop.permute.xlu2 %3220 }
0x4612   :  { %v3158_v51 = vpop.permute.xlu1 %3157 }
0x4613   :  { %v3166_v41 = vmul.f32 %v4828_v53, %v3158_v51  ;;  %v4110_v53 = vld [vmem:[#allocation4 + $0xd0] sm:$0xff] }
0x4615   :  { %v3829_v0 = vpop.permute.xlu0 %3828 }
0x4616   :  { %v3831_v3 = vunpack.i.h.bf16 %v3829_v0  ;;  %v3830_v13 = vunpack.i.l.bf16 %v3829_v0 }
0x4618   :  { %v3179_v28 = vsel %vm164_vm13, %v3167_v33, %v3830_v13  ;;  %v3178_v16 = vsel %vm164_vm13, %v3166_v41, %v3831_v3 }
0x4619   :  { %3193 = vmatpush.msrb.mxu3 %v3179_v28 }
0x461b   :  { %3194 = vmatpush.msrb.mxu3 %v3178_v16 }
0x461d   :  { %v3169_v52 = vpop.permute.xlu0 %3168 }
0x461e   :  { %v3177_v54 = vsel %vm164_vm13, %v3165_v10, %v3169_v52 }
0x461f   :  { %3195 = vmatpush.msrb.mxu3 %v3177_v54 }
0x4620   :  { %3749 = vmatmul.msk.f32.vlgmr.msrb.gmra.mxu3 %vm2225_vm4, %v4755_v2 }
0x4621   :  { %3307 = vmatpush.msra.mxu3 %v4896_v37 }
0x4623   :  { %3308 = vmatpush.msra.mxu3 %v4899_v26 }
0x4625   :  { %3478 = vmatpush.msrb.mxu3 %v4109_v11 }
0x4627   :  { %3479 = vmatpush.msrb.mxu3 %v4110_v53 }
0x4629   :  { %3480 = vmatpush.msrb.mxu3 %v4111_v4 }
0x462b   :  { %3481 = vmatpush.msrb.mxu3 %v4112_v55 }
0x46a3   :  { %v3197_v56 = vpop.f32.mrf.mxu3 }
0x46a4   :  { %3202 = vperm.xlu1 %3832, %v3197_v56  }
0x46ac   :  { %3833 = vset.pattern.permute.xlu1 %v4178_v58 }
0x4716   :  { %v3203_v60 = vpop.permute.xlu1 %3202 }
0x4717   :  { %4072 = vrcp.f32 %v3203_v60  ;;  %v3216_v37 = vand.u32 2147483648, %v3203_v60  ;;  %v3214_v26 = vand.u32 2147483647, %v3203_v60  ;;  %vm3210_vm9 = vweird.f32 %v3203_v60 }
0x4719   :  { %v3217_v24 = vor.u32 1.1754944e-38, %v3216_v37  ;;  %vm3215_vm6 = vcmp.eq.f32.partialorder %v3214_v26, 8.507059e+37 }
0x471d   :  { %v4073_v18 = vpop.eup %4072 }
0x471e   :  { %v3206_v30 = vmul.f32 %v4073_v18, %v3203_v60  ;;  %vm3211_vm8 = vweird.f32 %v4073_v18 }
0x471f   :  { %vm3212_vm10 = vmor %vm3210_vm9, %vm3211_vm8 }
0x4720   :  { %v3207_v49 = vsub.f32 1.0, %v3206_v30 }
0x4722   :  { %v3208_v14 = vmul.f32 %v4073_v18, %v3207_v49 }
0x4724   :  { %v3209_v47 = vadd.f32 %v4073_v18, %v3208_v14 }
0x4726   :  { %v3213_v17 = vsel %vm3212_vm10, %v4073_v18, %v3209_v47  ;;  %vm3599_vm10 = vcmask 27648  }
0x4727   :  { %v3218_v15 = vsel %vm3215_vm6, %v3217_v24, %v3213_v17 }
0x4728   :  { %v3219_v61 = vmul.f32 %v3218_v15, %v3197_v56 }
0x472a   :  { %v3223_v58 = vsel %vm164_vm13, %v3219_v61, %v3221_v8 }
0x472b   :  { %3750 = vmatmul.msk.f32.vlgmr.msrb.gmra.mxu1 %vm1280_vm15, %v3223_v58 }
0x47a8   :  { %v3244_v34 = vpop.f32.mrf.mxu1 }
0x47a9   :  { %v3245_v35 = vadd.f32 %v3244_v34, %v5033_v23 }
0x47ab   :  { %v3247_v42 = vmul.f32 %v3245_v35, %v4254_v12 }
0x47ad   :  { %v3751_v39 = vmul.f32 -1.442695, %v3247_v42 }
0x47af   :  { %4074 = vpow2.f32 %v3751_v39 }
0x47b5   :  { %v4075_v38 = vpop.eup %4074 }
0x47b6   :  { %v3251_v44 = vadd.f32 1.0, %v4075_v38 }
0x47b8   :  { %4076 = vrcp.f32 %v3251_v44  ;;  %v3263_v46 = vand.u32 2147483648, %v3251_v44  ;;  %v3261_v19 = vand.u32 2147483647, %v3251_v44  ;;  %vm3257_vm0 = vweird.f32 %v3251_v44 }
0x47ba   :  { %v3264_v27 = vor.u32 1.1754944e-38, %v3263_v46  ;;  %vm3262_vm8 = vcmp.eq.f32.partialorder %v3261_v19, 8.507059e+37 }
0x47be   :  { %v4077_v40 = vpop.eup %4076 }
0x47bf   :  { %v3253_v25 = vmul.f32 %v4077_v40, %v3251_v44  ;;  %vm3258_vm7 = vweird.f32 %v4077_v40 }
0x47c0   :  { %vm3259_vm3 = vmor %vm3257_vm0, %vm3258_vm7 }
0x47c1   :  { %v3254_v43 = vsub.f32 1.0, %v3253_v25 }
0x47c3   :  { %v3255_v20 = vmul.f32 %v4077_v40, %v3254_v43 }
0x47c5   :  { %v3256_v50 = vadd.f32 %v4077_v40, %v3255_v20 }
0x47c7   :  { %v3260_v31 = vsel %vm3259_vm3, %v4077_v40, %v3256_v50 }
0x47c8   :  { %v3265_v63 = vsel %vm3262_vm8, %v3264_v27, %v3260_v31 }
0x47c9   :  { %v3267_v62 = vmul.f32 2.0, %v3265_v63  ;;  %v3269_v51 = vmul.f32 %v3265_v63, %v4979_v32 }
0x47cb   :  { %v3752_v5 = vadd.f32 -1.0, %v3267_v62 }
0x47cd   :  { %3271 = vrot.lane.b32.xlu0 %v3752_v5, %s4173_s26  ;;  %v4114_v5 = vld [vmem:[#allocation2 + $0x10] sm:$0xff] }
0x483f   :  { %v3272_v45 = vpop.permute.xlu0 %3271 }
0x4840   :  { %v3274_v6 = vmul.f32 %v3272_v45, %v3265_v63 }
0x4842   :  { %3276 = vrot.lane.b32.xlu1 %v3274_v6, %s4174_s27 }
0x48b4   :  { %v3277_v0 = vpop.permute.xlu1 %3276 }
0x48b5   :  { %v5040_v33 = vadd.f32 %v3277_v0, %v3269_v51  ;;  %v4115_v0 = vld [vmem:[#allocation2 + $0x8] sm:$0xff] }
0x48b7   :  { %4078 = vtanh.f32 %v5040_v33 }
0x48bd   :  { %v4079_v3 = vpop.eup %4078 }
0x48be   :  { %3282 = vrot.lane.b32.xlu2 %v4079_v3, %s4175_s28 }
0x4918   :  { %v3283_v13 = vpop.permute.xlu2 %3282 }
0x4919   :  { %v5044_v41 = vmul.f32 %v3283_v13, %v3265_v63 }
0x491b   :  { %3287 = vrot.lane.b32.xlu0 %v5044_v41, %s4176_s6 }
0x498d   :  { %v3288_v28 = vpop.permute.xlu0 %3287 }
0x498e   :  { %3290 = vst.msk [vmem:[#allocation3 + $0x8] sm:$0x3] %vm232_vm12, %v3288_v28  ;;  %3753 = vmatmul.msk.f32.vlgmr.msra.gmra.mxu3 %vm164_vm13, %v3288_v28 }
0x4a11   :  { %v3310_v32 = vpop.f32.mrf.mxu3 }
0x4a12   :  { %v3311_v21 = vadd.f32 %v4924_v36, %v3310_v32 }
0x4a14   :  { %3754 = vmatpush.msk.msrb.mxu0 %vm1140_vm11, %v3311_v21 }
0x4a15   :  { %3755 = vmatmul.msk.f32.vlgmr.msrb.gmra.mxu0 %vm1133_vm14, %v4686_v22 }
0x4a1d   :  { %3756 = vmatmul.msk.f32.gmra.mxu0 %vm1133_vm14, %v4686_v22 }
0x4a25   :  { %3757 = vmatmul.msk.f32.gmra.mxu0 %vm1133_vm14, %v4686_v22 }
0x4a92   :  { %v3333_v16 = vpop.f32.mrf.mxu0 }
0x4a93   :  { %v3342_v10 = vadd.f32 %v3333_v16, %v4596_v1 }
0x4a95   :  { %4080 = vtanh.f32 %v3342_v10  ;;  %v3533_v10 = vld [vmem:[#allocation4 + $0x128] sm:$0xff] }
0x4a9a   :  { %v3336_v52 = vpop.f32.mrf.mxu0 }
0x4a9b   :  { %v4081_v54 = vpop.eup %4080  ;;  %v3343_v11 = vadd.f32 %v3336_v52, %v4598_v48  ;;  %v3532_v52 = vld [vmem:[#allocation4 + $0x120] sm:$0xff] }
0x4a9c   :  { %v3348_v36 = vmul.f32 %v4936_v57, %v4081_v54  ;;  %v3530_v54 = vld [vmem:[#allocation3] sm:$0xff] }
0x4a9d   :  { %4082 = vtanh.f32 %v3343_v11  ;;  %v3566_v11 = vld [vmem:[#allocation4 + $0x140] sm:$0xff] }
0x4a9e   :  { %v3351_v53 = vsel %vm2063_vm1, %v3348_v36, 0.0  ;;  %3589 = vmatpush.msra.mxu2 %v3566_v11  ;;  %v3565_v36 = vld [vmem:[#allocation4 + $0x138] sm:$0xff] }
0x4a9f   :  { %3352 = vadd.xlane.f32.xlu1 %v3351_v53 }
0x4aa0   :  { %3590 = vmatpush.msra.mxu2 %v3565_v36 }
0x4aa2   :  { %v3339_v4 = vpop.f32.mrf.mxu0 }
0x4aa3   :  { %v4083_v55 = vpop.eup %4082  ;;  %v3344_v56 = vadd.f32 %v3339_v4, %v4600_v7 }
0x4aa4   :  { %v3349_v22 = vmul.f32 %v4936_v57, %v4083_v55 }
0x4aa5   :  { %4084 = vtanh.f32 %v3344_v56 }
0x4aa6   :  { %v3354_v1 = vsel %vm2063_vm1, %v3349_v22, 0.0 }
0x4aa7   :  { %3355 = vadd.xlane.f32.xlu2 %v3354_v1 }
0x4aab   :  { %v4085_v60 = vpop.eup %4084 }
0x4aac   :  { %v3350_v18 = vmul.f32 %v4936_v57, %v4085_v60 }
0x4aae   :  { %v3357_v48 = vsel %vm2063_vm1, %v3350_v18, 0.0 }
0x4aaf   :  { %3358 = vadd.xlane.f32.xlu0 %v3357_v48 }
0x4b12   :  { %v3353_v30 = vpop.xlane.xlu1 %3352 }
0x4b13   :  { %v3360_v14 = vadd.f32 %v4945_v9, %v3353_v30 }
0x4b15   :  { %v3363_v7 = vmax.f32 %v3360_v14, 0.0 }
0x4b17   :  { %v3366_v15 = vsel %vm2174_vm5, %v3363_v7, -inf }
0x4b1a   :  { %v3356_v49 = vpop.xlane.xlu2 %3355 }
0x4b1b   :  { %v3361_v37 = vadd.f32 %v4945_v9, %v3356_v49 }
0x4b1d   :  { %v3364_v26 = vmax.f32 %v3361_v37, 0.0 }
0x4b1f   :  { %v3367_v24 = vsel %vm2174_vm5, %v3364_v26, -inf }
0x4b20   :  { %v3369_v57 = vmax.f32 %v3366_v15, %v3367_v24  ;;  %v3851_v24 = vld [vmem:[#allocation4 + $0x148] ss:$0 sm:$0xff] }
0x4b22   :  { %v3359_v47 = vpop.xlane.xlu0 %3358 }
0x4b23   :  { %v3362_v17 = vadd.f32 %v4945_v9, %v3359_v47 }
0x4b25   :  { %v3365_v61 = vmax.f32 %v3362_v17, 0.0 }
0x4b27   :  { %v3368_v8 = vsel %vm2174_vm5, %v3365_v61, -inf }
0x4b28   :  { %v3370_v58 = vmax.f32 %v3369_v57, %v3368_v8 }
0x4b2a   :  { %v3371_v29 = vrot.slane %v3370_v58, 4 }
0x4b2c   :  { %v3372_v34 = vmax.f32 %v3370_v58, %v3371_v29 }
0x4b2e   :  { %v3373_v35 = vrot.slane %v3372_v34, 2 }
0x4b30   :  { %v3374_v42 = vmax.f32 %v3372_v34, %v3373_v35 }
0x4b32   :  { %v3375_v39 = vrot.slane %v3374_v42, 1 }
0x4b34   :  { %v3376_v38 = vmax.f32 %v3374_v42, %v3375_v39 }
0x4b36   :  { %v3378_v44 = vsub.f32 %v3364_v26, %v3376_v38  ;;  %v3379_v40 = vsub.f32 %v3365_v61, %v3376_v38  ;;  %v3377_v46 = vsub.f32 %v3363_v7, %v3376_v38  ;;  %v3461_v61 = vrot.slane %v5033_v23, 2 }
0x4b38   :  { %v3382_v25 = vmul.f32 1.442695, %v3378_v44  ;;  %v3384_v43 = vmul.f32 1.442695, %v3379_v40  ;;  %v3380_v9 = vmul.f32 1.442695, %v3377_v46 }
0x4b3a   :  { %4086 = vpow2.f32 %v3382_v25 }
0x4b3b   :  { %4088 = vpow2.f32 %v3384_v43 }
0x4b3c   :  { %4090 = vpow2.f32 %v3380_v9 }
0x4b40   :  { %v4087_v20 = vpop.eup %4086 }
0x4b41   :  { %v4089_v19 = vpop.eup %4088  ;;  %3393 = vperm.xlu2 %3813, %v4087_v20  }
0x4b42   :  { %3398 = vperm.xlu1 %3833, %v4089_v19   ;;  %v3834_v50 = vpack.i.bf16 %v4087_v20, %v4089_v19  ;;  %v4091_v27 = vpop.eup %4090 }
0x4b44   :  { %3835 = vrot.lane.b32.xlu0 %v3834_v50, %s4174_s27 }
0x4b49   :  { %3404 = vrot.lane.b32.xlu2 %v4091_v27, %s4174_s27 }
0x4b4a   :  { %3388 = vperm.xlu1 %3833, %v4091_v27  }
0x4b52   :  { %3456 = vrot.lane.b32.xlu1 %v5044_v41, %s4173_s26 }
0x4b9b   :  { %v3394_v31 = vpop.permute.xlu2 %3393 }
0x4b9c   :  { %v3402_v3 = vmul.f32 %v4115_v0, %v3394_v31 }
0x4ba3   :  { %v3405_v16 = vpop.permute.xlu2 %3404 }
0x4bb4   :  { %v3399_v63 = vpop.permute.xlu1 %3398 }
0x4bb5   :  { %v3403_v45 = vmul.f32 %v4114_v5, %v3399_v63 }
0x4bb6   :  { %v3836_v62 = vpop.permute.xlu0 %3835 }
0x4bb7   :  { %v3838_v6 = vunpack.i.h.bf16 %v3836_v62  ;;  %v3837_v51 = vunpack.i.l.bf16 %v3836_v62 }
0x4bb9   :  { %v3415_v13 = vsel %vm164_vm13, %v3403_v45, %v3837_v51  ;;  %v3414_v28 = vsel %vm164_vm13, %v3402_v3, %v3838_v6 }
0x4bba   :  { %3429 = vmatpush.msra.mxu1 %v3415_v13 }
0x4bbc   :  { %3430 = vmatpush.msra.mxu1 %v3414_v28  ;;  %v3389_v32 = vpop.permute.xlu1 %3388 }
0x4bbd   :  { %v3401_v21 = vmul.f32 %v5021_v59, %v3389_v32  ;;  %v5084_v59 = vld [vmem:[#allocation4 + $0x130] ss:$0 sm:$0xff] }
0x4bbf   :  { %v3413_v41 = vsel %vm164_vm13, %v3401_v21, %v3405_v16 }
0x4bc0   :  { %3431 = vmatpush.msra.mxu1 %v3413_v41 }
0x4bc1   :  { %3758 = vmatmul.msk.f32.vlgmr.msra.gmra.mxu1 %vm2225_vm4, %v4755_v2 }
0x4bc2   :  { %3556 = vmatpush.msrb.mxu1 %v3533_v10 }
0x4bc4   :  { %3557 = vmatpush.msrb.mxu1 %v3532_v52  ;;  %v3457_v7 = vpop.permute.xlu1 %3456 }
0x4bc9   :  { %3762 = vmatmul.msk.f32.vlgmr.msrb.gmra.mxu1 %vm164_vm13, %v3530_v54 }
0x4c3e   :  { %v3433_v53 = vpop.f32.mrf.mxu1 }
0x4c3f   :  { %3438 = vperm.xlu0 %3826, %v3433_v53  }
0x4c46   :  { %v3559_v4 = vpop.f32.mrf.mxu1 }
0x4c47   :  { %v3560_v55 = vadd.f32 %v5084_v59, %v3559_v4 }
0x4c49   :  { %3764 = vmatmul.msk.f32.vlgmr.msra.gmra.mxu2 %vm164_vm13, %v3560_v55 }
0x4cb1   :  { %v3439_v2 = vpop.permute.xlu0 %3438 }
0x4cb2   :  { %4092 = vrcp.f32 %v3439_v2  ;;  %v3452_v60 = vand.u32 2147483648, %v3439_v2  ;;  %v3450_v48 = vand.u32 2147483647, %v3439_v2  ;;  %vm3446_vm14 = vweird.f32 %v3439_v2 }
0x4cb4   :  { %v3453_v49 = vor.u32 1.1754944e-38, %v3452_v60  ;;  %vm3451_vm5 = vcmp.eq.f32.partialorder %v3450_v48, 8.507059e+37 }
0x4cb8   :  { %v4093_v56 = vpop.eup %4092 }
0x4cb9   :  { %v3442_v22 = vmul.f32 %v4093_v56, %v3439_v2  ;;  %vm3447_vm11 = vweird.f32 %v4093_v56 }
0x4cba   :  { %vm3448_vm1 = vmor %vm3446_vm14, %vm3447_vm11 }
0x4cbb   :  { %v3443_v1 = vsub.f32 1.0, %v3442_v22 }
0x4cbd   :  { %v3444_v18 = vmul.f32 %v4093_v56, %v3443_v1 }
0x4cbf   :  { %v3445_v30 = vadd.f32 %v4093_v56, %v3444_v18 }
0x4cc1   :  { %v3449_v37 = vsel %vm3448_vm1, %v4093_v56, %v3445_v30 }
0x4cc2   :  { %v3454_v14 = vsel %vm3451_vm5, %v3453_v49, %v3449_v37 }
0x4cc3   :  { %v3455_v26 = vmul.f32 %v3454_v14, %v3433_v53 }
0x4cc5   :  { %v3459_v47 = vsel %vm164_vm13, %v3455_v26, %v3457_v7 }
0x4cc6   :  { %3759 = vmatmul.msk.f32.vlgmr.msrb.gmra.mxu3 %vm1280_vm15, %v3459_v47 }
0x4ccc   :  { %v3592_v17 = vpop.f32.mrf.mxu2 }
0x4ccd   :  { %v3593_v15 = vadd.f32 %v3851_v24, %v3592_v17 }
0x4ccf   :  { %3598 = vst.msk [vmem:[%s5115_s4] sm:$0xff] %vm52_vm2, %v3593_v15 }
0x4d49   :  { %v3483_v57 = vpop.f32.mrf.mxu3 }
0x4d4a   :  { %v3484_v8 = vadd.f32 %v3483_v57, %v3461_v61 }
0x4d4c   :  { %v3486_v58 = vmul.f32 %v3484_v8, %v4254_v12 }
0x4d4e   :  { %v3760_v29 = vmul.f32 -1.442695, %v3486_v58 }
0x4d50   :  { %4094 = vpow2.f32 %v3760_v29 }
0x4d56   :  { %v4095_v34 = vpop.eup %4094 }
0x4d57   :  { %v3490_v35 = vadd.f32 1.0, %v4095_v34 }
0x4d59   :  { %4096 = vrcp.f32 %v3490_v35  ;;  %v3502_v44 = vand.u32 2147483648, %v3490_v35  ;;  %v3500_v25 = vand.u32 2147483647, %v3490_v35  ;;  %vm3496_vm2 = vweird.f32 %v3490_v35 }
0x4d5b   :  { %v3503_v23 = vor.u32 1.1754944e-38, %v3502_v44  ;;  %vm3501_vm9 = vcmp.eq.f32.partialorder %v3500_v25, 8.507059e+37 }
0x4d5f   :  { %v4097_v42 = vpop.eup %4096 }
0x4d60   :  { %v3492_v39 = vmul.f32 %v4097_v42, %v3490_v35  ;;  %vm3497_vm15 = vweird.f32 %v4097_v42 }
0x4d61   :  { %vm3498_vm4 = vmor %vm3496_vm2, %vm3497_vm15 }
0x4d62   :  { %v3493_v38 = vsub.f32 1.0, %v3492_v39 }
0x4d64   :  { %v3494_v40 = vmul.f32 %v4097_v42, %v3493_v38 }
0x4d66   :  { %v3495_v43 = vadd.f32 %v4097_v42, %v3494_v40 }
0x4d68   :  { %v3499_v46 = vsel %vm3498_vm4, %v4097_v42, %v3495_v43 }
0x4d69   :  { %v3504_v9 = vsel %vm3501_vm9, %v3503_v23, %v3499_v46 }
0x4d6a   :  { %v3506_v12 = vmul.f32 2.0, %v3504_v9  ;;  %v3508_v27 = vmul.f32 %v3504_v9, %v5040_v33 }
0x4d6c   :  { %v3761_v20 = vadd.f32 -1.0, %v3506_v12 }
0x4d6e   :  { %3510 = vrot.lane.b32.xlu2 %v3761_v20, %s4173_s26  ;;  %s3612_s26 = sshll.u32 %s5116_s5, 4  ;;  %s3613_s26 = int_to_ptr.hbm [resolvable:$true] %s3612_s26 }
0x4d6f   :  { %3615 = dma.vmem_to_hbm [thread:$0]  %s3611_s24, 32, %s3613_s26, [#allocation6]  }
0x4dc8   :  { %v3511_v19 = vpop.permute.xlu2 %3510 }
0x4dc9   :  { %v3513_v50 = vmul.f32 %v3511_v19, %v3504_v9 }
0x4dcb   :  { %3515 = vrot.lane.b32.xlu0 %v3513_v50, %s4174_s27 }
0x4e3d   :  { %v3516_v31 = vpop.permute.xlu0 %3515 }
0x4e3e   :  { %v3518_v63 = vadd.f32 %v3516_v31, %v3508_v27 }
0x4e40   :  { %4098 = vtanh.f32 %v3518_v63 }
0x4e46   :  { %v4099_v62 = vpop.eup %4098 }
0x4e47   :  { %3521 = vrot.lane.b32.xlu1 %v4099_v62, %s4175_s28 }
0x4eb9   :  { %v3522_v5 = vpop.permute.xlu1 %3521 }
0x4eba   :  { %v3524_v45 = vmul.f32 %v3522_v5, %v3504_v9 }
0x4ebc   :  { %3526 = vrot.lane.b32.xlu2 %v3524_v45, %s4176_s6 }
0x4f16   :  { %v3527_v6 = vpop.permute.xlu2 %3526 }
0x4f17   :  { %3529 = vst.msk [vmem:[#allocation3 + $0xa] sm:$0x3] %vm232_vm12, %v3527_v6 }
0x4f1e   :  { %v3531_v51 = vld [vmem:[#allocation3 + $0x8] sm:$0xf] }
0x4f1f   :  { %3763 = vmatmul.msk.f32.gmra.mxu1 %vm164_vm13, %v3531_v51 }
0x4f9c   :  { %v3562_v0 = vpop.f32.mrf.mxu1 }
0x4f9d   :  { %v3563_v3 = vadd.f32 %v5084_v59, %v3562_v0 }
0x4f9f   :  { %3765 = vmatmul.msk.f32.gmra.mxu2 %vm164_vm13, %v3563_v3 }
0x5022   :  { %v3595_v33 = vpop.f32.mrf.mxu2 }
0x5023   :  { %v3596_v13 = vadd.f32 %v3851_v24, %v3595_v33 }
0x5025   :  { %3600 = vst.msk [vmem:[%s5115_s4 + $0x8] sm:$0xf] %vm3599_vm10, %v3596_v13 }
0x5026   :  { %4166 = dma.done.wait [#allocation6], 32  }
0x5027   :  { %4167 = vsyncadd [#allocation6], 4294967264 }
0x5028   :  { %3622 = vsyncpa [#allocation5], 1 }
0x5029   :  { %3623 = vsyncpa [#allocation6], 1 }

</bundles_post_ra>
